<compile_context>
chip_gen: v7x
topology: tpu7x:2x2x1
jax: 0.10.0
libtpu: 0.0.40
codegen_flags: <defaults>
</compile_context>

<pallas_src>
import jax
import jax.numpy as jnp
import numpy as np
from jax.experimental import pallas as pl
from jax.experimental.pallas import tpu as pltpu


def _round_up(x, m):
    return (x + m - 1) // m * m


def _pick_batch_tile(B):
    # Largest Bt dividing B that still leaves >= 2 grid steps (v7x has 2 TCs).
    for bt in (8, 4, 2):
        if B % bt == 0 and B // bt >= 2:
            return bt
    return 1


def _make_block_kernel(W, S, M, L1, G, Cp, Pp, has_sc_conv):
    """Fused BasicBlock: conv1+ReLU -> conv2 -> shortcut add -> ReLU (stride 1)."""
    Wp2 = W + 2
    A = W + 3                       # max |tap offset| in the flat halo'd layout
    taps = [(ky, kx) for ky in range(3) for kx in range(3)]
    head_z = G + A                  # h rows zeroed above the conv1 store region
    tail_start = head_z + L1
    tail_z = 2 * A                  # h rows zeroed below it (incl. scratch tail pad)

    def kernel(*refs):
        if has_sc_conv:
            xp_ref, mask_ref, w1_ref, w2_ref, ws_ref, out_ref, h_ref, acc_ref = refs
        else:
            xp_ref, mask_ref, w1_ref, w2_ref, out_ref, h_ref, acc_ref = refs

        # ---- conv1 (3x3, pad 1): 9 contiguous flat-row windows, f32 VMEM acc ----
        # h[q] = sum_t xp[q + (ky-1)*(W+2) + (kx-1)] @ w1[t], computed for q in [A, M-A).
        for t, (ky, kx) in enumerate(taps):
            xt = xp_ref[pl.ds(ky * Wp2 + kx, L1), :]
            contrib = jnp.dot(xt, w1_ref[t], preferred_element_type=jnp.float32)
            if t == 0:
                acc_ref[pl.ds(0, L1), :] = contrib
            else:
                acc_ref[pl.ds(0, L1), :] += contrib

        # ReLU fused with the interior mask (zeroes halo/junk rows), park h in bf16.
        h_val = (jnp.maximum(acc_ref[pl.ds(0, L1), :], 0.0) * mask_ref[...]
                 ).astype(h_ref.dtype)
        h_ref[pl.ds(0, head_z), :] = jnp.zeros((head_z, Pp), h_ref.dtype)
        h_ref[pl.ds(head_z, L1), :] = h_val                  # 16-sublane-aligned store
        h_ref[pl.ds(tail_start, tail_z), :] = jnp.zeros((tail_z, Pp), h_ref.dtype)

        # ---- conv2 (3x3, pad 1) over h: all M rows -> full-block aligned store ----
        for t, (ky, kx) in enumerate(taps):
            ht = h_ref[pl.ds(G + (ky - 1) * Wp2 + (kx - 1), M), :]
            contrib = jnp.dot(ht, w2_ref[t], preferred_element_type=jnp.float32)
            if t == 0:
                acc_ref[...] = contrib
            else:
                acc_ref[...] += contrib

        # ---- shortcut (1x1 conv or identity; same flat layout as the output) ----
        if has_sc_conv:
            acc_ref[...] += jnp.dot(xp_ref[...], ws_ref[...],
                                    preferred_element_type=jnp.float32)
        else:
            acc_ref[...] += xp_ref[...].astype(jnp.float32)   # Cp == Pp (identity case)

        out_ref[...] = jnp.maximum(acc_ref[...], 0.0).astype(out_ref.dtype)

    return kernel


def basic_block_forward(x_nchw, w1_oihw, w2_oihw, ws_oihw, stride=1):
    """relu(conv2(relu(conv1(x))) + shortcut(x)) — PyTorch BasicBlock_mod forward."""
    # TODO(synk): stride > 1 downsampling path (phase-split layout) not implemented.
    assert stride == 1, "only stride=1 BasicBlock_mod is implemented"

    B, Cin, H, W = x_nchw.shape
    P = w1_oihw.shape[0]
    has_sc_conv = ws_oihw is not None
    if not has_sc_conv:
        # PyTorch identity shortcut only exists when stride == 1 and in_planes == planes.
        assert Cin == P

    Cp = _round_up(Cin, 128)            # lane-dense loads, full MXU K
    Pp = _round_up(P, 128)              # lane-dense stores, full MXU N

    Wp2, A = W + 2, W + 3
    S = (H + 2) * Wp2                   # flat rows per image (1-px halo layout)
    Bt = _pick_batch_tile(B)
    steps = B // Bt
    M = Bt * S                          # flat rows per grid step
    L1 = M - 2 * A                      # conv1 rows actually computed
    # h head pad: >= A and (G + A) % 16 == 0 so the conv1 interior store is
    # bf16-sublane aligned; tail pad of A rows lets conv2 compute all M rows.
    G = _round_up(2 * A, 16) - A

    # NCHW -> NHWC, 1-px zero halo, channel pad, bf16, flatten to (steps, Bt*S, Cp).
    x_nhwc = jnp.transpose(x_nchw, (0, 2, 3, 1))
    xp = jnp.pad(x_nhwc, ((0, 0), (1, 1), (1, 1), (0, Cp - Cin))).astype(jnp.bfloat16)
    xp = xp.reshape(steps, M, Cp)

    # Interior mask over the L1 conv1 rows (zeroes the halo/junk rows of h).
    p = np.arange(A, A + L1)
    y_pad, x_pad = (p % S) // Wp2, (p % S) % Wp2
    mask = (y_pad >= 1) & (y_pad <= H) & (x_pad >= 1) & (x_pad <= W)
    mask = jnp.asarray(mask.astype(np.float32).reshape(L1, 1))

    def conv3x3_w(w, ci_pad, co_pad):
        o, i = w.shape[0], w.shape[1]
        wm = jnp.transpose(w, (2, 3, 1, 0)).reshape(9, i, o)       # (tap, cin, cout)
        return jnp.pad(wm, ((0, 0), (0, ci_pad - i), (0, co_pad - o))).astype(jnp.bfloat16)

    w1 = conv3x3_w(w1_oihw, Cp, Pp)                                # (9, Cp, Pp)
    w2 = conv3x3_w(w2_oihw, Pp, Pp)                                # (9, Pp, Pp)

    in_specs = [
        pl.BlockSpec((pl.Squeezed(), M, Cp), lambda g: (g, 0, 0)),
        pl.BlockSpec((L1, 1), lambda g: (0, 0)),
        pl.BlockSpec((9, Cp, Pp), lambda g: (0, 0, 0)),
        pl.BlockSpec((9, Pp, Pp), lambda g: (0, 0, 0)),
    ]
    args = [xp, mask, w1, w2]
    if has_sc_conv:
        ws = jnp.pad(jnp.transpose(ws_oihw[:, :, 0, 0], (1, 0)),
                     ((0, Cp - Cin), (0, Pp - P))).astype(jnp.bfloat16)     # (Cp, Pp)
        in_specs.append(pl.BlockSpec((Cp, Pp), lambda g: (0, 0)))
        args.append(ws)

    kernel = _make_block_kernel(W, S, M, L1, G, Cp, Pp, has_sc_conv)

    out = pl.pallas_call(
        kernel,
        out_shape=jax.ShapeDtypeStruct((steps, M, Pp), jnp.bfloat16),
        grid=(steps,),
        in_specs=in_specs,
        out_specs=pl.BlockSpec((pl.Squeezed(), M, Pp), lambda g: (g, 0, 0)),
        scratch_shapes=[pltpu.VMEM((G + M + A, Pp), jnp.bfloat16),   # halo'd h
                        pltpu.VMEM((M, Pp), jnp.float32)],           # f32 accumulator
        compiler_params=pltpu.CompilerParams(dimension_semantics=("parallel",)),
    )(*args)

    # Flat halo'd layout -> NCHW f32 (single fused reshape/slice/transpose/cast).
    out = out.reshape(B, H + 2, Wp2, Pp)[:, 1:H + 1, 1:W + 1, :P]
    return jnp.transpose(out, (0, 3, 1, 2)).astype(jnp.float32)


# --------------------------------------------------------------------------
# Pure-JAX f32 reference (mirrors the PyTorch forward exactly)
# --------------------------------------------------------------------------
def reference_forward(x, w1, w2, ws, stride=1):
    dn = ("NCHW", "OIHW", "NCHW")
    hp = jax.lax.Precision.HIGHEST
    y = jax.lax.conv_general_dilated(x, w1, (stride, stride), ((1, 1), (1, 1)),
                                     dimension_numbers=dn, precision=hp)
    y = jnp.maximum(y, 0.0)
    y = jax.lax.conv_general_dilated(y, w2, (1, 1), ((1, 1), (1, 1)),
                                     dimension_numbers=dn, precision=hp)
    if ws is None:
        sc = x
    else:
        sc = jax.lax.conv_general_dilated(x, ws, (stride, stride), ((0, 0), (0, 0)),
                                          dimension_numbers=dn, precision=hp)
    return jnp.maximum(y + sc, 0.0)


if __name__ == "__main__":
    # BasicBlock_mod(in_planes=4, planes=8, stride=1): shortcut is a 1x1 conv
    # (in_planes != expansion * planes), conv1/conv2 are 3x3, bias=False.
    B, Cin, H, W = 2, 4, 16, 16
    planes, stride = 8, 1

    key = jax.random.PRNGKey(0)
    kx_, k1, k2, k3 = jax.random.split(key, 4)
    x = jax.random.normal(kx_, (B, Cin, H, W), dtype=jnp.float32)
    w1 = 0.1 * jax.random.normal(k1, (planes, Cin, 3, 3), dtype=jnp.float32)
    w2 = 0.1 * jax.random.normal(k2, (planes, planes, 3, 3), dtype=jnp.float32)
    ws = 0.1 * jax.random.normal(k3, (planes, Cin, 1, 1), dtype=jnp.float32)

    fwd = jax.jit(lambda a, b, c, d: basic_block_forward(a, b, c, d, stride=1))
    out = jax.block_until_ready(fwd(x, w1, w2, ws))

    ref = jax.block_until_ready(reference_forward(x, w1, w2, ws, stride=stride))

    assert out.shape == (B, planes, H, W), out.shape
    # bf16 MXU inputs / bf16 writeback with f32 accumulation -> loose tolerance.
    np.testing.assert_allclose(np.asarray(out), np.asarray(ref), atol=5e-2, rtol=5e-2)

    print("KERNEL_OK")
</pallas_src>

<mosaic_0001>
module attributes {stable_mosaic.version = 11 : i64} {
  func.func @kernel(%arg0: i32, %arg1: memref<1x324x128xbf16, #tpu.memory_space<vmem>>, %arg2: memref<286x1xf32, #tpu.memory_space<vmem>>, %arg3: memref<9x128x128xbf16, #tpu.memory_space<vmem>>, %arg4: memref<9x128x128xbf16, #tpu.memory_space<vmem>>, %arg5: memref<128x128xbf16, #tpu.memory_space<vmem>>, %arg6: memref<1x324x128xbf16, #tpu.memory_space<vmem>>, %arg7: memref<372x128xbf16, #tpu.memory_space<vmem>>, %arg8: memref<324x128xf32, #tpu.memory_space<vmem>>) attributes {dimension_semantics = [#tpu.dimension_semantics<parallel>], iteration_bounds = array<i64: 2>, scalar_prefetch = 0 : i64, scratch_operands = 2 : i64, tpu.core_type = #tpu.core_type<tc>, window_params = [{transform_indices = @transform_0, window_bounds = array<i64: 1, 324, 128>}, {pipeline_mode = #tpu.pipeline_mode<synchronous>, transform_indices = @transform_1, window_bounds = array<i64: 286, 1>}, {pipeline_mode = #tpu.pipeline_mode<synchronous>, transform_indices = @transform_2, window_bounds = array<i64: 9, 128, 128>}, {pipeline_mode = #tpu.pipeline_mode<synchronous>, transform_indices = @transform_3, window_bounds = array<i64: 9, 128, 128>}, {pipeline_mode = #tpu.pipeline_mode<synchronous>, transform_indices = @transform_4, window_bounds = array<i64: 128, 128>}, {transform_indices = @transform_5, window_bounds = array<i64: 1, 324, 128>}]} {
    %c0 = arith.constant 0 : index
    %c0_0 = arith.constant 0 : index
    %c0_1 = arith.constant 0 : index
    %0 = vector.load %arg1[%c0, %c0_0, %c0_1] : memref<1x324x128xbf16, #tpu.memory_space<vmem>>, vector<1x286x128xbf16>
    %1 = vector.shape_cast %0 : vector<1x286x128xbf16> to vector<286x128xbf16>
    %c0_2 = arith.constant 0 : index
    %c0_3 = arith.constant 0 : index
    %c0_4 = arith.constant 0 : index
    %2 = vector.load %arg3[%c0_2, %c0_3, %c0_4] : memref<9x128x128xbf16, #tpu.memory_space<vmem>>, vector<1x128x128xbf16>
    %3 = vector.shape_cast %2 : vector<1x128x128xbf16> to vector<128x128xbf16>
    %cst = arith.constant dense<0.000000e+00> : vector<286x128xf32>
    %4 = tpu.matmul %1, %3, %cst {dimension_numbers = #tpu.dot_dimension_numbers<[1], [0], [0], [1], [0, 0, 1, 1], [], []>} : vector<286x128xbf16>, vector<128x128xbf16>, vector<286x128xf32> -> vector<286x128xf32>
    %c0_5 = arith.constant 0 : index
    %c0_6 = arith.constant 0 : index
    %5 = vector.load %arg8[%c0_5, %c0_6] : memref<324x128xf32, #tpu.memory_space<vmem>>, vector<286x128xf32>
    tpu.vector_store %arg8[%c0_5, %c0_6], %4 {strides = array<i32>} : memref<324x128xf32, #tpu.memory_space<vmem>>, vector<286x128xf32>,
    %c0_7 = arith.constant 0 : index
    %c1 = arith.constant 1 : index
    %c0_8 = arith.constant 0 : index
    %6 = vector.load %arg1[%c0_7, %c1, %c0_8] : memref<1x324x128xbf16, #tpu.memory_space<vmem>>, vector<1x286x128xbf16>
    %7 = vector.shape_cast %6 : vector<1x286x128xbf16> to vector<286x128xbf16>
    %c1_9 = arith.constant 1 : index
    %c0_10 = arith.constant 0 : index
    %c0_11 = arith.constant 0 : index
    %8 = vector.load %arg3[%c1_9, %c0_10, %c0_11] : memref<9x128x128xbf16, #tpu.memory_space<vmem>>, vector<1x128x128xbf16>
    %9 = vector.shape_cast %8 : vector<1x128x128xbf16> to vector<128x128xbf16>
    %cst_12 = arith.constant dense<0.000000e+00> : vector<286x128xf32>
    %10 = tpu.matmul %7, %9, %cst_12 {dimension_numbers = #tpu.dot_dimension_numbers<[1], [0], [0], [1], [0, 0, 1, 1], [], []>} : vector<286x128xbf16>, vector<128x128xbf16>, vector<286x128xf32> -> vector<286x128xf32>
    %c0_13 = arith.constant 0 : index
    %c0_14 = arith.constant 0 : index
    %11 = vector.load %arg8[%c0_13, %c0_14] : memref<324x128xf32, #tpu.memory_space<vmem>>, vector<286x128xf32>
    %12 = arith.addf %11, %10 : vector<286x128xf32>
    %c0_15 = arith.constant 0 : index
    %c0_16 = arith.constant 0 : index
    %13 = vector.load %arg8[%c0_15, %c0_16] : memref<324x128xf32, #tpu.memory_space<vmem>>, vector<286x128xf32>
    tpu.vector_store %arg8[%c0_15, %c0_16], %12 {strides = array<i32>} : memref<324x128xf32, #tpu.memory_space<vmem>>, vector<286x128xf32>,
    %c0_17 = arith.constant 0 : index
    %c2 = arith.constant 2 : index
    %c0_18 = arith.constant 0 : index
    %14 = vector.load %arg1[%c0_17, %c2, %c0_18] : memref<1x324x128xbf16, #tpu.memory_space<vmem>>, vector<1x286x128xbf16>
    %15 = vector.shape_cast %14 : vector<1x286x128xbf16> to vector<286x128xbf16>
    %c2_19 = arith.constant 2 : index
    %c0_20 = arith.constant 0 : index
    %c0_21 = arith.constant 0 : index
    %16 = vector.load %arg3[%c2_19, %c0_20, %c0_21] : memref<9x128x128xbf16, #tpu.memory_space<vmem>>, vector<1x128x128xbf16>
    %17 = vector.shape_cast %16 : vector<1x128x128xbf16> to vector<128x128xbf16>
    %cst_22 = arith.constant dense<0.000000e+00> : vector<286x128xf32>
    %18 = tpu.matmul %15, %17, %cst_22 {dimension_numbers = #tpu.dot_dimension_numbers<[1], [0], [0], [1], [0, 0, 1, 1], [], []>} : vector<286x128xbf16>, vector<128x128xbf16>, vector<286x128xf32> -> vector<286x128xf32>
    %c0_23 = arith.constant 0 : index
    %c0_24 = arith.constant 0 : index
    %19 = vector.load %arg8[%c0_23, %c0_24] : memref<324x128xf32, #tpu.memory_space<vmem>>, vector<286x128xf32>
    %20 = arith.addf %19, %18 : vector<286x128xf32>
    %c0_25 = arith.constant 0 : index
    %c0_26 = arith.constant 0 : index
    %21 = vector.load %arg8[%c0_25, %c0_26] : memref<324x128xf32, #tpu.memory_space<vmem>>, vector<286x128xf32>
    tpu.vector_store %arg8[%c0_25, %c0_26], %20 {strides = array<i32>} : memref<324x128xf32, #tpu.memory_space<vmem>>, vector<286x128xf32>,
    %c0_27 = arith.constant 0 : index
    %c18 = arith.constant 18 : index
    %c0_28 = arith.constant 0 : index
    %22 = vector.load %arg1[%c0_27, %c18, %c0_28] : memref<1x324x128xbf16, #tpu.memory_space<vmem>>, vector<1x286x128xbf16>
    %23 = vector.shape_cast %22 : vector<1x286x128xbf16> to vector<286x128xbf16>
    %c3 = arith.constant 3 : index
    %c0_29 = arith.constant 0 : index
    %c0_30 = arith.constant 0 : index
    %24 = vector.load %arg3[%c3, %c0_29, %c0_30] : memref<9x128x128xbf16, #tpu.memory_space<vmem>>, vector<1x128x128xbf16>
    %25 = vector.shape_cast %24 : vector<1x128x128xbf16> to vector<128x128xbf16>
    %cst_31 = arith.constant dense<0.000000e+00> : vector<286x128xf32>
    %26 = tpu.matmul %23, %25, %cst_31 {dimension_numbers = #tpu.dot_dimension_numbers<[1], [0], [0], [1], [0, 0, 1, 1], [], []>} : vector<286x128xbf16>, vector<128x128xbf16>, vector<286x128xf32> -> vector<286x128xf32>
    %c0_32 = arith.constant 0 : index
    %c0_33 = arith.constant 0 : index
    %27 = vector.load %arg8[%c0_32, %c0_33] : memref<324x128xf32, #tpu.memory_space<vmem>>, vector<286x128xf32>
    %28 = arith.addf %27, %26 : vector<286x128xf32>
    %c0_34 = arith.constant 0 : index
    %c0_35 = arith.constant 0 : index
    %29 = vector.load %arg8[%c0_34, %c0_35] : memref<324x128xf32, #tpu.memory_space<vmem>>, vector<286x128xf32>
    tpu.vector_store %arg8[%c0_34, %c0_35], %28 {strides = array<i32>} : memref<324x128xf32, #tpu.memory_space<vmem>>, vector<286x128xf32>,
    %c0_36 = arith.constant 0 : index
    %c19 = arith.constant 19 : index
    %c0_37 = arith.constant 0 : index
    %30 = vector.load %arg1[%c0_36, %c19, %c0_37] : memref<1x324x128xbf16, #tpu.memory_space<vmem>>, vector<1x286x128xbf16>
    %31 = vector.shape_cast %30 : vector<1x286x128xbf16> to vector<286x128xbf16>
    %c4 = arith.constant 4 : index
    %c0_38 = arith.constant 0 : index
    %c0_39 = arith.constant 0 : index
    %32 = vector.load %arg3[%c4, %c0_38, %c0_39] : memref<9x128x128xbf16, #tpu.memory_space<vmem>>, vector<1x128x128xbf16>
    %33 = vector.shape_cast %32 : vector<1x128x128xbf16> to vector<128x128xbf16>
    %cst_40 = arith.constant dense<0.000000e+00> : vector<286x128xf32>
    %34 = tpu.matmul %31, %33, %cst_40 {dimension_numbers = #tpu.dot_dimension_numbers<[1], [0], [0], [1], [0, 0, 1, 1], [], []>} : vector<286x128xbf16>, vector<128x128xbf16>, vector<286x128xf32> -> vector<286x128xf32>
    %c0_41 = arith.constant 0 : index
    %c0_42 = arith.constant 0 : index
    %35 = vector.load %arg8[%c0_41, %c0_42] : memref<324x128xf32, #tpu.memory_space<vmem>>, vector<286x128xf32>
    %36 = arith.addf %35, %34 : vector<286x128xf32>
    %c0_43 = arith.constant 0 : index
    %c0_44 = arith.constant 0 : index
    %37 = vector.load %arg8[%c0_43, %c0_44] : memref<324x128xf32, #tpu.memory_space<vmem>>, vector<286x128xf32>
    tpu.vector_store %arg8[%c0_43, %c0_44], %36 {strides = array<i32>} : memref<324x128xf32, #tpu.memory_space<vmem>>, vector<286x128xf32>,
    %c0_45 = arith.constant 0 : index
    %c20 = arith.constant 20 : index
    %c0_46 = arith.constant 0 : index
    %38 = vector.load %arg1[%c0_45, %c20, %c0_46] : memref<1x324x128xbf16, #tpu.memory_space<vmem>>, vector<1x286x128xbf16>
    %39 = vector.shape_cast %38 : vector<1x286x128xbf16> to vector<286x128xbf16>
    %c5 = arith.constant 5 : index
    %c0_47 = arith.constant 0 : index
    %c0_48 = arith.constant 0 : index
    %40 = vector.load %arg3[%c5, %c0_47, %c0_48] : memref<9x128x128xbf16, #tpu.memory_space<vmem>>, vector<1x128x128xbf16>
    %41 = vector.shape_cast %40 : vector<1x128x128xbf16> to vector<128x128xbf16>
    %cst_49 = arith.constant dense<0.000000e+00> : vector<286x128xf32>
    %42 = tpu.matmul %39, %41, %cst_49 {dimension_numbers = #tpu.dot_dimension_numbers<[1], [0], [0], [1], [0, 0, 1, 1], [], []>} : vector<286x128xbf16>, vector<128x128xbf16>, vector<286x128xf32> -> vector<286x128xf32>
    %c0_50 = arith.constant 0 : index
    %c0_51 = arith.constant 0 : index
    %43 = vector.load %arg8[%c0_50, %c0_51] : memref<324x128xf32, #tpu.memory_space<vmem>>, vector<286x128xf32>
    %44 = arith.addf %43, %42 : vector<286x128xf32>
    %c0_52 = arith.constant 0 : index
    %c0_53 = arith.constant 0 : index
    %45 = vector.load %arg8[%c0_52, %c0_53] : memref<324x128xf32, #tpu.memory_space<vmem>>, vector<286x128xf32>
    tpu.vector_store %arg8[%c0_52, %c0_53], %44 {strides = array<i32>} : memref<324x128xf32, #tpu.memory_space<vmem>>, vector<286x128xf32>,
    %c0_54 = arith.constant 0 : index
    %c36 = arith.constant 36 : index
    %c0_55 = arith.constant 0 : index
    %46 = vector.load %arg1[%c0_54, %c36, %c0_55] : memref<1x324x128xbf16, #tpu.memory_space<vmem>>, vector<1x286x128xbf16>
    %47 = vector.shape_cast %46 : vector<1x286x128xbf16> to vector<286x128xbf16>
    %c6 = arith.constant 6 : index
    %c0_56 = arith.constant 0 : index
    %c0_57 = arith.constant 0 : index
    %48 = vector.load %arg3[%c6, %c0_56, %c0_57] : memref<9x128x128xbf16, #tpu.memory_space<vmem>>, vector<1x128x128xbf16>
    %49 = vector.shape_cast %48 : vector<1x128x128xbf16> to vector<128x128xbf16>
    %cst_58 = arith.constant dense<0.000000e+00> : vector<286x128xf32>
    %50 = tpu.matmul %47, %49, %cst_58 {dimension_numbers = #tpu.dot_dimension_numbers<[1], [0], [0], [1], [0, 0, 1, 1], [], []>} : vector<286x128xbf16>, vector<128x128xbf16>, vector<286x128xf32> -> vector<286x128xf32>
    %c0_59 = arith.constant 0 : index
    %c0_60 = arith.constant 0 : index
    %51 = vector.load %arg8[%c0_59, %c0_60] : memref<324x128xf32, #tpu.memory_space<vmem>>, vector<286x128xf32>
    %52 = arith.addf %51, %50 : vector<286x128xf32>
    %c0_61 = arith.constant 0 : index
    %c0_62 = arith.constant 0 : index
    %53 = vector.load %arg8[%c0_61, %c0_62] : memref<324x128xf32, #tpu.memory_space<vmem>>, vector<286x128xf32>
    tpu.vector_store %arg8[%c0_61, %c0_62], %52 {strides = array<i32>} : memref<324x128xf32, #tpu.memory_space<vmem>>, vector<286x128xf32>,
    %c0_63 = arith.constant 0 : index
    %c37 = arith.constant 37 : index
    %c0_64 = arith.constant 0 : index
    %54 = vector.load %arg1[%c0_63, %c37, %c0_64] : memref<1x324x128xbf16, #tpu.memory_space<vmem>>, vector<1x286x128xbf16>
    %55 = vector.shape_cast %54 : vector<1x286x128xbf16> to vector<286x128xbf16>
    %c7 = arith.constant 7 : index
    %c0_65 = arith.constant 0 : index
    %c0_66 = arith.constant 0 : index
    %56 = vector.load %arg3[%c7, %c0_65, %c0_66] : memref<9x128x128xbf16, #tpu.memory_space<vmem>>, vector<1x128x128xbf16>
    %57 = vector.shape_cast %56 : vector<1x128x128xbf16> to vector<128x128xbf16>
    %cst_67 = arith.constant dense<0.000000e+00> : vector<286x128xf32>
    %58 = tpu.matmul %55, %57, %cst_67 {dimension_numbers = #tpu.dot_dimension_numbers<[1], [0], [0], [1], [0, 0, 1, 1], [], []>} : vector<286x128xbf16>, vector<128x128xbf16>, vector<286x128xf32> -> vector<286x128xf32>
    %c0_68 = arith.constant 0 : index
    %c0_69 = arith.constant 0 : index
    %59 = vector.load %arg8[%c0_68, %c0_69] : memref<324x128xf32, #tpu.memory_space<vmem>>, vector<286x128xf32>
    %60 = arith.addf %59, %58 : vector<286x128xf32>
    %c0_70 = arith.constant 0 : index
    %c0_71 = arith.constant 0 : index
    %61 = vector.load %arg8[%c0_70, %c0_71] : memref<324x128xf32, #tpu.memory_space<vmem>>, vector<286x128xf32>
    tpu.vector_store %arg8[%c0_70, %c0_71], %60 {strides = array<i32>} : memref<324x128xf32, #tpu.memory_space<vmem>>, vector<286x128xf32>,
    %c0_72 = arith.constant 0 : index
    %c38 = arith.constant 38 : index
    %c0_73 = arith.constant 0 : index
    %62 = vector.load %arg1[%c0_72, %c38, %c0_73] : memref<1x324x128xbf16, #tpu.memory_space<vmem>>, vector<1x286x128xbf16>
    %63 = vector.shape_cast %62 : vector<1x286x128xbf16> to vector<286x128xbf16>
    %c8 = arith.constant 8 : index
    %c0_74 = arith.constant 0 : index
    %c0_75 = arith.constant 0 : index
    %64 = vector.load %arg3[%c8, %c0_74, %c0_75] : memref<9x128x128xbf16, #tpu.memory_space<vmem>>, vector<1x128x128xbf16>
    %65 = vector.shape_cast %64 : vector<1x128x128xbf16> to vector<128x128xbf16>
    %cst_76 = arith.constant dense<0.000000e+00> : vector<286x128xf32>
    %66 = tpu.matmul %63, %65, %cst_76 {dimension_numbers = #tpu.dot_dimension_numbers<[1], [0], [0], [1], [0, 0, 1, 1], [], []>} : vector<286x128xbf16>, vector<128x128xbf16>, vector<286x128xf32> -> vector<286x128xf32>
    %c0_77 = arith.constant 0 : index
    %c0_78 = arith.constant 0 : index
    %67 = vector.load %arg8[%c0_77, %c0_78] : memref<324x128xf32, #tpu.memory_space<vmem>>, vector<286x128xf32>
    %68 = arith.addf %67, %66 : vector<286x128xf32>
    %c0_79 = arith.constant 0 : index
    %c0_80 = arith.constant 0 : index
    %69 = vector.load %arg8[%c0_79, %c0_80] : memref<324x128xf32, #tpu.memory_space<vmem>>, vector<286x128xf32>
    tpu.vector_store %arg8[%c0_79, %c0_80], %68 {strides = array<i32>} : memref<324x128xf32, #tpu.memory_space<vmem>>, vector<286x128xf32>,
    %c0_81 = arith.constant 0 : index
    %c0_82 = arith.constant 0 : index
    %70 = vector.load %arg8[%c0_81, %c0_82] : memref<324x128xf32, #tpu.memory_space<vmem>>, vector<286x128xf32>
    %cst_83 = arith.constant 0.000000e+00 : f32
    %71 = vector.broadcast %cst_83 : f32 to vector<286x128xf32>
    %72 = arith.maximumf %70, %71 : vector<286x128xf32>
    %c0_84 = arith.constant 0 : index
    %c0_85 = arith.constant 0 : index
    %73 = vector.load %arg2[%c0_84, %c0_85] : memref<286x1xf32, #tpu.memory_space<vmem>>, vector<286x1xf32>
    %74 = vector.broadcast %73 : vector<286x1xf32> to vector<286x128xf32>
    %75 = arith.mulf %72, %74 : vector<286x128xf32>
    %76 = arith.truncf %75 : vector<286x128xf32> to vector<286x128xbf16>
    %cst_86 = arith.constant 0.000000e+00 : bf16
    %77 = vector.broadcast %cst_86 : bf16 to vector<48x128xbf16>
    %c0_87 = arith.constant 0 : index
    %c0_88 = arith.constant 0 : index
    %78 = vector.load %arg7[%c0_87, %c0_88] : memref<372x128xbf16, #tpu.memory_space<vmem>>, vector<48x128xbf16>
    tpu.vector_store %arg7[%c0_87, %c0_88], %77 {strides = array<i32>} : memref<372x128xbf16, #tpu.memory_space<vmem>>, vector<48x128xbf16>,
    %c48 = arith.constant 48 : index
    %c0_89 = arith.constant 0 : index
    %79 = vector.load %arg7[%c48, %c0_89] : memref<372x128xbf16, #tpu.memory_space<vmem>>, vector<286x128xbf16>
    tpu.vector_store %arg7[%c48, %c0_89], %76 {strides = array<i32>} : memref<372x128xbf16, #tpu.memory_space<vmem>>, vector<286x128xbf16>,
    %cst_90 = arith.constant 0.000000e+00 : bf16
    %80 = vector.broadcast %cst_90 : bf16 to vector<38x128xbf16>
    %c334 = arith.constant 334 : index
    %c0_91 = arith.constant 0 : index
    %81 = vector.load %arg7[%c334, %c0_91] : memref<372x128xbf16, #tpu.memory_space<vmem>>, vector<38x128xbf16>
    tpu.vector_store %arg7[%c334, %c0_91], %80 {strides = array<i32>} : memref<372x128xbf16, #tpu.memory_space<vmem>>, vector<38x128xbf16>,
    %c10 = arith.constant 10 : index
    %c0_92 = arith.constant 0 : index
    %82 = vector.load %arg7[%c10, %c0_92] : memref<372x128xbf16, #tpu.memory_space<vmem>>, vector<324x128xbf16>
    %c0_93 = arith.constant 0 : index
    %c0_94 = arith.constant 0 : index
    %c0_95 = arith.constant 0 : index
    %83 = vector.load %arg4[%c0_93, %c0_94, %c0_95] : memref<9x128x128xbf16, #tpu.memory_space<vmem>>, vector<1x128x128xbf16>
    %84 = vector.shape_cast %83 : vector<1x128x128xbf16> to vector<128x128xbf16>
    %cst_96 = arith.constant dense<0.000000e+00> : vector<324x128xf32>
    %85 = tpu.matmul %82, %84, %cst_96 {dimension_numbers = #tpu.dot_dimension_numbers<[1], [0], [0], [1], [0, 0, 1, 1], [], []>} : vector<324x128xbf16>, vector<128x128xbf16>, vector<324x128xf32> -> vector<324x128xf32>
    %c0_97 = arith.constant 0 : index
    %c0_98 = arith.constant 0 : index
    %86 = vector.load %arg8[%c0_97, %c0_98] : memref<324x128xf32, #tpu.memory_space<vmem>>, vector<324x128xf32>
    tpu.vector_store %arg8[%c0_97, %c0_98], %85 {strides = array<i32>} : memref<324x128xf32, #tpu.memory_space<vmem>>, vector<324x128xf32>,
    %c11 = arith.constant 11 : index
    %c0_99 = arith.constant 0 : index
    %87 = vector.load %arg7[%c11, %c0_99] : memref<372x128xbf16, #tpu.memory_space<vmem>>, vector<324x128xbf16>
    %c1_100 = arith.constant 1 : index
    %c0_101 = arith.constant 0 : index
    %c0_102 = arith.constant 0 : index
    %88 = vector.load %arg4[%c1_100, %c0_101, %c0_102] : memref<9x128x128xbf16, #tpu.memory_space<vmem>>, vector<1x128x128xbf16>
    %89 = vector.shape_cast %88 : vector<1x128x128xbf16> to vector<128x128xbf16>
    %cst_103 = arith.constant dense<0.000000e+00> : vector<324x128xf32>
    %90 = tpu.matmul %87, %89, %cst_103 {dimension_numbers = #tpu.dot_dimension_numbers<[1], [0], [0], [1], [0, 0, 1, 1], [], []>} : vector<324x128xbf16>, vector<128x128xbf16>, vector<324x128xf32> -> vector<324x128xf32>
    %c0_104 = arith.constant 0 : index
    %c0_105 = arith.constant 0 : index
    %91 = vector.load %arg8[%c0_104, %c0_105] : memref<324x128xf32, #tpu.memory_space<vmem>>, vector<324x128xf32>
    %92 = arith.addf %91, %90 : vector<324x128xf32>
    %c0_106 = arith.constant 0 : index
    %c0_107 = arith.constant 0 : index
    %93 = vector.load %arg8[%c0_106, %c0_107] : memref<324x128xf32, #tpu.memory_space<vmem>>, vector<324x128xf32>
    tpu.vector_store %arg8[%c0_106, %c0_107], %92 {strides = array<i32>} : memref<324x128xf32, #tpu.memory_space<vmem>>, vector<324x128xf32>,
    %c12 = arith.constant 12 : index
    %c0_108 = arith.constant 0 : index
    %94 = vector.load %arg7[%c12, %c0_108] : memref<372x128xbf16, #tpu.memory_space<vmem>>, vector<324x128xbf16>
    %c2_109 = arith.constant 2 : index
    %c0_110 = arith.constant 0 : index
    %c0_111 = arith.constant 0 : index
    %95 = vector.load %arg4[%c2_109, %c0_110, %c0_111] : memref<9x128x128xbf16, #tpu.memory_space<vmem>>, vector<1x128x128xbf16>
    %96 = vector.shape_cast %95 : vector<1x128x128xbf16> to vector<128x128xbf16>
    %cst_112 = arith.constant dense<0.000000e+00> : vector<324x128xf32>
    %97 = tpu.matmul %94, %96, %cst_112 {dimension_numbers = #tpu.dot_dimension_numbers<[1], [0], [0], [1], [0, 0, 1, 1], [], []>} : vector<324x128xbf16>, vector<128x128xbf16>, vector<324x128xf32> -> vector<324x128xf32>
    %c0_113 = arith.constant 0 : index
    %c0_114 = arith.constant 0 : index
    %98 = vector.load %arg8[%c0_113, %c0_114] : memref<324x128xf32, #tpu.memory_space<vmem>>, vector<324x128xf32>
    %99 = arith.addf %98, %97 : vector<324x128xf32>
    %c0_115 = arith.constant 0 : index
    %c0_116 = arith.constant 0 : index
    %100 = vector.load %arg8[%c0_115, %c0_116] : memref<324x128xf32, #tpu.memory_space<vmem>>, vector<324x128xf32>
    tpu.vector_store %arg8[%c0_115, %c0_116], %99 {strides = array<i32>} : memref<324x128xf32, #tpu.memory_space<vmem>>, vector<324x128xf32>,
    %c28 = arith.constant 28 : index
    %c0_117 = arith.constant 0 : index
    %101 = vector.load %arg7[%c28, %c0_117] : memref<372x128xbf16, #tpu.memory_space<vmem>>, vector<324x128xbf16>
    %c3_118 = arith.constant 3 : index
    %c0_119 = arith.constant 0 : index
    %c0_120 = arith.constant 0 : index
    %102 = vector.load %arg4[%c3_118, %c0_119, %c0_120] : memref<9x128x128xbf16, #tpu.memory_space<vmem>>, vector<1x128x128xbf16>
    %103 = vector.shape_cast %102 : vector<1x128x128xbf16> to vector<128x128xbf16>
    %cst_121 = arith.constant dense<0.000000e+00> : vector<324x128xf32>
    %104 = tpu.matmul %101, %103, %cst_121 {dimension_numbers = #tpu.dot_dimension_numbers<[1], [0], [0], [1], [0, 0, 1, 1], [], []>} : vector<324x128xbf16>, vector<128x128xbf16>, vector<324x128xf32> -> vector<324x128xf32>
    %c0_122 = arith.constant 0 : index
    %c0_123 = arith.constant 0 : index
    %105 = vector.load %arg8[%c0_122, %c0_123] : memref<324x128xf32, #tpu.memory_space<vmem>>, vector<324x128xf32>
    %106 = arith.addf %105, %104 : vector<324x128xf32>
    %c0_124 = arith.constant 0 : index
    %c0_125 = arith.constant 0 : index
    %107 = vector.load %arg8[%c0_124, %c0_125] : memref<324x128xf32, #tpu.memory_space<vmem>>, vector<324x128xf32>
    tpu.vector_store %arg8[%c0_124, %c0_125], %106 {strides = array<i32>} : memref<324x128xf32, #tpu.memory_space<vmem>>, vector<324x128xf32>,
    %c29 = arith.constant 29 : index
    %c0_126 = arith.constant 0 : index
    %108 = vector.load %arg7[%c29, %c0_126] : memref<372x128xbf16, #tpu.memory_space<vmem>>, vector<324x128xbf16>
    %c4_127 = arith.constant 4 : index
    %c0_128 = arith.constant 0 : index
    %c0_129 = arith.constant 0 : index
    %109 = vector.load %arg4[%c4_127, %c0_128, %c0_129] : memref<9x128x128xbf16, #tpu.memory_space<vmem>>, vector<1x128x128xbf16>
    %110 = vector.shape_cast %109 : vector<1x128x128xbf16> to vector<128x128xbf16>
    %cst_130 = arith.constant dense<0.000000e+00> : vector<324x128xf32>
    %111 = tpu.matmul %108, %110, %cst_130 {dimension_numbers = #tpu.dot_dimension_numbers<[1], [0], [0], [1], [0, 0, 1, 1], [], []>} : vector<324x128xbf16>, vector<128x128xbf16>, vector<324x128xf32> -> vector<324x128xf32>
    %c0_131 = arith.constant 0 : index
    %c0_132 = arith.constant 0 : index
    %112 = vector.load %arg8[%c0_131, %c0_132] : memref<324x128xf32, #tpu.memory_space<vmem>>, vector<324x128xf32>
    %113 = arith.addf %112, %111 : vector<324x128xf32>
    %c0_133 = arith.constant 0 : index
    %c0_134 = arith.constant 0 : index
    %114 = vector.load %arg8[%c0_133, %c0_134] : memref<324x128xf32, #tpu.memory_space<vmem>>, vector<324x128xf32>
    tpu.vector_store %arg8[%c0_133, %c0_134], %113 {strides = array<i32>} : memref<324x128xf32, #tpu.memory_space<vmem>>, vector<324x128xf32>,
    %c30 = arith.constant 30 : index
    %c0_135 = arith.constant 0 : index
    %115 = vector.load %arg7[%c30, %c0_135] : memref<372x128xbf16, #tpu.memory_space<vmem>>, vector<324x128xbf16>
    %c5_136 = arith.constant 5 : index
    %c0_137 = arith.constant 0 : index
    %c0_138 = arith.constant 0 : index
    %116 = vector.load %arg4[%c5_136, %c0_137, %c0_138] : memref<9x128x128xbf16, #tpu.memory_space<vmem>>, vector<1x128x128xbf16>
    %117 = vector.shape_cast %116 : vector<1x128x128xbf16> to vector<128x128xbf16>
    %cst_139 = arith.constant dense<0.000000e+00> : vector<324x128xf32>
    %118 = tpu.matmul %115, %117, %cst_139 {dimension_numbers = #tpu.dot_dimension_numbers<[1], [0], [0], [1], [0, 0, 1, 1], [], []>} : vector<324x128xbf16>, vector<128x128xbf16>, vector<324x128xf32> -> vector<324x128xf32>
    %c0_140 = arith.constant 0 : index
    %c0_141 = arith.constant 0 : index
    %119 = vector.load %arg8[%c0_140, %c0_141] : memref<324x128xf32, #tpu.memory_space<vmem>>, vector<324x128xf32>
    %120 = arith.addf %119, %118 : vector<324x128xf32>
    %c0_142 = arith.constant 0 : index
    %c0_143 = arith.constant 0 : index
    %121 = vector.load %arg8[%c0_142, %c0_143] : memref<324x128xf32, #tpu.memory_space<vmem>>, vector<324x128xf32>
    tpu.vector_store %arg8[%c0_142, %c0_143], %120 {strides = array<i32>} : memref<324x128xf32, #tpu.memory_space<vmem>>, vector<324x128xf32>,
    %c46 = arith.constant 46 : index
    %c0_144 = arith.constant 0 : index
    %122 = vector.load %arg7[%c46, %c0_144] : memref<372x128xbf16, #tpu.memory_space<vmem>>, vector<324x128xbf16>
    %c6_145 = arith.constant 6 : index
    %c0_146 = arith.constant 0 : index
    %c0_147 = arith.constant 0 : index
    %123 = vector.load %arg4[%c6_145, %c0_146, %c0_147] : memref<9x128x128xbf16, #tpu.memory_space<vmem>>, vector<1x128x128xbf16>
    %124 = vector.shape_cast %123 : vector<1x128x128xbf16> to vector<128x128xbf16>
    %cst_148 = arith.constant dense<0.000000e+00> : vector<324x128xf32>
    %125 = tpu.matmul %122, %124, %cst_148 {dimension_numbers = #tpu.dot_dimension_numbers<[1], [0], [0], [1], [0, 0, 1, 1], [], []>} : vector<324x128xbf16>, vector<128x128xbf16>, vector<324x128xf32> -> vector<324x128xf32>
    %c0_149 = arith.constant 0 : index
    %c0_150 = arith.constant 0 : index
    %126 = vector.load %arg8[%c0_149, %c0_150] : memref<324x128xf32, #tpu.memory_space<vmem>>, vector<324x128xf32>
    %127 = arith.addf %126, %125 : vector<324x128xf32>
    %c0_151 = arith.constant 0 : index
    %c0_152 = arith.constant 0 : index
    %128 = vector.load %arg8[%c0_151, %c0_152] : memref<324x128xf32, #tpu.memory_space<vmem>>, vector<324x128xf32>
    tpu.vector_store %arg8[%c0_151, %c0_152], %127 {strides = array<i32>} : memref<324x128xf32, #tpu.memory_space<vmem>>, vector<324x128xf32>,
    %c47 = arith.constant 47 : index
    %c0_153 = arith.constant 0 : index
    %129 = vector.load %arg7[%c47, %c0_153] : memref<372x128xbf16, #tpu.memory_space<vmem>>, vector<324x128xbf16>
    %c7_154 = arith.constant 7 : index
    %c0_155 = arith.constant 0 : index
    %c0_156 = arith.constant 0 : index
    %130 = vector.load %arg4[%c7_154, %c0_155, %c0_156] : memref<9x128x128xbf16, #tpu.memory_space<vmem>>, vector<1x128x128xbf16>
    %131 = vector.shape_cast %130 : vector<1x128x128xbf16> to vector<128x128xbf16>
    %cst_157 = arith.constant dense<0.000000e+00> : vector<324x128xf32>
    %132 = tpu.matmul %129, %131, %cst_157 {dimension_numbers = #tpu.dot_dimension_numbers<[1], [0], [0], [1], [0, 0, 1, 1], [], []>} : vector<324x128xbf16>, vector<128x128xbf16>, vector<324x128xf32> -> vector<324x128xf32>
    %c0_158 = arith.constant 0 : index
    %c0_159 = arith.constant 0 : index
    %133 = vector.load %arg8[%c0_158, %c0_159] : memref<324x128xf32, #tpu.memory_space<vmem>>, vector<324x128xf32>
    %134 = arith.addf %133, %132 : vector<324x128xf32>
    %c0_160 = arith.constant 0 : index
    %c0_161 = arith.constant 0 : index
    %135 = vector.load %arg8[%c0_160, %c0_161] : memref<324x128xf32, #tpu.memory_space<vmem>>, vector<324x128xf32>
    tpu.vector_store %arg8[%c0_160, %c0_161], %134 {strides = array<i32>} : memref<324x128xf32, #tpu.memory_space<vmem>>, vector<324x128xf32>,
    %c48_162 = arith.constant 48 : index
    %c0_163 = arith.constant 0 : index
    %136 = vector.load %arg7[%c48_162, %c0_163] : memref<372x128xbf16, #tpu.memory_space<vmem>>, vector<324x128xbf16>
    %c8_164 = arith.constant 8 : index
    %c0_165 = arith.constant 0 : index
    %c0_166 = arith.constant 0 : index
    %137 = vector.load %arg4[%c8_164, %c0_165, %c0_166] : memref<9x128x128xbf16, #tpu.memory_space<vmem>>, vector<1x128x128xbf16>
    %138 = vector.shape_cast %137 : vector<1x128x128xbf16> to vector<128x128xbf16>
    %cst_167 = arith.constant dense<0.000000e+00> : vector<324x128xf32>
    %139 = tpu.matmul %136, %138, %cst_167 {dimension_numbers = #tpu.dot_dimension_numbers<[1], [0], [0], [1], [0, 0, 1, 1], [], []>} : vector<324x128xbf16>, vector<128x128xbf16>, vector<324x128xf32> -> vector<324x128xf32>
    %c0_168 = arith.constant 0 : index
    %c0_169 = arith.constant 0 : index
    %140 = vector.load %arg8[%c0_168, %c0_169] : memref<324x128xf32, #tpu.memory_space<vmem>>, vector<324x128xf32>
    %141 = arith.addf %140, %139 : vector<324x128xf32>
    %c0_170 = arith.constant 0 : index
    %c0_171 = arith.constant 0 : index
    %142 = vector.load %arg8[%c0_170, %c0_171] : memref<324x128xf32, #tpu.memory_space<vmem>>, vector<324x128xf32>
    tpu.vector_store %arg8[%c0_170, %c0_171], %141 {strides = array<i32>} : memref<324x128xf32, #tpu.memory_space<vmem>>, vector<324x128xf32>,
    %c0_172 = arith.constant 0 : index
    %c0_173 = arith.constant 0 : index
    %143 = vector.load %arg8[%c0_172, %c0_173] : memref<324x128xf32, #tpu.memory_space<vmem>>, vector<324x128xf32>
    %c0_174 = arith.constant 0 : index
    %c0_175 = arith.constant 0 : index
    %c0_176 = arith.constant 0 : index
    %144 = vector.load %arg1[%c0_174, %c0_175, %c0_176] : memref<1x324x128xbf16, #tpu.memory_space<vmem>>, vector<1x324x128xbf16>
    %145 = vector.shape_cast %144 : vector<1x324x128xbf16> to vector<324x128xbf16>
    %c0_177 = arith.constant 0 : index
    %c0_178 = arith.constant 0 : index
    %146 = vector.load %arg5[%c0_177, %c0_178] : memref<128x128xbf16, #tpu.memory_space<vmem>>, vector<128x128xbf16>
    %cst_179 = arith.constant dense<0.000000e+00> : vector<324x128xf32>
    %147 = tpu.matmul %145, %146, %cst_179 {dimension_numbers = #tpu.dot_dimension_numbers<[1], [0], [0], [1], [0, 0, 1, 1], [], []>} : vector<324x128xbf16>, vector<128x128xbf16>, vector<324x128xf32> -> vector<324x128xf32>
    %148 = arith.addf %143, %147 : vector<324x128xf32>
    %c0_180 = arith.constant 0 : index
    %c0_181 = arith.constant 0 : index
    %149 = vector.load %arg8[%c0_180, %c0_181] : memref<324x128xf32, #tpu.memory_space<vmem>>, vector<324x128xf32>
    tpu.vector_store %arg8[%c0_180, %c0_181], %148 {strides = array<i32>} : memref<324x128xf32, #tpu.memory_space<vmem>>, vector<324x128xf32>,
    %c0_182 = arith.constant 0 : index
    %c0_183 = arith.constant 0 : index
    %150 = vector.load %arg8[%c0_182, %c0_183] : memref<324x128xf32, #tpu.memory_space<vmem>>, vector<324x128xf32>
    %cst_184 = arith.constant 0.000000e+00 : f32
    %151 = vector.broadcast %cst_184 : f32 to vector<324x128xf32>
    %152 = arith.maximumf %150, %151 : vector<324x128xf32>
    %153 = arith.truncf %152 : vector<324x128xf32> to vector<324x128xbf16>
    %c0_185 = arith.constant 0 : index
    %c0_186 = arith.constant 0 : index
    %c0_187 = arith.constant 0 : index
    %154 = vector.load %arg6[%c0_185, %c0_186, %c0_187] : memref<1x324x128xbf16, #tpu.memory_space<vmem>>, vector<1x324x128xbf16>
    %155 = vector.shape_cast %154 : vector<1x324x128xbf16> to vector<324x128xbf16>
    %156 = vector.shape_cast %153 : vector<324x128xbf16> to vector<1x324x128xbf16>
    tpu.vector_store %arg6[%c0_185, %c0_186, %c0_187], %156 {strides = array<i32>} : memref<1x324x128xbf16, #tpu.memory_space<vmem>>, vector<1x324x128xbf16>,
    return
  }
  func.func @transform_0(%arg0: i32) -> (i32, i32, i32) {
    %c0_i32 = arith.constant 0 : i32
    %c0_i32_0 = arith.constant 0 : i32
    %c0_i32_1 = arith.constant 0 : i32
    return %arg0, %c0_i32, %c0_i32_0 : i32, i32, i32
  }
  func.func @transform_1(%arg0: i32) -> (i32, i32) {
    %c0_i32 = arith.constant 0 : i32
    %c0_i32_0 = arith.constant 0 : i32
    %c0_i32_1 = arith.constant 0 : i32
    return %c0_i32, %c0_i32_0 : i32, i32
  }
  func.func @transform_2(%arg0: i32) -> (i32, i32, i32) {
    %c0_i32 = arith.constant 0 : i32
    %c0_i32_0 = arith.constant 0 : i32
    %c0_i32_1 = arith.constant 0 : i32
    %c0_i32_2 = arith.constant 0 : i32
    return %c0_i32, %c0_i32_0, %c0_i32_1 : i32, i32, i32
  }
  func.func @transform_3(%arg0: i32) -> (i32, i32, i32) {
    %c0_i32 = arith.constant 0 : i32
    %c0_i32_0 = arith.constant 0 : i32
    %c0_i32_1 = arith.constant 0 : i32
    %c0_i32_2 = arith.constant 0 : i32
    return %c0_i32, %c0_i32_0, %c0_i32_1 : i32, i32, i32
  }
  func.func @transform_4(%arg0: i32) -> (i32, i32) {
    %c0_i32 = arith.constant 0 : i32
    %c0_i32_0 = arith.constant 0 : i32
    %c0_i32_1 = arith.constant 0 : i32
    return %c0_i32, %c0_i32_0 : i32, i32
  }
  func.func @transform_5(%arg0: i32) -> (i32, i32, i32) {
    %c0_i32 = arith.constant 0 : i32
    %c0_i32_0 = arith.constant 0 : i32
    %c0_i32_1 = arith.constant 0 : i32
    return %arg0, %c0_i32, %c0_i32_0 : i32, i32, i32
  }
}

</mosaic_0001>

<bundles_post_ra>
// kernel: _lambda_.1
= control target key start
LH: loop header
LB: loop body
LE: loop exit
PB: predicated region body
PF: predicated region fallthrough
CT: control target
= control target key end

     0   :  { %s17157_s18 = smov 0   ;;  %s18965_s0 = inlined_call_operand.vmem [shape: bf16[2,324,128], index: 0, kind: input, shape index: {}]   ;;  %s18966_s1 = inlined_call_operand.vmem [shape: f32[286,1], index: 1, kind: input, shape index: {}]   ;;  %s18967_s2 = inlined_call_operand.vmem [shape: bf16[9,128,128], index: 2, kind: input, shape index: {}]   ;;  %s18968_s3 = inlined_call_operand.vmem [shape: bf16[9,128,128], index: 3, kind: input, shape index: {}]   ;;  %s18969_s4 = inlined_call_operand.vmem [shape: bf16[128,128], index: 4, kind: input, shape index: {}]   ;;  %s18970_s5 = inlined_call_operand.vmem [shape: bf16[2,324,128], index: 5, kind: output, shape index: {}]  }
   0x1 LB: > { %s12372_s19 = sadd.s32 4294967295, %s17122_s18   ;;  %p12376_p0 = scmp.ge.s32.totalorder %s17122_s18, 1  ;;  %s17122_s18 = sphi %s17157_s18, %s15_s18  }
   0x2   : > { %p187_p1 = scmp.lt.s32.totalorder %s17122_s18, 3 }
   0x4   : > { %p188_p2 = pnand %p12376_p0, %p187_p1 }
   0x5   : > { %v16579_v0 = vld [vmem:[%s18967_s2] sm:$0xff] (!%p188_p2)   ;;  %p215_p3 = scmp.lt.s32.totalorder (!%p188_p2), %s12372_s19, 1  ;;  %v16580_v1 = vld [vmem:[%s18967_s2 + $0x8] sm:$0xff] (!%p188_p2)   ;;  %v16581_v2 = vld [vmem:[%s18967_s2 + $0x10] sm:$0xff] (!%p188_p2)   ;;  %vm790_vm0 = vsmask.f32 (!%p188_p2), 7424 }
   0x6   : > { %191 = sbr.rel (%p188_p2) target bundleno = 2235 (0x8bb), region = 40  ;;  %14065 = vmatprep.subr.bf16.mxu0 (!%p188_p2), %v16579_v0  ;;  %v16582_v3 = vld [vmem:[%s18967_s2 + $0x18] sm:$0xff] (!%p188_p2)   ;;  %v16583_v5 = vld [vmem:[%s18967_s2 + $0x20] sm:$0xff] (!%p188_p2)   ;;  %v16584_v6 = vld [vmem:[%s18967_s2 + $0x28] sm:$0xff] (!%p188_p2)   ;;  %vm1428_vm1 = vcmask (!%p188_p2), 1046528   ;;  %vm3156_vm3 = vcmask (!%p188_p2), 1045504  }
   0x7   : > { %14066 = vmatpush3.bf16.msra.mxu0 (!%p188_p2), %v16579_v0  ;;  %v16585_v7 = vld [vmem:[%s18967_s2 + $0x30] sm:$0xff] (!%p188_p2)   ;;  %v16586_v8 = vld [vmem:[%s18967_s2 + $0x38] sm:$0xff] (!%p188_p2)   ;;  %v16589_v9 = vld [vmem:[%s18967_s2 + $0x40] sm:$0xff] (!%p188_p2)   ;;  %vm2491_vm2 = vsmask.f32 (!%p188_p2), 6400  ;;  %vm4896_vm5 = vcmask (!%p188_p2), 1044480  }
   0x8   : > { %14067 = vmatprep.subr.bf16.mxu0 (!%p188_p2), %v16580_v1  ;;  %v16592_v12 = vld [vmem:[%s18967_s2 + $0x48] sm:$0xff] (!%p188_p2)   ;;  %v16595_v13 = vld [vmem:[%s18967_s2 + $0x50] sm:$0xff] (!%p188_p2)   ;;  %v16598_v16 = vld [vmem:[%s18967_s2 + $0x58] sm:$0xff] (!%p188_p2)   ;;  %vm4227_vm4 = vsmask.f32 (!%p188_p2), 5376  ;;  %vm17126_vm6 = vmmov (!%p188_p2), 0  }
   0x9   : > { %v16601_v17 = vld [vmem:[%s18967_s2 + $0x60] sm:$0xff] (!%p188_p2)   ;;  %v16604_v20 = vld [vmem:[%s18967_s2 + $0x68] sm:$0xff] (!%p188_p2)   ;;  %v16607_v21 = vld [vmem:[%s18967_s2 + $0x70] sm:$0xff] (!%p188_p2)   ;;  %vm10343_vm7 = vsmask.f32 (!%p188_p2), 4352 }
   0xa   : > { %v16611_v24 = vld [vmem:[%s18967_s2 + $0x78] sm:$0xff] (!%p188_p2)   ;;  %v16616_v25 = vld [vmem:[%s18967_s2 + $0x80] sm:$0xff] (!%p188_p2)   ;;  %v16619_v62 = vld [vmem:[%s18967_s2 + $0x88] sm:$0xff] (!%p188_p2)  }
   0xb   : > { %14068 = vmatpush3.bf16.msra.mxu0 (!%p188_p2), %v16580_v1 }
   0xc   : > { %14069 = vmatprep.subr.bf16.mxu0 (!%p188_p2), %v16581_v2 }
   0xd   : > { %s18972_s19 = smov (!%p215_p3, %s12372_s19), 1 }
   0xe   : > { %s16565_s26 = smul.u32 164, %s18972_s19 }
   0xf   : > { %14070 = vmatpush3.bf16.msra.mxu0 %v16581_v2 }
  0x10   : > { %s17182_s29 = scalar_lea.vmem %s18965_s0, %s16565_s26  ;;  %14071 = vmatprep.subr.bf16.mxu0 %v16582_v3  ;;  %s18939_s14 = scalar_lea.vmem %s18970_s5, %s16565_s26 }
  0x11   : > { %v16587_v4 = vld [vmem:[%s17182_s29] sm:$0xff]   ;;  %v16588_v10 = vld [vmem:[%s17182_s29 + $0x8] sm:$0xff]   ;;  %v16590_v11 = vld [vmem:[%s17182_s29 + $0x10] sm:$0xff]  }
  0x12   : > { %14081 = vmatprep.mubr.bf16.mxu0 %v16587_v4  ;;  %v16591_v14 = vld [vmem:[%s17182_s29 + $0x18] sm:$0xff]   ;;  %v16593_v15 = vld [vmem:[%s17182_s29 + $0x20] sm:$0xff]   ;;  %v16594_v18 = vld [vmem:[%s17182_s29 + $0x28] sm:$0xff]  }
  0x13   : > { %14072 = vmatpush3.bf16.msra.mxu0 %v16582_v3  ;;  %v16596_v19 = vld [vmem:[%s17182_s29 + $0x30] sm:$0xff]   ;;  %v16597_v22 = vld [vmem:[%s17182_s29 + $0x38] sm:$0xff]   ;;  %v16599_v23 = vld [vmem:[%s17182_s29 + $0x40] sm:$0xff]  }
  0x14   : > { %14073 = vmatprep.subr.bf16.mxu0 %v16583_v5  ;;  %v16600_v26 = vld [vmem:[%s17182_s29 + $0x48] sm:$0xff]   ;;  %v16602_v27 = vld [vmem:[%s17182_s29 + $0x50] sm:$0xff]   ;;  %v16603_v28 = vld [vmem:[%s17182_s29 + $0x58] sm:$0xff]  }
  0x15   : > { %v16605_v29 = vld [vmem:[%s17182_s29 + $0x60] sm:$0xff]   ;;  %v16606_v31 = vld [vmem:[%s17182_s29 + $0x68] sm:$0xff]   ;;  %v16608_v32 = vld [vmem:[%s17182_s29 + $0x70] sm:$0xff]  }
  0x16   : > { %v16613_v30 = vld [vmem:[%s17182_s29] sm:$0xff]   ;;  %v16614_v33 = vld [vmem:[%s17182_s29 + $0x8] sm:$0xff]   ;;  %v16609_v35 = vld [vmem:[%s17182_s29 + $0x78] sm:$0xff]  }
  0x17   : > { %14074 = vmatpush3.bf16.msra.mxu0 %v16583_v5  ;;  %v794_v34 = vshll.u32 %v16613_v30, 16  ;;  %v792_v36 = vshrl.u32 %v16613_v30, 16  ;;  %v16610_v37 = vld [vmem:[%s17182_s29 + $0x80] sm:$0xff]   ;;  %v799_v39 = vshll.u32 %v16614_v33, 16  ;;  %v16615_v40 = vld [vmem:[%s17182_s29 + $0x10] sm:$0xff]   ;;  %v16617_v41 = vld [vmem:[%s17182_s29 + $0x18] sm:$0xff]  }
  0x18   : > { %14075 = vmatprep.subr.bf16.mxu0 %v16584_v6  ;;  %v16618_v42 = vld [vmem:[%s17182_s29 + $0x20] sm:$0xff]   ;;  %v803_v43 = vshrl.u32 %v16614_v33, 16  ;;  %v807_v44 = vshll.u32 %v16615_v40, 16  ;;  %v16612_v45 = vld [vmem:[%s17182_s29 + $0x88] sm:$0x7f]   ;;  %v811_v48 = vshrl.u32 %v16615_v40, 16 }
  0x19   : > { %v796_v38 = vrot.slane %v794_v34, 1  ;;  %v801_v47 = vrot.slane %v799_v39, 1  ;;  %v815_v49 = vshll.u32 %v16617_v41, 16  ;;  %v823_v50 = vshll.u32 %v16618_v42, 16  ;;  %v16620_v51 = vld [vmem:[%s17182_s29 + $0x28] sm:$0xff]   ;;  %v16621_v61 = vld [vmem:[%s17182_s29 + $0x30] sm:$0xff]  }
  0x1a   : > { %v809_v53 = vrot.slane %v807_v44, 1  ;;  %v819_v55 = vshrl.u32 %v16617_v41, 16  ;;  %v827_v58 = vshrl.u32 %v16618_v42, 16  ;;  %v831_v60 = vshll.u32 %v16620_v51, 16  ;;  %v16623_v63 = vld [vmem:[%s17182_s29 + $0x38] sm:$0xff]   ;;  %v16622_v3 = vld [vmem:[%s18967_s2 + $0x90] sm:$0xff]  }
  0x1b   : > { %14076 = vmatpush3.bf16.msra.mxu0 %v16584_v6  ;;  %v797_v46 = vor.u32 %v796_v38, %v792_v36  ;;  %v805_v54 = vor.u32 %v803_v43, %v801_v47  ;;  %v817_v57 = vrot.slane %v815_v49, 1  ;;  %v825_v59 = vrot.slane %v823_v50, 1  ;;  %v16630_v38 = vld [vmem:[%s17182_s29 + $0x60] sm:$0xff]   ;;  %v16638_v39 = vld [vmem:[%s18967_s2 + $0xb8] sm:$0xff]   ;;  %v16632_v41 = vld [vmem:[%s17182_s29 + $0x68] sm:$0xff]  }
  0x1c   : > { %14077 = vmatprep.subr.bf16.mxu0 %v16585_v7  ;;  %v813_v56 = vor.u32 %v811_v48, %v809_v53  ;;  %v835_v2 = vshrl.u32 %v16620_v51, 16  ;;  %v839_v5 = vshll.u32 %v16621_v61, 16  ;;  %v843_v6 = vshrl.u32 %v16621_v61, 16  ;;  %v17291_v49 = vld [vmem:[%s18967_s2 + $0xc0] sm:$0xff]  }
  0x1d   : > { %v802_v52 = vsel %vm790_vm0, %v797_v46, %v801_v47  ;;  %v810_v0 = vsel %vm790_vm0, %v805_v54, %v809_v53  ;;  %v821_v4 = vor.u32 %v819_v55, %v817_v57  ;;  %v887_v46 = vshll.u32 %v16630_v38, 16  ;;  %v16635_v54 = vld [vmem:[%s17182_s29 + $0x78] sm:$0xff]  }
  0x1e   : > { %v818_v1 = vsel %vm790_vm0, %v813_v56, %v817_v57  ;;  %v891_v50 = vshrl.u32 %v16630_v38, 16  ;;  %v895_v51 = vshll.u32 %v16632_v41, 16  ;;  %v16648_v38 = vld [vmem:[%s18967_s2 + $0xd0] sm:$0xff]  }
  0x1f   : > { %14078 = vmatpush3.bf16.msra.mxu0 %v16585_v7  ;;  %v829_v7 = vor.u32 %v827_v58, %v825_v59  ;;  %v889_v56 = vrot.slane %v887_v46, 1  ;;  %v899_v58 = vshrl.u32 %v16632_v41, 16  ;;  %v16654_v46 = vld [vmem:[%s18967_s2 + $0xe0] sm:$0xff]  }
  0x20   : > { %14079 = vmatprep.subr.bf16.mxu0 %v16586_v8 }
  0x23   : > { %14080 = vmatpush3.bf16.msra.mxu0 %v16586_v8  ;;  %v833_v8 = vrot.slane %v831_v60, 1  ;;  %v897_v60 = vrot.slane %v895_v51, 1  ;;  %v16657_v51 = vld [vmem:[%s18967_s2 + $0xe8] sm:$0xff]  }
  0x24   : > { %14117 = vmatprep.subr.bf16.mxu0 %v16589_v9 }
  0x26   : > { %14082 = vmatmul.mubr.bf16.vlgmr.msra.gmra.mrb[0].mxu0 %v16588_v10  ;;  %v16624_v10 = vld [vmem:[%s17182_s29 + $0x40] sm:$0xff]  }
  0x27   : > { %14118 = vmatpush3.bf16.msra.mxu0 %v16589_v9  ;;  %14085 = vmatprep.mubr.bf16.mxu0 %v16590_v11  ;;  %v847_v9 = vshll.u32 %v16623_v63, 16  ;;  %v16625_v11 = vld [vmem:[%s18967_s2 + $0x98] sm:$0xff]  }
  0x28   : > { %14119 = vmatprep.subr.bf16.mxu0 %v16592_v12 }
  0x2b   : > { %14120 = vmatpush3.bf16.msra.mxu0 %v16592_v12  ;;  %v826_v12 = vsel %vm790_vm0, %v821_v4, %v825_v59  ;;  %v893_v59 = vor.u32 %v891_v50, %v889_v56 }
  0x2c   : > { %14121 = vmatprep.subr.bf16.mxu0 %v16595_v13 }
  0x2e   : > { %14086 = vmatmul.mubr.bf16.gmra.mrb[4].mxu0 %v16591_v14  ;;  %v834_v14 = vsel %vm790_vm0, %v829_v7, %v833_v8 }
  0x2f   : > { %14089 = vmatprep.mubr.bf16.mxu0 %v16593_v15  ;;  %14122 = vmatpush3.bf16.msra.mxu0 %v16595_v13  ;;  %v16626_v13 = vld [vmem:[%s17182_s29 + $0x48] sm:$0xff]   ;;  %v841_v15 = vrot.slane %v839_v5, 1  ;;  %v901_v5 = vor.u32 %v899_v58, %v897_v60 }
  0x30   : > { %14123 = vmatprep.subr.bf16.mxu0 %v16598_v16  ;;  %v867_v30 = vshrl.u32 %v16626_v13, 16 }
  0x33   : > { %14124 = vmatpush3.bf16.msra.mxu0 %v16598_v16  ;;  %v851_v16 = vshrl.u32 %v16623_v63, 16  ;;  %v911_v63 = vshll.u32 %v16635_v54, 16 }
  0x34   : > { %14125 = vmatprep.subr.bf16.mxu0 %v16601_v17 }
  0x36   : > { %14090 = vmatmul.mubr.bf16.gmra.mrb[8].mxu0 %v16594_v18  ;;  %v849_v18 = vrot.slane %v847_v9, 1 }
  0x37   : > { %14093 = vmatprep.mubr.bf16.mxu0 %v16596_v19  ;;  %14126 = vmatpush3.bf16.msra.mxu0 %v16601_v17  ;;  %v837_v17 = vor.u32 %v835_v2, %v833_v8  ;;  %v855_v19 = vshll.u32 %v16624_v10, 16  ;;  %v16637_v2 = vld [vmem:[%s17182_s29 + $0x88] sm:$0xff]   ;;  %v913_v8 = vrot.slane %v911_v63, 1  ;;  %v16656_v63 = vld [vmem:[%s17182_s29 + $0x60] sm:$0xff]  }
  0x38   : > { %14127 = vmatprep.subr.bf16.mxu0 %v16604_v20 }
  0x3b   : > { %14128 = vmatpush3.bf16.msra.mxu0 %v16604_v20  ;;  %v845_v20 = vor.u32 %v843_v6, %v841_v15  ;;  %v915_v6 = vshrl.u32 %v16635_v54, 16  ;;  %v16660_v54 = vld [vmem:[%s18967_s2 + $0xf0] sm:$0xff]  }
  0x3c   : > { %14129 = vmatprep.subr.bf16.mxu0 %v16607_v21 }
  0x3e   : > { %14094 = vmatmul.mubr.bf16.gmra.mrb[12].mxu0 %v16597_v22  ;;  %v16628_v22 = vld [vmem:[%s18967_s2 + $0xa0] sm:$0xff]  }
  0x3f   : > { %14097 = vmatprep.mubr.bf16.mxu0 %v16599_v23  ;;  %14130 = vmatpush3.bf16.msra.mxu0 %v16607_v21  ;;  %v859_v21 = vshrl.u32 %v16624_v10, 16  ;;  %v863_v23 = vshll.u32 %v16626_v13, 16 }
  0x40   : > { %14131 = vmatprep.subr.bf16.mxu0 %v16611_v24 }
  0x43   : > { %14132 = vmatpush3.bf16.msra.mxu0 %v16611_v24  ;;  %v16627_v24 = vld [vmem:[%s17182_s29 + $0x50] sm:$0xff]  }
  0x44   : > { %14169 = vmatprep.subr.bf16.mxu0 %v16616_v25  ;;  %v871_v33 = vshll.u32 %v16627_v24, 16  ;;  %v875_v34 = vshrl.u32 %v16627_v24, 16 }
  0x46   : > { %14098 = vmatmul.mubr.bf16.gmra.mrb[16].mxu0 %v16600_v26  ;;  %v842_v26 = vsel %vm790_vm0, %v837_v17, %v841_v15  ;;  %v873_v43 = vrot.slane %v871_v33, 1  ;;  %v917_v15 = vor.u32 %v915_v6, %v913_v8  ;;  %v16645_v33 = vld [vmem:[%s18967_s2 + $0xc8] sm:$0xff]  }
  0x47   : > { %14101 = vmatprep.mubr.bf16.mxu0 %v16602_v27  ;;  %v16629_v27 = vld [vmem:[%s17182_s29 + $0x58] sm:$0xff]  }
  0x48   : > { %v877_v47 = vor.u32 %v875_v34, %v873_v43  ;;  %v16646_v34 = vld [vmem:[%s17182_s29 + $0x28] sm:$0xff]  }
  0x4e   : > { %14102 = vmatmul.mubr.bf16.gmra.mrb[20].mxu0 %v16603_v28  ;;  %v850_v28 = vsel %vm790_vm0, %v845_v20, %v849_v18 }
  0x4f   : > { %14105 = vmatprep.mubr.bf16.mxu0 %v16605_v29  ;;  %v857_v29 = vrot.slane %v855_v19, 1  ;;  %v16640_v19 = vld [vmem:[%s17182_s29 + $0x8] sm:$0xff]  }
  0x50   : > { %v1430_v24 = vrot.slane %v16640_v19, 1 }
  0x51   : > { %v861_v36 = vor.u32 %v859_v21, %v857_v29 }
  0x56   : > { %14106 = vmatmul.mubr.bf16.gmra.mrb[24].mxu0 %v16606_v31  ;;  %v853_v31 = vor.u32 %v851_v16, %v849_v18  ;;  %v16639_v18 = vld [vmem:[%s17182_s29] sm:$0xfe]  }
  0x57   : > { %14109 = vmatprep.mubr.bf16.mxu0 %v16608_v32  ;;  %v865_v32 = vrot.slane %v863_v23, 1  ;;  %v1429_v23 = vrot.slane %v16639_v18, 1 }
  0x58   : > { %v858_v40 = vsel %vm790_vm0, %v853_v31, %v857_v29 }
  0x59   : > { %v866_v42 = vsel %vm790_vm0, %v861_v36, %v865_v32  ;;  %v869_v44 = vor.u32 %v867_v30, %v865_v32  ;;  %v1431_v29 = vsel %vm1428_vm1, %v1429_v23, %v1430_v24  ;;  %v16667_v23 = vld [vmem:[%s17182_s29 + $0x18] sm:$0xff]  }
  0x5b   : > { %v874_v53 = vsel %vm790_vm0, %v869_v44, %v873_v43  ;;  %v16651_v43 = vld [vmem:[%s18967_s2 + $0xd8] sm:$0xff]  }
  0x5e   : > { %14110 = vmatmul.mubr.bf16.gmra.mrb[28].mxu0 %v16609_v35  ;;  %v16634_v35 = vld [vmem:[%s18967_s2 + $0xb0] sm:$0xff]  }
  0x5f   : > { %14113 = vmatprep.mubr.bf16.mxu0 %v16610_v37  ;;  %v879_v37 = vshll.u32 %v16629_v27, 16 }
  0x61   : > { %v881_v48 = vrot.slane %v879_v37, 1  ;;  %v1438_v37 = vrot.slane %v16646_v34, 1 }
  0x63   : > { %v882_v55 = vsel %vm790_vm0, %v877_v47, %v881_v48  ;;  %v16650_v47 = vld [vmem:[%s17182_s29 + $0x40] sm:$0xff]  }
  0x66   : > { %14114 = vmatmul.mubr.bf16.gmra.mrb[32].mxu0 %v16612_v45  ;;  %v883_v45 = vshrl.u32 %v16629_v27, 16  ;;  %v16643_v27 = vld [vmem:[%s17182_s29 + $0x18] sm:$0xff]  }
  0x67   : > { %14133 = vmatprep.mubr.bf16.mxu0 %v802_v52  ;;  %v16633_v52 = vld [vmem:[%s17182_s29 + $0x70] sm:$0xff]   ;;  %v1434_v31 = vrot.slane %v16643_v27, 1 }
  0x68   : > { %v885_v57 = vor.u32 %v883_v45, %v881_v48  ;;  %v903_v61 = vshll.u32 %v16633_v52, 16  ;;  %v16652_v48 = vld [vmem:[%s17182_s29 + $0x48] sm:$0xff]  }
  0x6a   : > { %v905_v4 = vrot.slane %v903_v61, 1 }
  0x6e   : > { %14134 = vmatmul.mubr.bf16.vlgmr.msra.gmra.mrb[0].mxu0 %v810_v0  ;;  %v16636_v0 = vld [vmem:[%s17182_s29 + $0x80] sm:$0xff]  }
  0x6f   : > { %14170 = vmatpush3.bf16.msra.mxu0 %v16616_v25  ;;  %14137 = vmatprep.mubr.bf16.mxu0 %v818_v1  ;;  %v16631_v25 = vld [vmem:[%s18967_s2 + $0xa8] sm:$0xff]   ;;  %v890_v1 = vsel %vm790_vm0, %v885_v57, %v889_v56  ;;  %v919_v9 = vshll.u32 %v16636_v0, 16  ;;  %v923_v10 = vshrl.u32 %v16636_v0, 16  ;;  %v16655_v56 = vld [vmem:[%s17182_s29 + $0x58] sm:$0xff]  }
  0x70   : > { %14171 = vmatprep.subr.bf16.mxu0 %v16619_v62  ;;  %v1450_v61 = vrot.slane %v16655_v56, 1 }
  0x73   : > { %14172 = vmatpush3.bf16.msra.mxu0 %v16619_v62  ;;  %v907_v62 = vshrl.u32 %v16633_v52, 16  ;;  %v1444_v52 = vrot.slane %v16650_v47, 1 }
  0x74   : > { %14173 = vmatprep.subr.bf16.mxu0 %v16622_v3 }
  0x75   : > { %v909_v7 = vor.u32 %v907_v62, %v905_v4  ;;  %v16668_v62 = vld [vmem:[%s18967_s2 + $0x100] sm:$0xff]  }
  0x76   : > { %14138 = vmatmul.mubr.bf16.gmra.mrb[4].mxu0 %v826_v12  ;;  %v906_v12 = vsel %vm790_vm0, %v901_v5, %v905_v4  ;;  %v16659_v5 = vld [vmem:[%s17182_s29 + $0x70] sm:$0xff]  }
  0x77   : > { %14141 = vmatprep.mubr.bf16.mxu0 %v834_v14  ;;  %14174 = vmatpush3.bf16.msra.mxu0 %v16622_v3  ;;  %v898_v3 = vsel %vm790_vm0, %v893_v59, %v897_v60  ;;  %v914_v13 = vsel %vm790_vm0, %v909_v7, %v913_v8  ;;  %v921_v14 = vrot.slane %v919_v9, 1  ;;  %v16664_v59 = vld [vmem:[%s18967_s2 + $0xf8] sm:$0xff]   ;;  %v1456_v9 = vrot.slane %v16659_v5, 1 }
  0x78   : > { %14175 = vmatprep.subr.bf16.mxu0 %v16625_v11  ;;  %v16661_v8 = vld [vmem:[%s17182_s29 + $0x78] sm:$0xff]  }
  0x79   : > { %v925_v16 = vor.u32 %v923_v10, %v921_v14  ;;  %v922_v20 = vsel %vm790_vm0, %v917_v15, %v921_v14  ;;  %v1458_v10 = vrot.slane %v16661_v8, 1  ;;  %v16663_v14 = vld [vmem:[%s17182_s29 + $0x88] sm:$0xff]  }
  0x7b   : > { %14176 = vmatpush3.bf16.msra.mxu0 %v16625_v11  ;;  %v927_v11 = vshll.u32 %v16637_v2, 16 }
  0x7c   : > { %14177 = vmatprep.subr.bf16.mxu0 %v16628_v22 }
  0x7d   : > { %v929_v17 = vrot.slane %v927_v11, 1  ;;  %v16662_v11 = vld [vmem:[%s17182_s29 + $0x80] sm:$0xff]  }
  0x7e   : > { %14142 = vmatmul.mubr.bf16.gmra.mrb[8].mxu0 %v842_v26  ;;  %v1460_v15 = vrot.slane %v16662_v11, 1 }
  0x7f   : > { %14145 = vmatprep.mubr.bf16.mxu0 %v850_v28  ;;  %14178 = vmatpush3.bf16.msra.mxu0 %v16628_v22  ;;  %v930_v21 = vsel %vm790_vm0, %v925_v16, %v929_v17  ;;  %v931_v22 = vshrl.u32 %v16637_v2, 16  ;;  %v16644_v28 = vld [vmem:[%s17182_s29 + $0x20] sm:$0xff]   ;;  %v16658_v2 = vld [vmem:[%s17182_s29 + $0x68] sm:$0xff]   ;;  %v1462_v16 = vrot.slane %v16663_v14, 1 }
  0x80   : > { %14179 = vmatprep.subr.bf16.mxu0 %v16631_v25  ;;  %v1436_v32 = vrot.slane %v16644_v28, 1  ;;  %v1454_v4 = vrot.slane %v16658_v2, 1  ;;  %v1461_v18 = vsel %vm1428_vm1, %v1458_v10, %v1460_v15  ;;  %v16670_v28 = vld [vmem:[%s17182_s29 + $0x28] sm:$0xff]   ;;  %v16685_v2 = vld [vmem:[%s17182_s29 + $0x78] sm:$0xff]  }
  0x81   : > { %v933_v26 = vor.u32 %v931_v22, %v929_v17  ;;  %v16665_v17 = vld [vmem:[%s17182_s29 + $0x8] sm:$0xfe]   ;;  %v1463_v19 = vsel %vm1428_vm1, %v1460_v15, %v1462_v16  ;;  %v1985_v8 = vrot.slane %v16685_v2, 1 }
  0x82   : > { %v1439_v41 = vsel %vm1428_vm1, %v1436_v32, %v1438_v37 }
  0x83   : > { %14180 = vmatpush3.bf16.msra.mxu0 %v16631_v25  ;;  %v16641_v25 = vld [vmem:[%s17182_s29 + $0x10] sm:$0xff]  }
  0x84   : > { %14181 = vmatprep.subr.bf16.mxu0 %v16634_v35  ;;  %v1432_v30 = vrot.slane %v16641_v25, 1  ;;  %v16669_v25 = vld [vmem:[%s17182_s29 + $0x20] sm:$0xff]  }
  0x85   : > { %v1963_v27 = vrot.slane %v16669_v25, 1  ;;  %v16695_v25 = vld [vmem:[%s17182_s29 + $0x20] sm:$0xff]  }
  0x86   : > { %14146 = vmatmul.mubr.bf16.gmra.mrb[12].mxu0 %v858_v40  ;;  %v1435_v36 = vsel %vm1428_vm1, %v1432_v30, %v1434_v31  ;;  %v1437_v40 = vsel %vm1428_vm1, %v1434_v31, %v1436_v32  ;;  %v16672_v32 = vld [vmem:[%s17182_s29 + $0x30] sm:$0xff]  }
  0x87   : > { %14149 = vmatprep.mubr.bf16.mxu0 %v866_v42  ;;  %14182 = vmatpush3.bf16.msra.mxu0 %v16634_v35  ;;  %v1433_v35 = vsel %vm1428_vm1, %v1430_v24, %v1432_v30  ;;  %v16649_v42 = vld [vmem:[%s17182_s29 + $0x38] sm:$0xff]   ;;  %v1967_v34 = vrot.slane %v16672_v32, 1  ;;  %v2519_v32 = vshrl.u32 %v16695_v25, 16 }
  0x88   : > { %14183 = vmatprep.subr.bf16.mxu0 %v16638_v39  ;;  %v1442_v45 = vrot.slane %v16649_v42, 1 }
  0x8a   : > { %v1445_v57 = vsel %vm1428_vm1, %v1442_v45, %v1444_v52 }
  0x8b   : > { %14184 = vmatpush3.bf16.msra.mxu0 %v16638_v39  ;;  %v16647_v39 = vld [vmem:[%s17182_s29 + $0x30] sm:$0xff]  }
  0x8c   : > { %14221 = vmatprep.subr.bf16.mxu0 %v17291_v49  ;;  %v1440_v44 = vrot.slane %v16647_v39, 1  ;;  %v16677_v39 = vld [vmem:[%s18967_s2 + $0x118] sm:$0xff]  }
  0x8e   : > { %14150 = vmatmul.mubr.bf16.gmra.mrb[16].mxu0 %v874_v53  ;;  %v1443_v50 = vsel %vm1428_vm1, %v1440_v44, %v1442_v45  ;;  %v1446_v53 = vrot.slane %v16652_v48, 1  ;;  %v16678_v45 = vld [vmem:[%s17182_s29 + $0x50] sm:$0xff]  }
  0x8f   : > { %14153 = vmatprep.mubr.bf16.mxu0 %v882_v55  ;;  %v16653_v55 = vld [vmem:[%s17182_s29 + $0x50] sm:$0xff]  }
  0x90   : > { %v1447_v58 = vsel %vm1428_vm1, %v1444_v52, %v1446_v53  ;;  %v1448_v60 = vrot.slane %v16653_v55, 1  ;;  %v16679_v52 = vld [vmem:[%s17182_s29 + $0x58] sm:$0xff]  }
  0x92   : > { %v1449_v0 = vsel %vm1428_vm1, %v1446_v53, %v1448_v60  ;;  %v16681_v53 = vld [vmem:[%s17182_s29 + $0x60] sm:$0xff]  }
  0x96   : > { %14154 = vmatmul.mubr.bf16.gmra.mrb[20].mxu0 %v890_v1  ;;  %v1451_v1 = vsel %vm1428_vm1, %v1448_v60, %v1450_v61  ;;  %v16682_v60 = vld [vmem:[%s17182_s29 + $0x68] sm:$0xff]  }
  0x97   : > { %14157 = vmatprep.mubr.bf16.mxu0 %v898_v3  ;;  %v1452_v3 = vrot.slane %v16656_v63, 1 }
  0x99   : > { %v1453_v6 = vsel %vm1428_vm1, %v1450_v61, %v1452_v3  ;;  %v1455_v7 = vsel %vm1428_vm1, %v1452_v3, %v1454_v4  ;;  %v16684_v61 = vld [vmem:[%s17182_s29 + $0x70] sm:$0xff]   ;;  %v16687_v3 = vld [vmem:[%s17182_s29 + $0x80] sm:$0xff]  }
  0x9e   : > { %14158 = vmatmul.mubr.bf16.gmra.mrb[24].mxu0 %v906_v12  ;;  %v1457_v12 = vsel %vm1428_vm1, %v1454_v4, %v1456_v9  ;;  %v16691_v4 = vld [vmem:[%s17182_s29 + $0x8] sm:$0xfe]  }
  0x9f   : > { %14161 = vmatprep.mubr.bf16.mxu0 %v914_v13  ;;  %v1459_v13 = vsel %vm1428_vm1, %v1456_v9, %v1458_v10  ;;  %v1987_v9 = vrot.slane %v16687_v3, 1  ;;  %v2493_v10 = vshrl.u32 %v16691_v4, 16  ;;  %v2496_v11 = vshll.u32 %v16691_v4, 16 }
  0xa6   : > { %14162 = vmatmul.mubr.bf16.gmra.mrb[28].mxu0 %v922_v20  ;;  %v16666_v20 = vld [vmem:[%s17182_s29 + $0x10] sm:$0xff]  }
  0xa7   : > { %14165 = vmatprep.mubr.bf16.mxu0 %v930_v21  ;;  %v1958_v21 = vrot.slane %v16665_v17, 1  ;;  %v1959_v22 = vrot.slane %v16666_v20, 1  ;;  %v1988_v17 = vsel %vm1428_vm1, %v1985_v8, %v1987_v9  ;;  %v2495_v20 = vrot.slane %v2493_v10, 1  ;;  %v16703_v10 = vld [vmem:[%s18967_s2 + $0x158] sm:$0xff]  }
  0xa9   : > { %v1960_v24 = vsel %vm1428_vm1, %v1958_v21, %v1959_v22  ;;  %v2498_v21 = vrot.slane %v2496_v11, 2  ;;  %v16704_v11 = vld [vmem:[%s17182_s29 + $0x50] sm:$0xff]  }
  0xae   : > { %14166 = vmatmul.mubr.bf16.gmra.mrb[36].mxu0 %v933_v26  ;;  %v1961_v26 = vrot.slane %v16667_v23, 1 }
  0xaf   : > { %14185 = vmatprep.mubr.bf16.mxu0 %v1431_v29  ;;  %v16671_v29 = vld [vmem:[%s18967_s2 + $0x108] sm:$0xff]  }
  0xb0   : > { %v1962_v30 = vsel %vm1428_vm1, %v1959_v22, %v1961_v26  ;;  %v1964_v31 = vsel %vm1428_vm1, %v1961_v26, %v1963_v27 }
  0xb6   : > { %14186 = vmatmul.mubr.bf16.vlgmr.msra.gmra.mrb[0].mxu0 %v1433_v35  ;;  %v16674_v35 = vld [vmem:[%s18967_s2 + $0x110] sm:$0xff]  }
  0xb7   : > { %14222 = vmatpush3.bf16.msra.mxu0 %v17291_v49  ;;  %14189 = vmatprep.mubr.bf16.mxu0 %v1435_v36  ;;  %v1441_v49 = vsel %vm1428_vm1, %v1438_v37, %v1440_v44  ;;  %v16673_v36 = vld [vmem:[%s17182_s29 + $0x38] sm:$0xff]   ;;  %v16675_v37 = vld [vmem:[%s17182_s29 + $0x40] sm:$0xff]   ;;  %v16676_v44 = vld [vmem:[%s17182_s29 + $0x48] sm:$0xff]  }
  0xb8   : > { %14223 = vmatprep.subr.bf16.mxu0 %v16645_v33  ;;  %v1971_v42 = vrot.slane %v16675_v37, 1 }
  0xbb   : > { %14224 = vmatpush3.bf16.msra.mxu0 %v16645_v33  ;;  %v1965_v33 = vrot.slane %v16670_v28, 1 }
  0xbc   : > { %14225 = vmatprep.subr.bf16.mxu0 %v16648_v38 }
  0xbe   : > { %14190 = vmatmul.mubr.bf16.gmra.mrb[4].mxu0 %v1437_v40  ;;  %v1968_v40 = vsel %vm1428_vm1, %v1965_v33, %v1967_v34 }
  0xbf   : > { %14193 = vmatprep.mubr.bf16.mxu0 %v1439_v41  ;;  %14226 = vmatpush3.bf16.msra.mxu0 %v16648_v38  ;;  %v1966_v38 = vsel %vm1428_vm1, %v1963_v27, %v1965_v33  ;;  %v1969_v41 = vrot.slane %v16673_v36, 1  ;;  %v2522_v33 = vshll.u32 %v16695_v25, 16 }
  0xc0   : > { %14227 = vmatprep.subr.bf16.mxu0 %v16651_v43 }
  0xc1   : > { %v1970_v47 = vsel %vm1428_vm1, %v1967_v34, %v1969_v41  ;;  %v1972_v48 = vsel %vm1428_vm1, %v1969_v41, %v1971_v42 }
  0xc3   : > { %14228 = vmatpush3.bf16.msra.mxu0 %v16651_v43  ;;  %v16680_v43 = vld [vmem:[%s18967_s2 + $0x120] sm:$0xff]  }
  0xc4   : > { %14229 = vmatprep.subr.bf16.mxu0 %v16654_v46 }
  0xc6   : > { %14194 = vmatmul.mubr.bf16.gmra.mrb[8].mxu0 %v1441_v49  ;;  %v1973_v49 = vrot.slane %v16676_v44, 1  ;;  %v16698_v44 = vld [vmem:[%s17182_s29 + $0x30] sm:$0xff]  }
  0xc7   : > { %14197 = vmatprep.mubr.bf16.mxu0 %v1443_v50  ;;  %14230 = vmatpush3.bf16.msra.mxu0 %v16654_v46  ;;  %v16683_v46 = vld [vmem:[%s18967_s2 + $0x128] sm:$0xff]   ;;  %v1975_v50 = vrot.slane %v16678_v45, 1 }
  0xc8   : > { %14231 = vmatprep.subr.bf16.mxu0 %v16657_v51  ;;  %v1974_v55 = vsel %vm1428_vm1, %v1971_v42, %v1973_v49  ;;  %v2521_v42 = vrot.slane %v2519_v32, 1 }
  0xc9   : > { %v1976_v56 = vsel %vm1428_vm1, %v1973_v49, %v1975_v50  ;;  %v2537_v49 = vshrl.u32 %v16698_v44, 16 }
  0xcb   : > { %14232 = vmatpush3.bf16.msra.mxu0 %v16657_v51  ;;  %v16686_v51 = vld [vmem:[%s18967_s2 + $0x130] sm:$0xff]  }
  0xcc   : > { %14233 = vmatprep.subr.bf16.mxu0 %v16660_v54 }
  0xce   : > { %14198 = vmatmul.mubr.bf16.gmra.mrb[12].mxu0 %v1445_v57  ;;  %v1977_v57 = vrot.slane %v16679_v52, 1 }
  0xcf   : > { %14201 = vmatprep.mubr.bf16.mxu0 %v1447_v58  ;;  %14234 = vmatpush3.bf16.msra.mxu0 %v16660_v54  ;;  %v16690_v54 = vld [vmem:[%s18967_s2 + $0x138] sm:$0xff]   ;;  %v1979_v58 = vrot.slane %v16681_v53, 1 }
  0xd0   : > { %14235 = vmatprep.subr.bf16.mxu0 %v16664_v59 }
  0xd1   : > { %v1980_v63 = vsel %vm1428_vm1, %v1977_v57, %v1979_v58 }
  0xd3   : > { %14236 = vmatpush3.bf16.msra.mxu0 %v16664_v59  ;;  %v17411_v59 = vld [vmem:[%s18967_s2 + $0x140] sm:$0xff]  }
  0xd4   : > { %14273 = vmatprep.subr.bf16.mxu0 %v16668_v62 }
  0xd6   : > { %14202 = vmatmul.mubr.bf16.gmra.mrb[16].mxu0 %v1449_v0  ;;  %v1981_v0 = vrot.slane %v16682_v60, 1  ;;  %v16701_v60 = vld [vmem:[%s17182_s29 + $0x40] sm:$0xff]  }
  0xd7   : > { %14205 = vmatprep.mubr.bf16.mxu0 %v1451_v1  ;;  %v1983_v1 = vrot.slane %v16684_v61, 1  ;;  %v2555_v2 = vshrl.u32 %v16701_v60, 16  ;;  %v2558_v3 = vshll.u32 %v16701_v60, 16 }
  0xd8   : > { %v1982_v5 = vsel %vm1428_vm1, %v1979_v58, %v1981_v0 }
  0xde   : > { %14206 = vmatmul.mubr.bf16.gmra.mrb[20].mxu0 %v1453_v6  ;;  %v16692_v6 = vld [vmem:[%s17182_s29 + $0x10] sm:$0xff]  }
  0xdf   : > { %14209 = vmatprep.mubr.bf16.mxu0 %v1455_v7  ;;  %v1984_v7 = vsel %vm1428_vm1, %v1981_v0, %v1983_v1  ;;  %v2501_v14 = vshrl.u32 %v16692_v6, 16  ;;  %v2504_v15 = vshll.u32 %v16692_v6, 16 }
  0xe1   : > { %v2503_v22 = vrot.slane %v2501_v14, 1  ;;  %v2506_v23 = vrot.slane %v2504_v15, 2 }
  0xe6   : > { %14210 = vmatmul.mubr.bf16.gmra.mrb[24].mxu0 %v1457_v12  ;;  %v16688_v12 = vld [vmem:[%s17182_s29 + $0x88] sm:$0xff]  }
  0xe7   : > { %14213 = vmatprep.mubr.bf16.mxu0 %v1459_v13  ;;  %v16689_v13 = vld [vmem:[%s17182_s29 + $0x90] sm:$0xff]  }
  0xee   : > { %14214 = vmatmul.mubr.bf16.gmra.mrb[28].mxu0 %v1461_v18  ;;  %v1989_v18 = vrot.slane %v16688_v12, 1 }
  0xef   : > { %14217 = vmatprep.mubr.bf16.mxu0 %v1463_v19  ;;  %v1991_v19 = vrot.slane %v16689_v13, 1 }
  0xf0   : > { %v1990_v26 = vsel %vm1428_vm1, %v1987_v9, %v1989_v18  ;;  %v2560_v9 = vrot.slane %v2558_v3, 2 }
  0xf1   : > { %v1992_v27 = vsel %vm1428_vm1, %v1989_v18, %v1991_v19  ;;  %v16706_v18 = vld [vmem:[%s18967_s2 + $0x160] sm:$0xff]  }
  0xf6   : > { %14218 = vmatmul.mubr.bf16.gmra.mrb[40].mxu0 %v1462_v16  ;;  %v1986_v16 = vsel %vm1428_vm1, %v1983_v1, %v1985_v8  ;;  %v16700_v1 = vld [vmem:[%s18967_s2 + $0x150] sm:$0xff]   ;;  %v2557_v8 = vrot.slane %v2555_v2, 1 }
  0xf7   : > { %14237 = vmatprep.mubr.bf16.mxu0 %v1960_v24  ;;  %v16693_v24 = vld [vmem:[%s17182_s29 + $0x18] sm:$0xff]  }
  0xf8   : > { %v2510_v28 = vshrl.u32 %v16693_v24, 16  ;;  %v2561_v15 = vor.u32 %v2560_v9, %v2557_v8 }
  0xfa   : > { %v2512_v37 = vrot.slane %v2510_v28, 1 }
  0xfe   : > { %14238 = vmatmul.mubr.bf16.vlgmr.msra.gmra.mrb[0].mxu0 %v1962_v30  ;;  %v2499_v30 = vor.u32 %v2498_v21, %v2495_v20 }
  0xff   : > { %14274 = vmatpush3.bf16.msra.mxu0 %v16668_v62  ;;  %14241 = vmatprep.mubr.bf16.mxu0 %v1964_v31  ;;  %v1978_v62 = vsel %vm1428_vm1, %v1975_v50, %v1977_v57  ;;  %v2507_v31 = vor.u32 %v2506_v23, %v2503_v22  ;;  %v2540_v50 = vshll.u32 %v16698_v44, 16  ;;  %v2539_v57 = vrot.slane %v2537_v49, 1  ;;  %v16705_v22 = vld [vmem:[%s17182_s29 + $0x58] sm:$0xff]  }
 0x100   : > { %14275 = vmatprep.subr.bf16.mxu0 %v16671_v29 }
 0x101   : > { %v2508_v41 = vsel %vm2491_vm2, %v2499_v30, %v2507_v31  ;;  %v2542_v58 = vrot.slane %v2540_v50, 2  ;;  %v2585_v30 = vshll.u32 %v16705_v22, 16 }
 0x103   : > { %14276 = vmatpush3.bf16.msra.mxu0 %v16671_v29  ;;  %v2513_v29 = vshll.u32 %v16693_v24, 16  ;;  %v2543_v0 = vor.u32 %v2542_v58, %v2539_v57  ;;  %v16711_v57 = vld [vmem:[%s17182_s29 + $0x78] sm:$0xff]  }
 0x104   : > { %14277 = vmatprep.subr.bf16.mxu0 %v16674_v35 }
 0x106   : > { %14242 = vmatmul.mubr.bf16.gmra.mrb[4].mxu0 %v1966_v38  ;;  %v2515_v38 = vrot.slane %v2513_v29, 2  ;;  %v2582_v29 = vshrl.u32 %v16705_v22, 16 }
 0x107   : > { %14245 = vmatprep.mubr.bf16.mxu0 %v1968_v40  ;;  %14278 = vmatpush3.bf16.msra.mxu0 %v16674_v35 }
 0x108   : > { %14279 = vmatprep.subr.bf16.mxu0 %v16677_v39  ;;  %v2516_v45 = vor.u32 %v2515_v38, %v2512_v37  ;;  %v2584_v38 = vrot.slane %v2582_v29, 1 }
 0x10b   : > { %14280 = vmatpush3.bf16.msra.mxu0 %v16677_v39  ;;  %v16696_v39 = vld [vmem:[%s17182_s29 + $0x28] sm:$0xff]  }
 0x10c   : > { %14281 = vmatprep.subr.bf16.mxu0 %v16680_v43 }
 0x10e   : > { %14246 = vmatmul.mubr.bf16.gmra.mrb[8].mxu0 %v1970_v47  ;;  %v2531_v47 = vshll.u32 %v16696_v39, 16 }
 0x10f   : > { %14249 = vmatprep.mubr.bf16.mxu0 %v1972_v48  ;;  %14282 = vmatpush3.bf16.msra.mxu0 %v16680_v43  ;;  %v2524_v43 = vrot.slane %v2522_v33, 2 }
 0x110   : > { %14283 = vmatprep.subr.bf16.mxu0 %v16683_v46  ;;  %v2533_v53 = vrot.slane %v2531_v47, 2 }
 0x111   : > { %v2525_v48 = vor.u32 %v2524_v43, %v2521_v42 }
 0x113   : > { %14284 = vmatpush3.bf16.msra.mxu0 %v16683_v46  ;;  %v2528_v46 = vshrl.u32 %v16696_v39, 16  ;;  %v2587_v39 = vrot.slane %v2585_v30, 2  ;;  %v16718_v30 = vld [vmem:[%s17182_s29 + $0x8] sm:$0xfc]  }
 0x114   : > { %14285 = vmatprep.subr.bf16.mxu0 %v16686_v51 }
 0x115   : > { %v2530_v52 = vrot.slane %v2528_v46, 1  ;;  %v16716_v46 = vld [vmem:[%s18967_s2 + $0x178] sm:$0xff]   ;;  %v2588_v47 = vor.u32 %v2587_v39, %v2584_v38 }
 0x116   : > { %14250 = vmatmul.mubr.bf16.gmra.mrb[12].mxu0 %v1974_v55  ;;  %v2526_v55 = vsel %vm2491_vm2, %v2516_v45, %v2525_v48 }
 0x117   : > { %14253 = vmatprep.mubr.bf16.mxu0 %v1976_v56  ;;  %14286 = vmatpush3.bf16.msra.mxu0 %v16686_v51  ;;  %v2517_v51 = vsel %vm2491_vm2, %v2507_v31, %v2516_v45  ;;  %v16697_v56 = vld [vmem:[%s18967_s2 + $0x148] sm:$0xff]   ;;  %v2534_v61 = vor.u32 %v2533_v53, %v2530_v52  ;;  %v16710_v45 = vld [vmem:[%s17182_s29 + $0x70] sm:$0xff]   ;;  %v17482_v53 = vld [vmem:[%s18967_s2 + $0x180] sm:$0xff]  }
 0x118   : > { %14287 = vmatprep.subr.bf16.mxu0 %v16690_v54  ;;  %v2612_v52 = vshll.u32 %v16710_v45, 16 }
 0x119   : > { %v2535_v4 = vsel %vm2491_vm2, %v2525_v48, %v2534_v61 }
 0x11b   : > { %14288 = vmatpush3.bf16.msra.mxu0 %v16690_v54  ;;  %v16699_v54 = vld [vmem:[%s17182_s29 + $0x38] sm:$0xff]  }
 0x11c   : > { %14325 = vmatprep.subr.bf16.mxu0 %v17411_v59 }
 0x11e   : > { %14254 = vmatmul.mubr.bf16.gmra.mrb[16].mxu0 %v1978_v62  ;;  %v2546_v62 = vshrl.u32 %v16699_v54, 16 }
 0x11f   : > { %14257 = vmatprep.mubr.bf16.mxu0 %v1980_v63  ;;  %v2549_v63 = vshll.u32 %v16699_v54, 16 }
 0x121   : > { %v2551_v6 = vrot.slane %v2549_v63, 2 }
 0x126   : > { %14258 = vmatmul.mubr.bf16.gmra.mrb[20].mxu0 %v1982_v5  ;;  %v2548_v5 = vrot.slane %v2546_v62, 1  ;;  %v16713_v62 = vld [vmem:[%s17182_s29 + $0x80] sm:$0xff]  }
 0x127   : > { %14261 = vmatprep.mubr.bf16.mxu0 %v1984_v7  ;;  %v16702_v7 = vld [vmem:[%s17182_s29 + $0x48] sm:$0xff]   ;;  %v2627_v3 = vshrl.u32 %v16713_v62, 16 }
 0x128   : > { %v2552_v12 = vor.u32 %v2551_v6, %v2548_v5  ;;  %v2564_v13 = vshrl.u32 %v16702_v7, 16  ;;  %v2567_v14 = vshll.u32 %v16702_v7, 16 }
 0x129   : > { %v2629_v9 = vrot.slane %v2627_v3, 1 }
 0x12a   : > { %v2566_v20 = vrot.slane %v2564_v13, 1  ;;  %v2569_v21 = vrot.slane %v2567_v14, 2  ;;  %v2562_v23 = vsel %vm2491_vm2, %v2552_v12, %v2561_v15 }
 0x12c   : > { %v2570_v28 = vor.u32 %v2569_v21, %v2566_v20 }
 0x12e   : > { %14262 = vmatmul.mubr.bf16.gmra.mrb[24].mxu0 %v1986_v16  ;;  %v2573_v16 = vshrl.u32 %v16704_v11, 16  ;;  %v2571_v37 = vsel %vm2491_vm2, %v2561_v15, %v2570_v28 }
 0x12f   : > { %14265 = vmatprep.mubr.bf16.mxu0 %v1988_v17  ;;  %v2576_v17 = vshll.u32 %v16704_v11, 16  ;;  %v16715_v11 = vld [vmem:[%s17182_s29 + $0x90] sm:$0xff]  }
 0x130   : > { %v2575_v24 = vrot.slane %v2573_v16, 1  ;;  %v2645_v16 = vshrl.u32 %v16715_v11, 16 }
 0x131   : > { %v2578_v25 = vrot.slane %v2576_v17, 2  ;;  %v2648_v17 = vshll.u32 %v16715_v11, 16  ;;  %v16732_v11 = vld [vmem:[%s17182_s29 + $0x58] sm:$0xff]  }
 0x132   : > { %v2647_v22 = vrot.slane %v2645_v16, 1 }
 0x133   : > { %v2579_v31 = vor.u32 %v2578_v25, %v2575_v24  ;;  %v16717_v25 = vld [vmem:[%s17182_s29 + $0x98] ss:$0 sps:$4 sm:$0x11]  }
 0x135   : > { %v2580_v42 = vsel %vm2491_vm2, %v2570_v28, %v2579_v31  ;;  %v2589_v54 = vsel %vm2491_vm2, %v2579_v31, %v2588_v47  ;;  %v2654_v28 = vshll.u32 %v16717_v25, 16  ;;  %v16719_v31 = vld [vmem:[%s17182_s29 + $0x10] sm:$0xff]   ;;  %v16738_v25 = vld [vmem:[%s17182_s29 + $0x78] sm:$0xff]  }
 0x136   : > { %14266 = vmatmul.mubr.bf16.gmra.mrb[28].mxu0 %v1990_v26  ;;  %v16707_v26 = vld [vmem:[%s17182_s29 + $0x60] sm:$0xff]  }
 0x137   : > { %14269 = vmatprep.mubr.bf16.mxu0 %v1992_v27  ;;  %v16709_v27 = vld [vmem:[%s18967_s2 + $0x168] sm:$0xff]   ;;  %v2591_v32 = vshrl.u32 %v16707_v26, 16  ;;  %v2594_v33 = vshll.u32 %v16707_v26, 16 }
 0x139   : > { %v17432_v34 = vpop.f32.mrb[32].mxu0  ;;  %v2593_v43 = vrot.slane %v2591_v32, 1  ;;  %v2596_v44 = vrot.slane %v2594_v33, 2  ;;  %v2656_v32 = vrot.slane %v2654_v28, 2  ;;  %v3157_v33 = vrot.slane %v16718_v30, 2 }
 0x13a   : > { %v17434_v35 = vpop.f32.mrb[33].mxu0  ;;  %v3184_v28 = vrot.slane %v16738_v25, 2 }
 0x13b   : > { %v14116_v36 = vpop.f32.mrb[34].mxu0  ;;  %v2597_v50 = vor.u32 %v2596_v44, %v2593_v43 }
 0x13c   : > { %646 = vst [vmem:[#allocation3 + $0x118] sm:$0x3f] %v14116_v36  ;;  %v17437_v40 = vpop.f32.mrb[35].mxu0  ;;  %v16712_v36 = vld [vmem:[%s18967_s2 + $0x170] sm:$0xff]  }
 0x13d   : > { %v2598_v58 = vsel %vm2491_vm2, %v2588_v47, %v2597_v50 }
 0x13e   : > { %14270 = vmatmul.mubr.bf16.gmra.mrb[44].mxu0 %v1991_v19  ;;  %v2553_v19 = vsel %vm2491_vm2, %v2543_v0, %v2552_v12 }
 0x13f   : > { %14289 = vmatprep.mubr.bf16.mxu0 %v2508_v41  ;;  %v16708_v41 = vld [vmem:[%s17182_s29 + $0x68] sm:$0xff]  }
 0x140   : > { %v2600_v48 = vshrl.u32 %v16708_v41, 16  ;;  %v2603_v49 = vshll.u32 %v16708_v41, 16 }
 0x143   : > { %v1212_v43 = vld [vmem:[#allocation3 + $0x118] sm:$0x3f] }
 0x146   : > { %14290 = vmatmul.mubr.bf16.vlgmr.msra.gmra.mrb[0].mxu0 %v2517_v51  ;;  %v2609_v51 = vshrl.u32 %v16710_v45, 16  ;;  %v16720_v45 = vld [vmem:[%s17182_s29 + $0x18] sm:$0xff]  }
 0x147   : > { %14326 = vmatpush3.bf16.msra.mxu0 %v17411_v59  ;;  %14293 = vmatprep.mubr.bf16.mxu0 %v2526_v55  ;;  %v2544_v59 = vsel %vm2491_vm2, %v2534_v61, %v2543_v0  ;;  %v2602_v55 = vrot.slane %v2600_v48, 1  ;;  %v2614_v61 = vrot.slane %v2612_v52, 2  ;;  %v2618_v0 = vshrl.u32 %v16711_v57, 16  ;;  %v16723_v52 = vld [vmem:[%s17182_s29 + $0x28] sm:$0xff]  }
 0x148   : > { %14327 = vmatprep.subr.bf16.mxu0 %v16697_v56  ;;  %v2611_v60 = vrot.slane %v2609_v51, 1 }
 0x149   : > { %v2620_v6 = vrot.slane %v2618_v0, 1 }
 0x14a   : > { %v2615_v2 = vor.u32 %v2614_v61, %v2611_v60  ;;  %v16726_v61 = vld [vmem:[%s17182_s29 + $0x38] sm:$0xff]  }
 0x14b   : > { %14328 = vmatpush3.bf16.msra.mxu0 %v16697_v56  ;;  %v2605_v56 = vrot.slane %v2603_v49, 2  ;;  %v16722_v49 = vld [vmem:[%s17182_s29 + $0x20] sm:$0xff]   ;;  %v3168_v0 = vrot.slane %v16726_v61, 2 }
 0x14c   : > { %14329 = vmatprep.subr.bf16.mxu0 %v16700_v1 }
 0x14d   : > { %v2606_v63 = vor.u32 %v2605_v56, %v2602_v55  ;;  %v16724_v55 = vld [vmem:[%s18967_s2 + $0x188] sm:$0xff]   ;;  %v16725_v56 = vld [vmem:[%s17182_s29 + $0x30] sm:$0xff]  }
 0x14e   : > { %14294 = vmatmul.mubr.bf16.gmra.mrb[4].mxu0 %v2535_v4  ;;  %v2630_v4 = vshll.u32 %v16713_v62, 16 }
 0x14f   : > { %14297 = vmatprep.mubr.bf16.mxu0 %v2544_v59  ;;  %14330 = vmatpush3.bf16.msra.mxu0 %v16700_v1  ;;  %v2621_v1 = vshll.u32 %v16711_v57, 16  ;;  %v2607_v5 = vsel %vm2491_vm2, %v2597_v50, %v2606_v63  ;;  %v16714_v59 = vld [vmem:[%s17182_s29 + $0x88] sm:$0xff]   ;;  %v2616_v8 = vsel %vm2491_vm2, %v2606_v63, %v2615_v2  ;;  %v3166_v57 = vrot.slane %v16725_v56, 2  ;;  %v16728_v63 = vld [vmem:[%s17182_s29 + $0x40] sm:$0xff]  }
 0x150   : > { %14331 = vmatprep.subr.bf16.mxu0 %v16703_v10  ;;  %v2636_v13 = vshrl.u32 %v16714_v59, 16  ;;  %v2639_v14 = vshll.u32 %v16714_v59, 16  ;;  %v16747_v56 = vld [vmem:[%s17182_s29 + $0x20] sm:$0xff]  }
 0x151   : > { %v2623_v7 = vrot.slane %v2621_v1, 2  ;;  %v3170_v1 = vrot.slane %v16728_v63, 2  ;;  %v3169_v3 = vsel %vm3156_vm3, %v3166_v57, %v3168_v0  ;;  %v16750_v63 = vld [vmem:[%s17182_s29 + $0x30] sm:$0xff]  }
 0x152   : > { %v2641_v20 = vrot.slane %v2639_v14, 2  ;;  %v16743_v14 = vld [vmem:[%s18967_s2 + $0x1b8] sm:$0xff]  }
 0x153   : > { %14332 = vmatpush3.bf16.msra.mxu0 %v16703_v10  ;;  %v2632_v10 = vrot.slane %v2630_v4, 2  ;;  %v2624_v12 = vor.u32 %v2623_v7, %v2620_v6  ;;  %v16729_v4 = vld [vmem:[%s17182_s29 + $0x48] sm:$0xff]   ;;  %v16731_v6 = vld [vmem:[%s17182_s29 + $0x50] sm:$0xff]  }
 0x154   : > { %14333 = vmatprep.subr.bf16.mxu0 %v16706_v18  ;;  %v16736_v7 = vld [vmem:[%s18967_s2 + $0x1a8] sm:$0xff]   ;;  %v3172_v59 = vrot.slane %v16729_v4, 2 }
 0x155   : > { %v2633_v15 = vor.u32 %v2632_v10, %v2629_v9  ;;  %v16739_v9 = vld [vmem:[%s18967_s2 + $0x1b0] sm:$0xff]  }
 0x156   : > { %14298 = vmatmul.mubr.bf16.gmra.mrb[8].mxu0 %v2553_v19  ;;  %v2638_v19 = vrot.slane %v2636_v13, 1  ;;  %v3173_v10 = vsel %vm3156_vm3, %v3170_v1, %v3172_v59  ;;  %v16734_v13 = vld [vmem:[%s17182_s29 + $0x60] sm:$0xff]  }
 0x157   : > { %14301 = vmatprep.mubr.bf16.mxu0 %v2562_v23  ;;  %14334 = vmatpush3.bf16.msra.mxu0 %v16706_v18  ;;  %v2625_v18 = vsel %vm2491_vm2, %v2615_v2, %v2624_v12  ;;  %v2634_v21 = vsel %vm2491_vm2, %v2624_v12, %v2633_v15  ;;  %v2650_v23 = vrot.slane %v2648_v17, 2  ;;  %v16733_v2 = vld [vmem:[%s18967_s2 + $0x1a0] sm:$0xff]   ;;  %v3178_v16 = vrot.slane %v16734_v13, 2 }
 0x158   : > { %14335 = vmatprep.subr.bf16.mxu0 %v16709_v27  ;;  %v2642_v24 = vor.u32 %v2641_v20, %v2638_v19  ;;  %v16748_v17 = vld [vmem:[%s18967_s2 + $0x1c0] sm:$0xff]   ;;  %v16735_v19 = vld [vmem:[%s17182_s29 + $0x68] sm:$0xff]  }
 0x159   : > { %v2651_v26 = vor.u32 %v2650_v23, %v2647_v22  ;;  %v3180_v22 = vrot.slane %v16735_v19, 2 }
 0x15b   : > { %14336 = vmatpush3.bf16.msra.mxu0 %v16709_v27  ;;  %v2643_v27 = vsel %vm2491_vm2, %v2633_v15, %v2642_v24  ;;  %v2652_v29 = vsel %vm2491_vm2, %v2642_v24, %v2651_v26  ;;  %v2657_v44 = vsel %vm2491_vm2, %v2651_v26, %v2656_v32  ;;  %v3176_v15 = vrot.slane %v16732_v11, 2 }
 0x15c   : > { %14337 = vmatprep.subr.bf16.mxu0 %v16712_v36  ;;  %v3181_v24 = vsel %vm3156_vm3, %v3178_v16, %v3180_v22 }
 0x15d   : > { %v3179_v20 = vsel %vm3156_vm3, %v3176_v15, %v3178_v16 }
 0x15e   : > { %14302 = vmatmul.mubr.bf16.gmra.mrb[12].mxu0 %v2571_v37 }
 0x15f   : > { %14305 = vmatprep.mubr.bf16.mxu0 %v2580_v42  ;;  %14338 = vmatpush3.bf16.msra.mxu0 %v16712_v36  ;;  %v3158_v36 = vrot.slane %v16719_v31, 2  ;;  %v16741_v31 = vld [vmem:[%s17182_s29 + $0x88] sm:$0xff]  }
 0x160   : > { %14339 = vmatprep.subr.bf16.mxu0 %v16716_v46 }
 0x161   : > { %v3159_v48 = vsel %vm3156_vm3, %v3157_v33, %v3158_v36  ;;  %v16742_v33 = vld [vmem:[%s17182_s29 + $0x90] sm:$0xff]  }
 0x163   : > { %14340 = vmatpush3.bf16.msra.mxu0 %v16716_v46 }
 0x164   : > { %14377 = vmatprep.subr.bf16.mxu0 %v17482_v53 }
 0x166   : > { %14306 = vmatmul.mubr.bf16.gmra.mrb[16].mxu0 %v2589_v54 }
 0x167   : > { %14309 = vmatprep.mubr.bf16.mxu0 %v2598_v58  ;;  %v16727_v58 = vld [vmem:[%s18967_s2 + $0x190] sm:$0xff]  }
 0x16e   : > { %14310 = vmatmul.mubr.bf16.gmra.mrb[20].mxu0 %v2607_v5  ;;  %v3171_v5 = vsel %vm3156_vm3, %v3168_v0, %v3170_v1  ;;  %v16751_v0 = vld [vmem:[%s18967_s2 + $0x1c8] sm:$0xff]   ;;  %v16752_v1 = vld [vmem:[%s17182_s29 + $0x38] sm:$0xff]  }
 0x16f   : > { %14313 = vmatprep.mubr.bf16.mxu0 %v2616_v8  ;;  %v3174_v8 = vrot.slane %v16731_v6, 2 }
 0x171   : > { %v3175_v12 = vsel %vm3156_vm3, %v3172_v59, %v3174_v8  ;;  %v16757_v59 = vld [vmem:[%s18967_s2 + $0x1d8] sm:$0xff]  }
 0x176   : > { %14314 = vmatmul.mubr.bf16.gmra.mrb[24].mxu0 %v2625_v18  ;;  %v3177_v18 = vsel %vm3156_vm3, %v3174_v8, %v3176_v15  ;;  %v16763_v15 = vld [vmem:[%s18967_s2 + $0x1e8] sm:$0xff]  }
 0x177   : > { %14317 = vmatprep.mubr.bf16.mxu0 %v2634_v21  ;;  %v16737_v21 = vld [vmem:[%s17182_s29 + $0x70] sm:$0xff]  }
 0x178   : > { %v3182_v23 = vrot.slane %v16737_v21, 2 }
 0x17a   : > { %v3183_v26 = vsel %vm3156_vm3, %v3180_v22, %v3182_v23  ;;  %v3185_v30 = vsel %vm3156_vm3, %v3182_v23, %v3184_v28  ;;  %v16761_v22 = vld [vmem:[%s17182_s29 + $0x68] sm:$0xff]   ;;  %v16770_v23 = vld [vmem:[%s18967_s2 + $0x1f8] sm:$0xff]  }
 0x17b   : > { %v3713_v25 = vrot.slane %v16761_v22, 2 }
 0x17e   : > { %14318 = vmatmul.mubr.bf16.gmra.mrb[28].mxu0 %v2643_v27  ;;  %v16740_v27 = vld [vmem:[%s17182_s29 + $0x80] sm:$0xff]  }
 0x17f   : > { %14321 = vmatprep.mubr.bf16.mxu0 %v2652_v29  ;;  %v3186_v29 = vrot.slane %v16740_v27, 2 }
 0x181   : > { %v14167_v37 = vpop.f32.mrb[36].mxu0  ;;  %v3187_v32 = vsel %vm3156_vm3, %v3184_v28, %v3186_v29  ;;  %v16762_v28 = vld [vmem:[%s17182_s29 + $0x70] sm:$0xff]  }
 0x182   : > { %v17501_v38 = vadd.f32 %v14167_v37, %v17432_v34  ;;  %v1162_v39 = vpop.f32.mrb[37].mxu0  ;;  %v3160_v34 = vrot.slane %v16720_v45, 2  ;;  %v3190_v37 = vrot.slane %v16742_v33, 2  ;;  %v16746_v45 = vld [vmem:[%s17182_s29 + $0x18] sm:$0xff]   ;;  %v5357_v33 = vld [vmem:[%s18966_s1] sm:$0xff] }
 0x183   : > { %v17504_v41 = vadd.f32 %v1162_v39, %v17434_v35  ;;  %v14168_v42 = vpop.f32.mrb[38].mxu0  ;;  %v3162_v35 = vrot.slane %v16722_v49, 2 }
 0x184   : > { %v1248_v46 = vadd.f32 %v14168_v42, %v1212_v43  ;;  %v1165_v47 = vpop.f32.mrb[39].mxu0  ;;  %v3161_v51 = vsel %vm3156_vm3, %v3158_v36, %v3160_v34  ;;  %v3188_v36 = vrot.slane %v16741_v31, 2  ;;  %v16744_v42 = vld [vmem:[%s17182_s29 + $0x98] ss:$0 sps:$4 sm:$0x11]   ;;  %v17124_v31 = vmov 0  }
 0x185   : > { %v17511_v50 = vadd.f32 %v1165_v47, %v17437_v40  ;;  %v3163_v54 = vsel %vm3156_vm3, %v3160_v34, %v3162_v35  ;;  %v3164_v40 = vrot.slane %v16723_v52, 2  ;;  %16578 = vset.pattern.permute.xlu1 %v17124_v31  ;;  %5628 = vst [vmem:[#allocation2 + $0x4] sm:$0xf] %v17124_v31  ;;  %5629 = vst [vmem:[#allocation2 + $0x8] sm:$0xf] %v17124_v31  ;;  %16577 = vset.pattern.permute.xlu0 %v17124_v31 }
 0x186   : > { %1284 = vst [vmem:[#allocation3 + $0x118] sm:$0x3f] %v1248_v46  ;;  %14322 = vmatmul.mubr.bf16.gmra.mrb[48].mxu0 %v2657_v44  ;;  %v3189_v39 = vsel %vm3156_vm3, %v3186_v29, %v3188_v36  ;;  %v3191_v43 = vsel %vm3156_vm3, %v3188_v36, %v3190_v37  ;;  %v16745_v44 = vld [vmem:[%s17182_s29 + $0x10] sm:$0xfc]   ;;  %v3192_v46 = vrot.slane %v16744_v42, 2  ;;  %v3715_v36 = vrot.slane %v16762_v28, 2  ;;  %5395 = vperm.xlu0 %16577, %v5357_v33  }
 0x187   : > { %14341 = vmatprep.mubr.bf16.mxu0 %v3159_v48  ;;  %v3165_v60 = vsel %vm3156_vm3, %v3162_v35, %v3164_v40  ;;  %v3167_v62 = vsel %vm3156_vm3, %v3164_v40, %v3166_v57  ;;  %v3692_v47 = vrot.slane %v16745_v44, 2  ;;  %v3693_v48 = vrot.slane %v16746_v45, 2  ;;  %5630 = vst [vmem:[#allocation2 + $0xc] sm:$0xf] %v17124_v31  ;;  %5631 = vst [vmem:[#allocation2 + $0x10] sm:$0xf] %v17124_v31 }
 0x188   : > { %5632 = vst [vmem:[#allocation2 + $0x14] sm:$0xf] %v17124_v31  ;;  %5795 = vst [vmem:[#allocation2 + $0xa4] sm:$0x8] %v17124_v31  ;;  %v5358_v42 = vld [vmem:[%s18966_s1 + $0x8] sm:$0xff]  ;;  %v16765_v44 = vld [vmem:[%s17182_s29 + $0x80] sm:$0xff]  }
 0x189   : > { %5796 = vst [vmem:[#allocation2 + $0xa8] sm:$0xf] %v17124_v31  ;;  %5797 = vst [vmem:[#allocation2 + $0xac] sm:$0xf] %v17124_v31 }
 0x18a   : > { %5798 = vst [vmem:[#allocation2 + $0xb0] sm:$0xf] %v17124_v31  ;;  %5799 = vst [vmem:[#allocation2 + $0xb4] sm:$0xf] %v17124_v31  ;;  %5400 = vperm.xlu0 %16577, %v5358_v42  }
 0x18b   : > { %5800 = vst [vmem:[#allocation2 + $0xb8] sm:$0x3] %v17124_v31  ;;  %v5371_v31 = vld [vmem:[%s18966_s1 + $0x70] sm:$0xff] }
 0x18e   : > { %14342 = vmatmul.mubr.bf16.vlgmr.msra.gmra.mrb[0].mxu0 %v3161_v51 }
 0x18f   : > { %14378 = vmatpush3.bf16.msra.mxu0 %v17482_v53  ;;  %14345 = vmatprep.mubr.bf16.mxu0 %v3163_v54  ;;  %v16730_v53 = vld [vmem:[%s18967_s2 + $0x198] sm:$0xff]  }
 0x190   : > { %14379 = vmatprep.subr.bf16.mxu0 %v16724_v55  ;;  %v1742_v54 = vld [vmem:[#allocation3 + $0x118] sm:$0x3f] }
 0x193   : > { %14380 = vmatpush3.bf16.msra.mxu0 %v16724_v55  ;;  %v3193_v55 = vsel %vm3156_vm3, %v3190_v37, %v3192_v46  ;;  %v16767_v46 = vld [vmem:[%s17182_s29 + $0x88] sm:$0xff]  }
 0x194   : > { %14381 = vmatprep.subr.bf16.mxu0 %v16727_v58 }
 0x196   : > { %14346 = vmatmul.mubr.bf16.gmra.mrb[4].mxu0 %v3165_v60  ;;  %v16749_v60 = vld [vmem:[%s17182_s29 + $0x28] sm:$0xff]  }
 0x197   : > { %14349 = vmatprep.mubr.bf16.mxu0 %v3167_v62  ;;  %14382 = vmatpush3.bf16.msra.mxu0 %v16727_v58  ;;  %v3694_v58 = vsel %vm3156_vm3, %v3692_v47, %v3693_v48  ;;  %v16772_v47 = vld [vmem:[%s17182_s29 + $0x10] sm:$0xfc]  }
 0x198   : > { %14383 = vmatprep.subr.bf16.mxu0 %v16730_v53 }
 0x19b   : > { %14384 = vmatpush3.bf16.msra.mxu0 %v16730_v53 }
 0x19c   : > { %14385 = vmatprep.subr.bf16.mxu0 %v16733_v2 }
 0x19e   : > { %14350 = vmatmul.mubr.bf16.gmra.mrb[8].mxu0 %v3169_v3  ;;  %v16754_v3 = vld [vmem:[%s18967_s2 + $0x1d0] sm:$0xff]  }
 0x19f   : > { %14353 = vmatprep.mubr.bf16.mxu0 %v3171_v5  ;;  %14386 = vmatpush3.bf16.msra.mxu0 %v16733_v2  ;;  %v3701_v2 = vrot.slane %v16752_v1, 2  ;;  %v16753_v5 = vld [vmem:[%s17182_s29 + $0x40] sm:$0xff]   ;;  %v5366_v1 = vld [vmem:[%s18966_s1 + $0x48] sm:$0xff] }
 0x1a0   : > { %14387 = vmatprep.subr.bf16.mxu0 %v16736_v7  ;;  %v3703_v8 = vrot.slane %v16753_v5, 2 }
 0x1a2   : > { %v3704_v11 = vsel %vm3156_vm3, %v3701_v2, %v3703_v8 }
 0x1a3   : > { %14388 = vmatpush3.bf16.msra.mxu0 %v16736_v7  ;;  %v16755_v7 = vld [vmem:[%s17182_s29 + $0x48] sm:$0xff]  }
 0x1a4   : > { %14389 = vmatprep.subr.bf16.mxu0 %v16739_v9 }
 0x1a6   : > { %14354 = vmatmul.mubr.bf16.gmra.mrb[12].mxu0 %v3173_v10  ;;  %v16760_v10 = vld [vmem:[%s18967_s2 + $0x1e0] sm:$0xff]  }
 0x1a7   : > { %14357 = vmatprep.mubr.bf16.mxu0 %v3175_v12  ;;  %14390 = vmatpush3.bf16.msra.mxu0 %v16739_v9  ;;  %v3705_v9 = vrot.slane %v16755_v7, 2  ;;  %v16756_v12 = vld [vmem:[%s17182_s29 + $0x50] sm:$0xff]  }
 0x1a8   : > { %14391 = vmatprep.subr.bf16.mxu0 %v16743_v14  ;;  %v3707_v16 = vrot.slane %v16756_v12, 2 }
 0x1a9   : > { %v3706_v13 = vsel %vm3156_vm3, %v3703_v8, %v3705_v9 }
 0x1aa   : > { %v3708_v19 = vsel %vm3156_vm3, %v3705_v9, %v3707_v16 }
 0x1ab   : > { %14392 = vmatpush3.bf16.msra.mxu0 %v16743_v14  ;;  %v16758_v14 = vld [vmem:[%s17182_s29 + $0x58] sm:$0xff]  }
 0x1ac   : > { %14429 = vmatprep.subr.bf16.mxu0 %v16748_v17 }
 0x1ae   : > { %14358 = vmatmul.mubr.bf16.gmra.mrb[16].mxu0 %v3177_v18  ;;  %v16766_v18 = vld [vmem:[%s18967_s2 + $0x1f0] sm:$0xff]  }
 0x1af   : > { %14361 = vmatprep.mubr.bf16.mxu0 %v3179_v20  ;;  %v16759_v20 = vld [vmem:[%s17182_s29 + $0x60] sm:$0xff]  }
 0x1b6   : > { %14362 = vmatmul.mubr.bf16.gmra.mrb[20].mxu0 %v3181_v24  ;;  %v3711_v24 = vrot.slane %v16759_v20, 2 }
 0x1b7   : > { %14365 = vmatprep.mubr.bf16.mxu0 %v3183_v26  ;;  %v17624_v26 = vld [vmem:[%s18967_s2 + $0x200] sm:$0xff]  }
 0x1b8   : > { %v3714_v29 = vsel %vm3156_vm3, %v3711_v24, %v3713_v25 }
 0x1be   : > { %14366 = vmatmul.mubr.bf16.gmra.mrb[24].mxu0 %v3185_v30  ;;  %v16764_v30 = vld [vmem:[%s17182_s29 + $0x78] sm:$0xff]  }
 0x1bf   : > { %14369 = vmatprep.mubr.bf16.mxu0 %v3187_v32  ;;  %v5359_v32 = vld [vmem:[%s18966_s1 + $0x10] sm:$0xff]  ;;  %v3717_v37 = vrot.slane %v16764_v30, 2  ;;  %v5372_v30 = vld [vmem:[%s18966_s1 + $0x78] sm:$0xff] }
 0x1c0   : > { %5405 = vperm.xlu1 %16578, %v5359_v32  }
 0x1c1   : > { %v3718_v45 = vsel %vm3156_vm3, %v3715_v36, %v3717_v37 }
 0x1c6   : > { %14370 = vmatmul.mubr.bf16.gmra.mrb[28].mxu0 %v3189_v39  ;;  %v5360_v39 = vld [vmem:[%s18966_s1 + $0x18] sm:$0xff] }
 0x1c7   : > { %14373 = vmatprep.mubr.bf16.mxu0 %v3191_v43  ;;  %v3716_v43 = vsel %vm3156_vm3, %v3713_v25, %v3715_v36  ;;  %5410 = vperm.xlu1 %16578, %v5360_v39   ;;  %v16777_v25 = vld [vmem:[%s17182_s29 + $0x30] sm:$0xff]  }
 0x1c9   : > { %v14219_v49 = vpop.f32.mrb[40].mxu0 }
 0x1ca   : > { %v17572_v34 = vadd.f32 %v14219_v49, %v17501_v38  ;;  %v1692_v35 = vpop.f32.mrb[41].mxu0  ;;  %v3695_v38 = vrot.slane %v16747_v56, 2  ;;  %v5361_v49 = vld [vmem:[%s18966_s1 + $0x20] sm:$0xff]  ;;  %v16769_v56 = vld [vmem:[%s17182_s29 + $0x98] sm:$0xff]  }
 0x1cb   : > { %v17575_v51 = vadd.f32 %v1692_v35, %v17504_v41  ;;  %v14220_v52 = vpop.f32.mrb[42].mxu0  ;;  %v3697_v41 = vrot.slane %v16749_v60, 2  ;;  %v3719_v35 = vrot.slane %v16765_v44, 2  ;;  %5415 = vperm.xlu0 %16577, %v5361_v49   ;;  %v5364_v60 = vld [vmem:[%s18966_s1 + $0x38] sm:$0xff] }
 0x1cc   : > { %v1778_v40 = vadd.f32 %v14220_v52, %v1742_v54  ;;  %v1695_v57 = vpop.f32.mrb[43].mxu0  ;;  %v3696_v62 = vsel %vm3156_vm3, %v3693_v48, %v3695_v38  ;;  %v5362_v48 = vld [vmem:[%s18966_s1 + $0x28] sm:$0xff]  ;;  %v3721_v52 = vrot.slane %v16767_v46, 2  ;;  %v16768_v54 = vld [vmem:[%s17182_s29 + $0x90] sm:$0xff]  }
 0x1cd   : > { %v17582_v61 = vadd.f32 %v1695_v57, %v17511_v50  ;;  %v3698_v53 = vsel %vm3156_vm3, %v3695_v38, %v3697_v41  ;;  %v3699_v50 = vrot.slane %v16750_v63, 2  ;;  %5420 = vperm.xlu1 %16578, %v5362_v48   ;;  %v4229_v57 = vshrl.u32 %v16772_v47, 16  ;;  %v5363_v38 = vld [vmem:[%s18966_s1 + $0x30] sm:$0xff] }
 0x1ce   : > { %1814 = vst [vmem:[#allocation3 + $0x118] sm:$0x3f] %v1778_v40  ;;  %14374 = vmatmul.mubr.bf16.gmra.mrb[52].mxu0 %v3193_v55  ;;  %v16773_v55 = vld [vmem:[%s17182_s29 + $0x18] sm:$0xff]   ;;  %v16774_v40 = vld [vmem:[%s17182_s29 + $0x20] sm:$0xff]   ;;  %v3723_v63 = vrot.slane %v16768_v54, 2  ;;  %v4267_v48 = vshll.u32 %v16777_v25, 16 }
 0x1cf   : > { %14393 = vmatprep.mubr.bf16.mxu0 %v3694_v58  ;;  %v3700_v4 = vsel %vm3156_vm3, %v3697_v41, %v3699_v50  ;;  %v3702_v6 = vsel %vm3156_vm3, %v3699_v50, %v3701_v2  ;;  %v4232_v58 = vshll.u32 %v16772_v47, 16  ;;  %v3720_v41 = vsel %vm3156_vm3, %v3717_v37, %v3719_v35  ;;  %5425 = vperm.xlu0 %16577, %v5363_v38   ;;  %v5365_v50 = vld [vmem:[%s18966_s1 + $0x40] sm:$0xff]  ;;  %v5375_v54 = vld [vmem:[%s18966_s1 + $0x90] sm:$0xff] }
 0x1d0   : > { %v3725_v2 = vrot.slane %v16769_v56, 2  ;;  %v4249_v5 = vshll.u32 %v16774_v40, 16  ;;  %v3724_v12 = vsel %vm3156_vm3, %v3721_v52, %v3723_v63  ;;  %v4264_v47 = vshrl.u32 %v16777_v25, 16  ;;  %v5383_v25 = vld [vmem:[%s18966_s1 + $0xd0] sm:$0xff] }
 0x1d1   : > { %5430 = vperm.xlu1 %16578, %v5364_v60   ;;  %v4234_v7 = vrot.slane %v4232_v58, 3  ;;  %v16778_v60 = vld [vmem:[%s18967_s2 + $0x208] sm:$0xff]  }
 0x1d2   : > { %v4251_v22 = vrot.slane %v4249_v5, 3  ;;  %v4266_v56 = vrot.slane %v4264_v47, 2 }
 0x1d3   : > { %5435 = vperm.xlu0 %16577, %v5365_v50  }
 0x1d5   : > { %5440 = vperm.xlu1 %16578, %v5366_v1  }
 0x1d6   : > { %14394 = vmatmul.mubr.bf16.vlgmr.msra.gmra.mrb[0].mxu0 %v3696_v62  ;;  %v3722_v62 = vsel %vm3156_vm3, %v3719_v35, %v3721_v52  ;;  %v5376_v52 = vld [vmem:[%s18966_s1 + $0x98] sm:$0xff] }
 0x1d7   : > { %14430 = vmatpush3.bf16.msra.mxu0 %v16748_v17  ;;  %14397 = vmatprep.mubr.bf16.mxu0 %v3698_v53  ;;  %v3709_v17 = vrot.slane %v16758_v14, 2  ;;  %v4237_v53 = vshrl.u32 %v16773_v55, 16 }
 0x1d8   : > { %14431 = vmatprep.subr.bf16.mxu0 %v16751_v0 }
 0x1d9   : > { %v3710_v21 = vsel %vm3156_vm3, %v3707_v16, %v3709_v17  ;;  %v3712_v27 = vsel %vm3156_vm3, %v3709_v17, %v3711_v24  ;;  %v4239_v8 = vrot.slane %v4237_v53, 2  ;;  %v5369_v16 = vld [vmem:[%s18966_s1 + $0x60] sm:$0xff]  ;;  %v2271_v24 = vld [vmem:[#allocation3 + $0x118] sm:$0x3f] }
 0x1da   : > { %v5377_v53 = vld [vmem:[%s18966_s1 + $0xa0] sm:$0xff] }
 0x1db   : > { %14432 = vmatpush3.bf16.msra.mxu0 %v16751_v0  ;;  %v4240_v0 = vshll.u32 %v16773_v55, 16 }
 0x1dc   : > { %14433 = vmatprep.subr.bf16.mxu0 %v16754_v3 }
 0x1dd   : > { %v4242_v9 = vrot.slane %v4240_v0, 3 }
 0x1de   : > { %14398 = vmatmul.mubr.bf16.gmra.mrb[4].mxu0 %v3700_v4  ;;  %v4231_v4 = vrot.slane %v4229_v57, 2  ;;  %v16780_v57 = vld [vmem:[%s17182_s29 + $0x40] sm:$0xff]  }
 0x1df   : > { %14401 = vmatprep.mubr.bf16.mxu0 %v3702_v6  ;;  %14434 = vmatpush3.bf16.msra.mxu0 %v16754_v3  ;;  %v4246_v3 = vshrl.u32 %v16774_v40, 16  ;;  %v16771_v6 = vld [vmem:[%s17182_s29 + $0xa0] ss:$0 sps:$4 sm:$0x11]   ;;  %v4243_v20 = vor.u32 %v4242_v9, %v4239_v8  ;;  %v4269_v40 = vrot.slane %v4267_v48, 3  ;;  %v4282_v1 = vshrl.u32 %v16780_v57, 16 }
 0x1e0   : > { %14435 = vmatprep.subr.bf16.mxu0 %v16757_v59  ;;  %v3727_v17 = vrot.slane %v16771_v6, 2  ;;  %v4285_v50 = vshll.u32 %v16780_v57, 16  ;;  %v5379_v6 = vld [vmem:[%s18966_s1 + $0xb0] sm:$0xff] }
 0x1e1   : > { %v4270_v0 = vor.u32 %v4269_v40, %v4266_v56  ;;  %v16783_v9 = vld [vmem:[%s17182_s29 + $0x50] sm:$0xff]  }
 0x1e2   : > { %v3728_v36 = vsel %vm3156_vm3, %v3725_v2, %v3727_v17  ;;  %v4287_v8 = vrot.slane %v4285_v50, 3  ;;  %v16789_v40 = vld [vmem:[%s17182_s29 + $0x70] sm:$0xff]  }
 0x1e3   : > { %14436 = vmatpush3.bf16.msra.mxu0 %v16757_v59  ;;  %v16776_v59 = vld [vmem:[%s17182_s29 + $0x28] sm:$0xff]  }
 0x1e4   : > { %14437 = vmatprep.subr.bf16.mxu0 %v16760_v10  ;;  %v4255_v14 = vshrl.u32 %v16776_v59, 16 }
 0x1e6   : > { %14402 = vmatmul.mubr.bf16.gmra.mrb[8].mxu0 %v3704_v11  ;;  %v5367_v11 = vld [vmem:[%s18966_s1 + $0x50] sm:$0xff] }
 0x1e7   : > { %14405 = vmatprep.mubr.bf16.mxu0 %v3706_v13  ;;  %14438 = vmatpush3.bf16.msra.mxu0 %v16760_v10  ;;  %v5368_v10 = vld [vmem:[%s18966_s1 + $0x58] sm:$0xff]  ;;  %v3726_v13 = vsel %vm3156_vm3, %v3723_v63, %v3725_v2  ;;  %v5378_v63 = vld [vmem:[%s18966_s1 + $0xa8] sm:$0xff] }
 0x1e8   : > { %14439 = vmatprep.subr.bf16.mxu0 %v16763_v15  ;;  %5450 = vperm.xlu1 %16578, %v5368_v10  }
 0x1e9   : > { %5445 = vperm.xlu0 %16577, %v5367_v11  }
 0x1eb   : > { %14440 = vmatpush3.bf16.msra.mxu0 %v16763_v15  ;;  %v5370_v15 = vld [vmem:[%s18966_s1 + $0x68] sm:$0xff] }
 0x1ec   : > { %14441 = vmatprep.subr.bf16.mxu0 %v16766_v18  ;;  %5460 = vperm.xlu1 %16578, %v5370_v15   ;;  %v5382_v15 = vld [vmem:[%s18966_s1 + $0xc8] sm:$0xff] }
 0x1ed   : > { %5455 = vperm.xlu0 %16577, %v5369_v16   ;;  %v5381_v16 = vld [vmem:[%s18966_s1 + $0xc0] sm:$0xff] }
 0x1ee   : > { %14406 = vmatmul.mubr.bf16.gmra.mrb[12].mxu0 %v3708_v19  ;;  %v4235_v19 = vor.u32 %v4234_v7, %v4231_v4 }
 0x1ef   : > { %14409 = vmatprep.mubr.bf16.mxu0 %v3710_v21  ;;  %14442 = vmatpush3.bf16.msra.mxu0 %v16766_v18  ;;  %v4258_v18 = vshll.u32 %v16776_v59, 16  ;;  %v4248_v21 = vrot.slane %v4246_v3, 2  ;;  %v16781_v3 = vld [vmem:[%s18967_s2 + $0x210] sm:$0xff]   ;;  %v4284_v59 = vrot.slane %v4282_v1, 2  ;;  %v4339_v1 = vshll.u32 %v16789_v40, 16 }
 0x1f0   : > { %14443 = vmatprep.subr.bf16.mxu0 %v16770_v23  ;;  %v4244_v42 = vsel %vm4227_vm4, %v4235_v19, %v4243_v20  ;;  %5470 = vperm.xlu1 %16578, %v5372_v30   ;;  %v4303_v19 = vshll.u32 %v16783_v9, 16 }
 0x1f1   : > { %v4260_v37 = vrot.slane %v4258_v18, 3  ;;  %5465 = vperm.xlu0 %16577, %v5371_v31   ;;  %v4252_v46 = vor.u32 %v4251_v22, %v4248_v21  ;;  %v4288_v17 = vor.u32 %v4287_v8, %v4284_v59  ;;  %v4300_v18 = vshrl.u32 %v16783_v9, 16  ;;  %v16786_v31 = vld [vmem:[%s17182_s29 + $0x60] sm:$0xff]  }
 0x1f2   : > { %v4305_v30 = vrot.slane %v4303_v19, 3  ;;  %v16792_v59 = vld [vmem:[%s17182_s29 + $0x80] sm:$0xff]  }
 0x1f3   : > { %14444 = vmatpush3.bf16.msra.mxu0 %v16770_v23  ;;  %v4253_v55 = vsel %vm4227_vm4, %v4243_v20, %v4252_v46 }
 0x1f4   : > { %14481 = vmatprep.subr.bf16.mxu0 %v17624_v26 }
 0x1f6   : > { %14410 = vmatmul.mubr.bf16.gmra.mrb[16].mxu0 %v3712_v27 }
 0x1f7   : > { %14413 = vmatprep.mubr.bf16.mxu0 %v3714_v29  ;;  %v4257_v29 = vrot.slane %v4255_v14, 2  ;;  %v16785_v14 = vld [vmem:[%s17182_s29 + $0x58] sm:$0xff]  }
 0x1f8   : > { %v4309_v21 = vshrl.u32 %v16785_v14, 16  ;;  %v4312_v22 = vshll.u32 %v16785_v14, 16  ;;  %v4357_v14 = vshll.u32 %v16792_v59, 16 }
 0x1f9   : > { %v4261_v49 = vor.u32 %v4260_v37, %v4257_v29  ;;  %v4302_v29 = vrot.slane %v4300_v18, 2 }
 0x1fa   : > { %v4314_v37 = vrot.slane %v4312_v22, 3 }
 0x1fb   : > { %v4262_v58 = vsel %vm4227_vm4, %v4252_v46, %v4261_v49  ;;  %v4271_v7 = vsel %vm4227_vm4, %v4261_v49, %v4270_v0  ;;  %v4321_v46 = vshll.u32 %v16786_v31, 16 }
 0x1fd   : > { %v4323_v56 = vrot.slane %v4321_v46, 3 }
 0x1fe   : > { %14414 = vmatmul.mubr.bf16.gmra.mrb[20].mxu0 %v3716_v43  ;;  %v16779_v43 = vld [vmem:[%s17182_s29 + $0x38] sm:$0xff]  }
 0x1ff   : > { %14417 = vmatprep.mubr.bf16.mxu0 %v3718_v45  ;;  %v5373_v45 = vld [vmem:[%s18966_s1 + $0x80] sm:$0xff]  ;;  %v4273_v35 = vshrl.u32 %v16779_v43, 16 }
 0x200   : > { %5475 = vperm.xlu0 %16577, %v5373_v45   ;;  %v4318_v45 = vshrl.u32 %v16786_v31, 16 }
 0x201   : > { %v4275_v38 = vrot.slane %v4273_v35, 2  ;;  %v16793_v35 = vld [vmem:[%s18967_s2 + $0x230] sm:$0xff]  }
 0x204   : > { %5485 = vperm.xlu0 %16577, %v5375_v54  }
 0x206   : > { %14418 = vmatmul.mubr.bf16.gmra.mrb[24].mxu0 %v3720_v41 }
 0x207   : > { %14421 = vmatprep.mubr.bf16.mxu0 %v3722_v62  ;;  %v16782_v62 = vld [vmem:[%s17182_s29 + $0x48] sm:$0xff]  }
 0x208   : > { %v4291_v4 = vshrl.u32 %v16782_v62, 16  ;;  %v4294_v5 = vshll.u32 %v16782_v62, 16  ;;  %5495 = vperm.xlu0 %16577, %v5377_v53   ;;  %v5390_v62 = vld [vmem:[%s18966_s1 + $0x108] sm:$0xff] }
 0x20a   : > { %v4293_v11 = vrot.slane %v4291_v4, 2  ;;  %v5392_v4 = vld [vmem:[%s18966_s1 + $0x118] sm:$0x3f] }
 0x20c   : > { %5505 = vperm.xlu0 %16577, %v5379_v6  }
 0x20e   : > { %14422 = vmatmul.mubr.bf16.gmra.mrb[28].mxu0 %v3724_v12  ;;  %v4296_v12 = vrot.slane %v4294_v5, 3  ;;  %v5391_v5 = vld [vmem:[%s18966_s1 + $0x110] sm:$0xff] }
 0x20f   : > { %14425 = vmatprep.mubr.bf16.mxu0 %v3726_v13  ;;  %v16784_v13 = vld [vmem:[%s18967_s2 + $0x218] sm:$0xff]  }
 0x210   : > { %v4297_v20 = vor.u32 %v4296_v12, %v4293_v11  ;;  %5515 = vperm.xlu0 %16577, %v5381_v16   ;;  %v16794_v11 = vld [vmem:[%s17182_s29 + $0x88] sm:$0xff]  }
 0x211   : > { %v14271_v23 = vpop.f32.mrb[44].mxu0  ;;  %v4363_v16 = vshrl.u32 %v16794_v11, 16 }
 0x212   : > { %v17690_v27 = vadd.f32 %v14271_v23, %v17572_v34  ;;  %v2221_v28 = vpop.f32.mrb[45].mxu0  ;;  %v16787_v23 = vld [vmem:[%s18967_s2 + $0x220] sm:$0xff]  }
 0x213   : > { %v17699_v32 = vadd.f32 %v2221_v28, %v17575_v51  ;;  %v14272_v33 = vpop.f32.mrb[46].mxu0  ;;  %v5374_v51 = vld [vmem:[%s18966_s1 + $0x88] sm:$0xff] }
 0x214   : > { %v2307_v39 = vadd.f32 %v14272_v33, %v2271_v24  ;;  %v2224_v34 = vpop.f32.mrb[47].mxu0  ;;  %5480 = vperm.xlu1 %16578, %v5374_v51   ;;  %v5384_v24 = vld [vmem:[%s18966_s1 + $0xd8] sm:$0xff]  ;;  %v4298_v33 = vsel %vm4227_vm4, %v4288_v17, %v4297_v20  ;;  %5525 = vperm.xlu0 %16577, %v5383_v25   ;;  %v4306_v51 = vor.u32 %v4305_v30, %v4302_v29 }
 0x215   : > { %v17705_v44 = vadd.f32 %v2224_v34, %v17582_v61  ;;  %v4276_v61 = vshll.u32 %v16779_v43, 16  ;;  %v16790_v34 = vld [vmem:[%s18967_s2 + $0x228] sm:$0xff]   ;;  %v5385_v43 = vld [vmem:[%s18966_s1 + $0xe0] sm:$0xff]  ;;  %v16796_v25 = vld [vmem:[%s17182_s29 + $0x98] sm:$0xff]  }
 0x216   : > { %2343 = vst [vmem:[#allocation3 + $0x118] sm:$0x3f] %v2307_v39  ;;  %14426 = vmatmul.mubr.bf16.gmra.mrb[56].mxu0 %v3728_v36  ;;  %v4311_v36 = vrot.slane %v4309_v21, 2  ;;  %v16788_v39 = vld [vmem:[%s17182_s29 + $0x68] sm:$0xff]   ;;  %v4307_v54 = vsel %vm4227_vm4, %v4297_v20, %v4306_v51  ;;  %v4359_v20 = vrot.slane %v4357_v14, 3  ;;  %v16795_v21 = vld [vmem:[%s17182_s29 + $0x90] sm:$0xff]  }
 0x217   : > { %14445 = vmatprep.mubr.bf16.mxu0 %v4244_v42  ;;  %v4278_v41 = vrot.slane %v4276_v61, 3  ;;  %v5386_v42 = vld [vmem:[%s18966_s1 + $0xe8] sm:$0xff]  ;;  %v4327_v48 = vshrl.u32 %v16788_v39, 16  ;;  %v4330_v49 = vshll.u32 %v16788_v39, 16  ;;  %v5388_v61 = vld [vmem:[%s18966_s1 + $0xf8] sm:$0xff]  ;;  %v4372_v29 = vshrl.u32 %v16795_v21, 16 }
 0x218   : > { %5490 = vperm.xlu1 %16578, %v5376_v52   ;;  %v4315_v47 = vor.u32 %v4314_v37, %v4311_v36  ;;  %5535 = vperm.xlu0 %16577, %v5385_v43   ;;  %v5387_v52 = vld [vmem:[%s18966_s1 + $0xf0] sm:$0xff]  ;;  %v4375_v30 = vshll.u32 %v16795_v21, 16  ;;  %v4384_v36 = vshll.u32 %v16796_v25, 16  ;;  %v17125_v14 = vmov 0.0  }
 0x219   : > { %v4279_v2 = vor.u32 %v4278_v41, %v4275_v38  ;;  %v16791_v38 = vld [vmem:[%s17182_s29 + $0x78] sm:$0xff]   ;;  %v4374_v39 = vrot.slane %v4372_v29, 2  ;;  %15533 = vmatprep.subr.bf16.mxu1 %v17125_v14  ;;  %14853 = vmatprep.mubr.msk.bf16.mxu1 %vm17126_vm6, %v17125_v14 }
 0x21a   : > { %v4316_v57 = vsel %vm4227_vm4, %v4306_v51, %v4315_v47  ;;  %v16797_v41 = vld [vmem:[%s18967_s2 + $0x238] sm:$0xff]  }
 0x21b   : > { %v4280_v10 = vsel %vm4227_vm4, %v4270_v0, %v4279_v2  ;;  %v4289_v28 = vsel %vm4227_vm4, %v4279_v2, %v4288_v17  ;;  %v4336_v0 = vshrl.u32 %v16789_v40, 16  ;;  %v4345_v2 = vshrl.u32 %v16791_v38, 16 }
 0x21c   : > { %5500 = vperm.xlu1 %16578, %v5378_v63   ;;  %5545 = vperm.xlu0 %16577, %v5387_v52   ;;  %v5389_v63 = vld [vmem:[%s18966_s1 + $0x100] sm:$0xff]  ;;  %v4366_v17 = vshll.u32 %v16794_v11, 16 }
 0x21d   : > { %v4338_v6 = vrot.slane %v4336_v0, 2  ;;  %v4347_v9 = vrot.slane %v4345_v2, 2 }
 0x21e   : > { %14446 = vmatmul.mubr.bf16.vlgmr.msra.gmra.mrb[0].mxu0 %v4253_v55  ;;  %v4320_v55 = vrot.slane %v4318_v45, 2  ;;  %v4386_v45 = vrot.slane %v4384_v36, 3  ;;  %v16812_v36 = vld [vmem:[%s17182_s29 + $0x78] sm:$0xff]  }
 0x21f   : > { %14482 = vmatpush3.bf16.msra.mxu0 %v17624_v26  ;;  %14449 = vmatprep.mubr.bf16.mxu0 %v4262_v58  ;;  %v5380_v26 = vld [vmem:[%s18966_s1 + $0xb8] sm:$0xff]  ;;  %v4329_v58 = vrot.slane %v4327_v48, 2 }
 0x220   : > { %14483 = vmatprep.subr.bf16.mxu0 %v16778_v60  ;;  %5510 = vperm.xlu1 %16578, %v5380_v26   ;;  %v4324_v53 = vor.u32 %v4323_v56, %v4320_v55  ;;  %v16799_v55 = vld [vmem:[%s17182_s29 + $0x10] sm:$0xf8]   ;;  %v16800_v56 = vld [vmem:[%s17182_s29 + $0x18] sm:$0xff]  }
 0x221   : > { %5555 = vperm.xlu0 %16577, %v5389_v63  }
 0x222   : > { %v4325_v26 = vsel %vm4227_vm4, %v4315_v47, %v4324_v53 }
 0x223   : > { %14484 = vmatpush3.bf16.msra.mxu0 %v16778_v60  ;;  %v4332_v60 = vrot.slane %v4330_v49, 3 }
 0x224   : > { %14485 = vmatprep.subr.bf16.mxu0 %v16781_v3  ;;  %5520 = vperm.xlu1 %16578, %v5382_v15  }
 0x225   : > { %v4333_v50 = vor.u32 %v4332_v60, %v4329_v58  ;;  %5565 = vperm.xlu0 %16577, %v5391_v5   ;;  %v4898_v58 = vrot.slane %v16800_v56, 3 }
 0x226   : > { %14450 = vmatmul.mubr.bf16.gmra.mrb[4].mxu0 %v4271_v7  ;;  %v4341_v7 = vrot.slane %v4339_v1, 3  ;;  %v16801_v1 = vld [vmem:[%s17182_s29 + $0x20] sm:$0xff]  }
 0x227   : > { %14453 = vmatprep.mubr.bf16.mxu0 %v4280_v10  ;;  %14486 = vmatpush3.bf16.msra.mxu0 %v16781_v3  ;;  %v4348_v3 = vshll.u32 %v16791_v38, 16  ;;  %v4334_v8 = vsel %vm4227_vm4, %v4324_v53, %v4333_v50  ;;  %v2936_v53 = vld [vmem:[#allocation3 + $0x118] sm:$0x3f] }
 0x228   : > { %14487 = vmatprep.subr.bf16.mxu0 %v16784_v13  ;;  %5530 = vperm.xlu1 %16578, %v5384_v24   ;;  %v4342_v12 = vor.u32 %v4341_v7, %v4338_v6  ;;  %v4368_v24 = vrot.slane %v4366_v17, 3  ;;  %v16803_v6 = vld [vmem:[%s17182_s29 + $0x30] sm:$0xff]  }
 0x229   : > { %v4350_v10 = vrot.slane %v4348_v3, 3  ;;  %v16807_v17 = vld [vmem:[%s17182_s29 + $0x50] sm:$0xff]  }
 0x22a   : > { %v4343_v18 = vsel %vm4227_vm4, %v4333_v50, %v4342_v12 }
 0x22b   : > { %14488 = vmatpush3.bf16.msra.mxu0 %v16784_v13  ;;  %v4354_v13 = vshrl.u32 %v16792_v59, 16  ;;  %v4351_v15 = vor.u32 %v4350_v10, %v4347_v9  ;;  %v16804_v59 = vld [vmem:[%s17182_s29 + $0x38] sm:$0xff]   ;;  %v16805_v10 = vld [vmem:[%s17182_s29 + $0x40] sm:$0xff]  }
 0x22c   : > { %14489 = vmatprep.subr.bf16.mxu0 %v16787_v23  ;;  %5540 = vperm.xlu1 %16578, %v5386_v42   ;;  %v16798_v42 = vld [vmem:[%s17182_s29 + $0xa0] ss:$0 sps:$4 sm:$0x33]   ;;  %v4906_v9 = vrot.slane %v16804_v59, 3  ;;  %v16828_v59 = vld [vmem:[%s18968_s3 + $0x30] sm:$0xff]  }
 0x22d   : > { %v4356_v19 = vrot.slane %v4354_v13, 2  ;;  %v4352_v22 = vsel %vm4227_vm4, %v4342_v12, %v4351_v15  ;;  %v4390_v47 = vshrl.u32 %v16798_v42, 16  ;;  %v4393_v48 = vshll.u32 %v16798_v42, 16  ;;  %v16806_v12 = vld [vmem:[%s17182_s29 + $0x48] sm:$0xff]   ;;  %v16813_v42 = vld [vmem:[%s17182_s29 + $0x80] sm:$0xff]  }
 0x22e   : > { %14454 = vmatmul.mubr.bf16.gmra.mrb[8].mxu0 %v4289_v28  ;;  %v4908_v13 = vrot.slane %v16805_v10, 3  ;;  %v16832_v10 = vld [vmem:[#allocation2 + $0x4] sm:$0xfe]  }
 0x22f   : > { %14457 = vmatprep.mubr.bf16.mxu0 %v4298_v33  ;;  %14490 = vmatpush3.bf16.msra.mxu0 %v16787_v23  ;;  %v4365_v23 = vrot.slane %v4363_v16, 2  ;;  %v4360_v28 = vor.u32 %v4359_v20, %v4356_v19  ;;  %v4381_v33 = vshrl.u32 %v16796_v25, 16  ;;  %v4395_v52 = vrot.slane %v4393_v48, 3  ;;  %v16808_v19 = vld [vmem:[%s17182_s29 + $0x58] sm:$0xff]   ;;  %v16810_v25 = vld [vmem:[%s17182_s29 + $0x68] sm:$0xff]   ;;  %v16815_v48 = vld [vmem:[%s17182_s29 + $0x90] sm:$0xff]  }
 0x230   : > { %14491 = vmatprep.subr.bf16.mxu0 %v16790_v34  ;;  %5550 = vperm.xlu1 %16578, %v5388_v61   ;;  %v4392_v61 = vrot.slane %v4390_v47, 2  ;;  %v4909_v16 = vsel %vm4896_vm5, %v4906_v9, %v4908_v13  ;;  %v4912_v20 = vrot.slane %v16807_v17, 3  ;;  %v4914_v21 = vrot.slane %v16808_v19, 3  ;;  %v16835_v17 = vld [vmem:[%s18968_s3 + $0xf8] sm:$0xff]  }
 0x231   : > { %v4369_v31 = vor.u32 %v4368_v24, %v4365_v23  ;;  %v4361_v37 = vsel %vm4227_vm4, %v4351_v15, %v4360_v28  ;;  %v4383_v51 = vrot.slane %v4381_v33, 2  ;;  %v4910_v15 = vrot.slane %v16806_v12, 3  ;;  %v16809_v23 = vld [vmem:[%s17182_s29 + $0x60] sm:$0xff]  }
 0x232   : > { %v4396_v40 = vor.u32 %v4395_v52, %v4392_v61  ;;  %v4915_v24 = vsel %vm4896_vm5, %v4912_v20, %v4914_v21  ;;  %v4918_v29 = vrot.slane %v16810_v25, 3  ;;  %v4928_v61 = vrot.slane %v16815_v48, 3 }
 0x233   : > { %14492 = vmatpush3.bf16.msra.mxu0 %v16790_v34  ;;  %v4377_v34 = vrot.slane %v4375_v30, 3  ;;  %v4370_v43 = vsel %vm4227_vm4, %v4360_v28, %v4369_v31  ;;  %v4387_v49 = vor.u32 %v4386_v45, %v4383_v51  ;;  %v4916_v28 = vrot.slane %v16809_v23, 3  ;;  %v16814_v51 = vld [vmem:[%s17182_s29 + $0x88] sm:$0xff]  }
 0x234   : > { %14493 = vmatprep.subr.bf16.mxu0 %v16793_v35  ;;  %5560 = vperm.xlu1 %16578, %v5390_v62   ;;  %v4924_v45 = vrot.slane %v16813_v42, 3  ;;  %v5961_v12 = vrot.slane %v16832_v10, 1 }
 0x235   : > { %v4378_v46 = vor.u32 %v4377_v34, %v4374_v39  ;;  %v4397_v0 = vsel %vm4227_vm4, %v4387_v49, %v4396_v40  ;;  %v4917_v30 = vsel %vm4896_vm5, %v4914_v21, %v4916_v28  ;;  %v4919_v33 = vsel %vm4896_vm5, %v4916_v28, %v4918_v29 }
 0x236   : > { %14458 = vmatmul.mubr.bf16.gmra.mrb[12].mxu0 %v4307_v54  ;;  %v4922_v39 = vrot.slane %v16812_v36, 3 }
 0x237   : > { %14461 = vmatprep.mubr.bf16.mxu0 %v4316_v57  ;;  %14494 = vmatpush3.bf16.msra.mxu0 %v16793_v35  ;;  %v4379_v35 = vsel %vm4227_vm4, %v4369_v31, %v4378_v46  ;;  %v4388_v54 = vsel %vm4227_vm4, %v4378_v46, %v4387_v49  ;;  %v4897_v57 = vrot.slane %v16799_v55, 3  ;;  %v16811_v31 = vld [vmem:[%s17182_s29 + $0x70] sm:$0xff]   ;;  %v4926_v46 = vrot.slane %v16814_v51, 3  ;;  %v16817_v55 = vld [vmem:[%s17182_s29 + $0xa0] ss:$0 sps:$4 sm:$0x33]  }
 0x238   : > { %14495 = vmatprep.subr.bf16.mxu0 %v16797_v41  ;;  %5570 = vperm.xlu1 %16578, %v5392_v4   ;;  %v16802_v4 = vld [vmem:[%s17182_s29 + $0x28] sm:$0xff]   ;;  %v4925_v47 = vsel %vm4896_vm5, %v4922_v39, %v4924_v45  ;;  %v4932_v40 = vrot.slane %v16817_v55, 3 }
 0x239   : > { %v4899_v3 = vsel %vm4896_vm5, %v4897_v57, %v4898_v58  ;;  %v4902_v5 = vrot.slane %v16802_v4, 3  ;;  %v4927_v49 = vsel %vm4896_vm5, %v4924_v45, %v4926_v46  ;;  %v16821_v4 = vld [vmem:[%s18968_s3 + $0xc0] sm:$0xff]  }
 0x23a   : > { %15541 = vmatpush3.bf16.msra.mxu1 %v16821_v4 }
 0x23b   : > { %14496 = vmatpush3.bf16.msra.mxu0 %v16797_v41  ;;  %15534 = vmatprep.subr.bf16.mxu1 %v17125_v14 }
 0x23c   : > { %14533 = vmatprep.subr.bf16.mxu0 %v17125_v14 }
 0x23e   : > { %14462 = vmatmul.mubr.bf16.gmra.mrb[16].mxu0 %v4325_v26 }
 0x23f   : > { %14465 = vmatprep.mubr.bf16.mxu0 %v4334_v8  ;;  %v4904_v8 = vrot.slane %v16803_v6, 3  ;;  %v16826_v6 = vld [vmem:[%s18968_s3 + $0x28] sm:$0xff]  }
 0x241   : > { %v4907_v11 = vsel %vm4896_vm5, %v4904_v8, %v4906_v9  ;;  %v16830_v9 = vld [vmem:[%s18968_s3 + $0x38] sm:$0xff]  }
 0x246   : > { %14466 = vmatmul.mubr.bf16.gmra.mrb[20].mxu0 %v4343_v18  ;;  %v4911_v18 = vsel %vm4896_vm5, %v4908_v13, %v4910_v15 }
 0x247   : > { %14469 = vmatprep.mubr.bf16.mxu0 %v4352_v22  ;;  %v4913_v22 = vsel %vm4896_vm5, %v4910_v15, %v4912_v20  ;;  %v16834_v15 = vld [vmem:[%s18968_s3 + $0xf0] sm:$0xff]  }
 0x24e   : > { %14470 = vmatmul.mubr.bf16.gmra.mrb[24].mxu0 %v4361_v37  ;;  %v4920_v37 = vrot.slane %v16811_v31, 3 }
 0x24f   : > { %14473 = vmatprep.mubr.bf16.mxu0 %v4370_v43 }
 0x250   : > { %v4921_v34 = vsel %vm4896_vm5, %v4918_v29, %v4920_v37  ;;  %v4923_v43 = vsel %vm4896_vm5, %v4920_v37, %v4922_v39  ;;  %v5396_v29 = vpop.permute.xlu0 %5395 }
 0x254   : > { %v5401_v31 = vpop.permute.xlu0 %5400 }
 0x256   : > { %14474 = vmatmul.mubr.bf16.gmra.mrb[28].mxu0 %v4379_v35  ;;  %v16816_v35 = vld [vmem:[%s17182_s29 + $0x98] sm:$0xff]  }
 0x257   : > { %14477 = vmatprep.mubr.bf16.mxu0 %v4388_v54  ;;  %v4930_v52 = vrot.slane %v16816_v35, 3  ;;  %v4929_v54 = vsel %vm4896_vm5, %v4926_v46, %v4928_v61 }
 0x258   : > { %v5416_v36 = vpop.permute.xlu0 %5415 }
 0x259   : > { %v14323_v60 = vpop.f32.mrb[48].mxu0  ;;  %v4931_v56 = vsel %vm4896_vm5, %v4928_v61, %v4930_v52 }
 0x25a   : > { %v17821_v38 = vadd.f32 %v14323_v60, %v17690_v27  ;;  %v2886_v41 = vpop.f32.mrb[49].mxu0 }
 0x25b   : > { %v17824_v62 = vadd.f32 %v2886_v41, %v17699_v32  ;;  %v14324_v63 = vpop.f32.mrb[50].mxu0  ;;  %v4900_v32 = vrot.slane %v16801_v1, 3 }
 0x25c   : > { %v2972_v50 = vadd.f32 %v14324_v63, %v2936_v53  ;;  %v2889_v2 = vpop.f32.mrb[51].mxu0  ;;  %v5426_v39 = vpop.permute.xlu0 %5425 }
 0x25d   : > { %v17831_v27 = vadd.f32 %v2889_v2, %v17705_v44  ;;  %v4901_v26 = vsel %vm4896_vm5, %v4898_v58, %v4900_v32  ;;  %v4903_v7 = vsel %vm4896_vm5, %v4900_v32, %v4902_v5  ;;  %v4905_v44 = vsel %vm4896_vm5, %v4902_v5, %v4904_v8  ;;  %v16823_v32 = vld [vmem:[%s18968_s3 + $0xc8] sm:$0xff]   ;;  %v16824_v5 = vld [vmem:[%s18968_s3 + $0x20] sm:$0xff]  }
 0x25e   : > { %3008 = vst [vmem:[#allocation3 + $0x118] sm:$0x3f] %v2972_v50  ;;  %14478 = vmatmul.mubr.bf16.gmra.mrb[60].mxu0 %v4397_v0  ;;  %v4933_v0 = vsel %vm4896_vm5, %v4930_v52, %v4932_v40  ;;  %15542 = vmatpush3.bf16.msra.mxu1 %v16823_v32  ;;  %v16829_v8 = vld [vmem:[%s18968_s3 + $0xe0] sm:$0xff]  }
 0x25f   : > { %14497 = vmatprep.mubr.bf16.mxu0 %v4899_v3  ;;  %v16820_v3 = vld [vmem:[%s18968_s3 + $0x10] sm:$0xff]   ;;  %15535 = vmatprep.subr.bf16.mxu1 %v17125_v14 }
 0x260   : > { %v17955_v42 = vpop.permute.xlu0 %5435 }
 0x265   : > { %v3472_v53 = vld [vmem:[#allocation3 + $0x118] sm:$0x3f] }
 0x266   : > { %14498 = vmatmul.mubr.bf16.vlgmr.msra.gmra.mrb[0].mxu0 %v4901_v26  ;;  %v16825_v26 = vld [vmem:[%s18968_s3 + $0xd0] sm:$0xff]  }
 0x267   : > { %14501 = vmatprep.mubr.bf16.mxu0 %v4903_v7  ;;  %15543 = vmatpush3.bf16.msra.mxu1 %v16825_v26  ;;  %v16827_v7 = vld [vmem:[%s18968_s3 + $0xd8] sm:$0xff]  }
 0x268   : > { %15536 = vmatprep.subr.bf16.mxu1 %v17125_v14  ;;  %v5446_v52 = vpop.permute.xlu0 %5445 }
 0x26b   : > { %15544 = vmatpush3.bf16.msra.mxu1 %v16827_v7 }
 0x26c   : > { %15537 = vmatprep.subr.bf16.mxu1 %v17125_v14 }
 0x26e   : > { %14502 = vmatmul.mubr.bf16.gmra.mrb[4].mxu0 %v4905_v44  ;;  %v16831_v44 = vld [vmem:[%s18968_s3 + $0xe8] sm:$0xff]  }
 0x26f   : > { %14505 = vmatprep.mubr.bf16.mxu0 %v4907_v11  ;;  %15545 = vmatpush3.bf16.msra.mxu1 %v16829_v8  ;;  %v17930_v11 = vld [vmem:[#allocation2 + $0xc] sm:$0xff]  }
 0x270   : > { %15538 = vmatprep.subr.bf16.mxu1 %v17125_v14  ;;  %v5962_v13 = vrot.slane %v17930_v11, 1  ;;  %v16844_v11 = vld [vmem:[%s18968_s3 + $0x108] sm:$0xff]  }
 0x273   : > { %15546 = vmatpush3.bf16.msra.mxu1 %v16831_v44 }
 0x274   : > { %15539 = vmatprep.subr.bf16.mxu1 %v17125_v14 }
 0x276   : > { %14506 = vmatmul.mubr.bf16.gmra.mrb[8].mxu0 %v4909_v16  ;;  %v5963_v16 = vsel %vm1428_vm1, %v5961_v12, %v5962_v13 }
 0x277   : > { %14509 = vmatprep.mubr.bf16.mxu0 %v4911_v18  ;;  %15547 = vmatpush3.bf16.msra.mxu1 %v16834_v15 }
 0x278   : > { %15540 = vmatprep.subr.bf16.mxu1 %v17125_v14 }
 0x27b   : > { %15548 = vmatpush3.bf16.msra.mxu1 %v16835_v17 }
 0x27c   : > { %14933 = vmatprep.subr.bf16.mxu1 %v17125_v14 }
 0x27e   : > { %14510 = vmatmul.mubr.bf16.gmra.mrb[12].mxu0 %v4913_v22 }
 0x27f   : > { %14513 = vmatprep.mubr.bf16.mxu0 %v4915_v24 }
 0x286   : > { %14514 = vmatmul.mubr.bf16.gmra.mrb[16].mxu0 %v4917_v30  ;;  %v5406_v30 = vpop.permute.xlu1 %5405 }
 0x287   : > { %14517 = vmatprep.mubr.bf16.mxu0 %v4919_v33 }
 0x28a   : > { %v5411_v33 = vpop.permute.xlu1 %5410 }
 0x28e   : > { %14518 = vmatmul.mubr.bf16.gmra.mrb[20].mxu0 %v4921_v34  ;;  %v5421_v37 = vpop.permute.xlu1 %5420 }
 0x28f   : > { %14521 = vmatprep.mubr.bf16.mxu0 %v4923_v43 }
 0x292   : > { %v5431_v34 = vpop.permute.xlu1 %5430 }
 0x296   : > { %14522 = vmatmul.mubr.bf16.gmra.mrb[24].mxu0 %v4925_v47  ;;  %v17959_v46 = vpop.permute.xlu1 %5440 }
 0x297   : > { %14525 = vmatprep.mubr.bf16.mxu0 %v4927_v49 }
 0x29a   : > { %v5451_v55 = vpop.permute.xlu1 %5450 }
 0x29e   : > { %14526 = vmatmul.mubr.bf16.gmra.mrb[28].mxu0 %v4929_v54 }
 0x29f   : > { %14529 = vmatprep.mubr.bf16.mxu0 %v4931_v56 }
 0x2a1   : > { %v14375_v57 = vpop.f32.mrb[52].mxu0 }
 0x2a2   : > { %v17867_v58 = vadd.f32 %v14375_v57, %v17821_v38  ;;  %v3422_v60 = vpop.f32.mrb[53].mxu0  ;;  %v16818_v38 = vld [vmem:[%s18968_s3] sm:$0xff]  }
 0x2a3   : > { %v17870_v41 = vadd.f32 %v3422_v60, %v17824_v62  ;;  %v14376_v63 = vpop.f32.mrb[54].mxu0  ;;  %14534 = vmatpush3.bf16.msra.mxu0 %v16818_v38  ;;  %v16819_v62 = vld [vmem:[%s18968_s3 + $0x8] sm:$0xff]  }
 0x2a4   : > { %v3508_v1 = vadd.f32 %v14376_v63, %v3472_v53  ;;  %v3425_v50 = vpop.f32.mrb[55].mxu0  ;;  %14535 = vmatprep.subr.bf16.mxu0 %v17125_v14 }
 0x2a5   : > { %v17874_v2 = vadd.f32 %v3425_v50, %v17831_v27  ;;  %v16822_v27 = vld [vmem:[%s18968_s3 + $0x18] sm:$0xff]  }
 0x2a6   : > { %3544 = vst [vmem:[#allocation3 + $0x118] sm:$0x3f] %v3508_v1  ;;  %14530 = vmatmul.mubr.bf16.gmra.mrb[64].mxu0 %v4933_v0 }
 0x2a7   : > { %14536 = vmatpush3.bf16.msra.mxu0 %v16819_v62  ;;  %14549 = vmatprep.mubr.msk.bf16.mxu0 %vm17126_vm6, %v17125_v14 }
 0x2a8   : > { %14537 = vmatprep.subr.bf16.mxu0 %v17125_v14 }
 0x2ab   : > { %14538 = vmatpush3.bf16.msra.mxu0 %v16820_v3 }
 0x2ac   : > { %14539 = vmatprep.subr.bf16.mxu0 %v17125_v14 }
 0x2ad   : > { %v4007_v23 = vld [vmem:[#allocation3 + $0x118] sm:$0x3f] }
 0x2af   : > { %14540 = vmatpush3.bf16.msra.mxu0 %v16822_v27 }
 0x2b0   : > { %14541 = vmatprep.subr.bf16.mxu0 %v17125_v14 }
 0x2b3   : > { %14542 = vmatpush3.bf16.msra.mxu0 %v16824_v5 }
 0x2b4   : > { %14543 = vmatprep.subr.bf16.mxu0 %v17125_v14 }
 0x2b7   : > { %14544 = vmatpush3.bf16.msra.mxu0 %v16826_v6 }
 0x2b8   : > { %14545 = vmatprep.subr.bf16.mxu0 %v17125_v14 }
 0x2bb   : > { %14546 = vmatpush3.bf16.msra.mxu0 %v16828_v59 }
 0x2bc   : > { %14547 = vmatprep.subr.bf16.mxu0 %v17125_v14 }
 0x2bf   : > { %14548 = vmatpush3.bf16.msra.mxu0 %v16830_v9 }
 0x2c0   : > { %14633 = vmatprep.subr.bf16.mxu0 %v17125_v14 }
 0x2c2   : > { %14550 = vmatmul.mubr.bf16.vlgmr.msra.gmra.mrb[68].mxu0 %v5963_v16 }
 0x2c3   : > { %14553 = vmatprep.mubr.msk.bf16.mxu0 %vm17126_vm6, %v17125_v14 }
 0x2e9   : > { %v14427_v18 = vpop.f32.mrb[56].mxu0 }
 0x2ea   : > { %v4042_v19 = vadd.f32 %v14427_v18, %v17867_v58  ;;  %v3957_v20 = vpop.f32.mrb[57].mxu0  ;;  %v17965_v58 = vpop.permute.xlu0 %5455 }
 0x2eb   : > { %v4040_v21 = vadd.f32 %v3957_v20, %v17870_v41  ;;  %v14428_v22 = vpop.f32.mrb[58].mxu0 }
 0x2ec   : > { %v4043_v24 = vadd.f32 %v14428_v22, %v4007_v23  ;;  %v3960_v25 = vpop.f32.mrb[59].mxu0 }
 0x2ed   : > { %v4041_v28 = vadd.f32 %v3960_v25, %v17874_v2  ;;  %v17967_v2 = vpop.permute.xlu1 %5460 }
 0x2ee   : > { %4079 = vst [vmem:[#allocation3 + $0x118] sm:$0x3f] %v4043_v24  ;;  %v17969_v4 = vpop.permute.xlu0 %5465 }
 0x2f1   : > { %v17971_v9 = vpop.permute.xlu1 %5470 }
 0x2f2   : > { %v17973_v15 = vpop.permute.xlu0 %5475 }
 0x2f5   : > { %v4676_v49 = vld [vmem:[#allocation3 + $0x118] sm:$0x3f]  ;;  %v17977_v25 = vpop.permute.xlu1 %5480 }
 0x331   : > { %v14479_v43 = vpop.f32.mrb[60].mxu0 }
 0x332   : > { %v17957_v51 = vadd.f32 %v14479_v43, %v4042_v19  ;;  %v4626_v45 = vpop.f32.mrb[61].mxu0  ;;  %v16839_v43 = vld [vmem:[%s18968_s3 + $0x100] sm:$0xff]  }
 0x333   : > { %v17961_v47 = vadd.f32 %v4626_v45, %v4040_v21  ;;  %v14480_v48 = vpop.f32.mrb[62].mxu0 }
 0x334   : > { %v4712_v35 = vadd.f32 %v14480_v48, %v4676_v49  ;;  %v4629_v61 = vpop.f32.mrb[63].mxu0 }
 0x335   : > { %v17963_v54 = vadd.f32 %v4629_v61, %v4041_v28 }
 0x336   : > { %4748 = vst [vmem:[#allocation3 + $0x118] sm:$0x3f] %v4712_v35 }
 0x339   : > { %v14499_v56 = vpop.f32.mrb[0].mxu0 }
 0x33a   : > { %v5323_v40 = vmax.f32 %v14499_v56, 0.0  ;;  %v5034_v57 = vpop.f32.mrb[1].mxu0 }
 0x33b   : > { %v5321_v60 = vmax.f32 %v5034_v57, 0.0  ;;  %v14500_v41 = vpop.f32.mrb[2].mxu0 }
 0x33c   : > { %v5324_v63 = vmax.f32 %v14500_v41, 0.0  ;;  %v5037_v53 = vpop.f32.mrb[3].mxu0  ;;  %v5575_v1 = vmul.f32 %v5406_v30, %v5323_v40 }
 0x33d   : > { %v5322_v0 = vmax.f32 %v5037_v53, 0.0  ;;  %v5573_v38 = vmul.f32 %v5396_v29, %v5321_v60 }
 0x33e   : > { %v5576_v50 = vmul.f32 %v5411_v33, %v5324_v63 }
 0x33f   : > { %v5574_v62 = vmul.f32 %v5401_v31, %v5322_v0 }
 0x340   : > { %v13328_v3 = vpack.c.bf16 %v5576_v50, %v5575_v1 }
 0x341   : > { %v13323_v27 = vpack.c.bf16 %v5574_v62, %v5573_v38  ;;  %v14503_v32 = vpop.f32.mrb[4].mxu0 }
 0x342   : > { %13506 = vst [vmem:[#allocation2 + $0x20] sm:$0xff] %v13328_v3   ;;  %v5327_v5 = vmax.f32 %v14503_v32, 0.0  ;;  %v5050_v26 = vpop.f32.mrb[5].mxu0 }
 0x343   : > { %13505 = vst [vmem:[#allocation2 + $0x18] sm:$0xff] %v13323_v27   ;;  %v5325_v6 = vmax.f32 %v5050_v26, 0.0  ;;  %v14504_v7 = vpop.f32.mrb[6].mxu0  ;;  %v16851_v27 = vld [vmem:[%s18968_s3 + $0x110] sm:$0xff]  }
 0x344   : > { %v5328_v59 = vmax.f32 %v14504_v7, 0.0  ;;  %v5053_v8 = vpop.f32.mrb[7].mxu0  ;;  %v5579_v10 = vmul.f32 %v5426_v39, %v5327_v5  ;;  %v16879_v5 = vld [vmem:[%s18968_s3 + $0x48] sm:$0xff]  }
 0x345   : > { %v5326_v44 = vmax.f32 %v5053_v8, 0.0  ;;  %v5577_v16 = vmul.f32 %v5416_v36, %v5325_v6 }
 0x346   : > { %v5580_v12 = vmul.f32 %v5431_v34, %v5328_v59 }
 0x347   : > { %v5578_v17 = vmul.f32 %v5421_v37, %v5326_v44  ;;  %v17980_v37 = vpop.permute.xlu0 %5485 }
 0x348   : > { %v13338_v18 = vpack.c.bf16 %v5580_v12, %v5579_v10 }
 0x349   : > { %v13333_v19 = vpack.c.bf16 %v5578_v17, %v5577_v16  ;;  %v14507_v20 = vpop.f32.mrb[8].mxu0 }
 0x34a   : > { %13508 = vst [vmem:[#allocation2 + $0x30] sm:$0xff] %v13338_v18   ;;  %v5331_v21 = vmax.f32 %v14507_v20, 0.0  ;;  %v5066_v22 = vpop.f32.mrb[9].mxu0  ;;  %v16836_v23 = vld [vmem:[#allocation2 + $0x14] sm:$0xff]   ;;  %v16838_v39 = vld [vmem:[#allocation2 + $0x1c] sm:$0xff]  }
 0x34b   : > { %v17975_v24 = vld [vmem:[#allocation2 + $0x14] sm:$0xff]   ;;  %13507 = vst [vmem:[#allocation2 + $0x28] sm:$0xff] %v13333_v19   ;;  %v5329_v28 = vmax.f32 %v5066_v22, 0.0  ;;  %v14508_v29 = vpop.f32.mrb[10].mxu0  ;;  %v5964_v33 = vrot.slane %v16836_v23, 1  ;;  %v7811_v35 = vrot.slane %v16838_v39, 2  ;;  %v18010_v0 = vpop.permute.xlu0 %5495 }
 0x34c   : > { %v5332_v30 = vmax.f32 %v14508_v29, 0.0  ;;  %v5069_v31 = vpop.f32.mrb[11].mxu0  ;;  %v7809_v36 = vrot.slane %v17975_v24, 2  ;;  %v5583_v45 = vmul.f32 %v5446_v52, %v5331_v21  ;;  %v17988_v61 = vld [vmem:[#allocation2 + $0x1c] sm:$0xff]  }
 0x34d   : > { %v5330_v34 = vmax.f32 %v5069_v31, 0.0  ;;  %v5965_v49 = vsel %vm1428_vm1, %v5962_v13, %v5964_v33  ;;  %v5581_v56 = vmul.f32 %v17955_v42, %v5329_v28  ;;  %v18000_v13 = vpop.permute.xlu1 %5490  ;;  %v16878_v42 = vld [vmem:[%s18968_s3 + $0x40] sm:$0xff]   ;;  %v5966_v63 = vrot.slane %v17988_v61, 1  ;;  %v16856_v21 = vld [vmem:[%s18968_s3 + $0x118] sm:$0xff]  }
 0x34e   : > { %v5584_v48 = vmul.f32 %v5451_v55, %v5332_v30  ;;  %14554 = vmatmul.mubr.bf16.gmra.mrb[72].mxu0 %v5965_v49  ;;  %v7812_v60 = vsel %vm3156_vm3, %v7809_v36, %v7811_v35  ;;  %v16863_v31 = vld [vmem:[%s18968_s3 + $0x120] sm:$0xff]  }
 0x34f   : > { %v5582_v40 = vmul.f32 %v17959_v46, %v5330_v34  ;;  %14557 = vmatprep.mubr.msk.bf16.mxu0 %vm17126_vm6, %v17125_v14  ;;  %14854 = vmatmul.mubr.bf16.vlgmr.msra.gmra.mrb[0].mxu1 %v7812_v60  ;;  %v5967_v7 = vsel %vm1428_vm1, %v5964_v33, %v5966_v63  ;;  %v16883_v34 = vld [vmem:[%s18968_s3 + $0x58] sm:$0xff]  }
 0x350   : > { %v13348_v57 = vpack.c.bf16 %v5584_v48, %v5583_v45  ;;  %14934 = vmatpush3.bf16.msra.mxu1 %v16839_v43  ;;  %14857 = vmatprep.mubr.msk.bf16.mxu1 %vm17126_vm6, %v17125_v14 }
 0x351   : > { %v13343_v52 = vpack.c.bf16 %v5582_v40, %v5581_v56  ;;  %v14511_v55 = vpop.f32.mrb[12].mxu0  ;;  %14935 = vmatprep.subr.bf16.mxu1 %v17125_v14  ;;  %14634 = vmatpush3.bf16.msra.mxu0 %v16878_v42  ;;  %v18027_v44 = vpop.permute.xlu1 %5500 }
 0x352   : > { %13510 = vst [vmem:[#allocation2 + $0x40] sm:$0xff] %v13348_v57   ;;  %v5335_v46 = vmax.f32 %v14511_v55, 0.0  ;;  %v5082_v41 = vpop.f32.mrb[13].mxu0  ;;  %v18008_v53 = vld [vmem:[#allocation2 + $0x24] sm:$0xff]   ;;  %14635 = vmatprep.subr.bf16.mxu0 %v17125_v14  ;;  %v18060_v49 = vld [vmem:[#allocation2 + $0x2c] sm:$0xff]  }
 0x353   : > { %13509 = vst [vmem:[#allocation2 + $0x38] sm:$0xff] %v13343_v52   ;;  %v5333_v1 = vmax.f32 %v5082_v41, 0.0  ;;  %v14512_v50 = vpop.f32.mrb[14].mxu0  ;;  %v7813_v3 = vrot.slane %v18008_v53, 2  ;;  %v18025_v8 = vld [vmem:[#allocation2 + $0x24] sm:$0xff]   ;;  %v5970_v52 = vrot.slane %v18060_v49, 1 }
 0x354   : > { %v5336_v38 = vmax.f32 %v14512_v50, 0.0  ;;  %v5085_v62 = vpop.f32.mrb[15].mxu0  ;;  %v5587_v26 = vmul.f32 %v17969_v4, %v5335_v46  ;;  %14936 = vmatpush3.bf16.msra.mxu1 %v16844_v11  ;;  %v18034_v4 = vld [vmem:[#allocation2 + $0x2c] sm:$0xff]   ;;  %v5968_v20 = vrot.slane %v18025_v8, 1 }
 0x355   : > { %v5334_v32 = vmax.f32 %v5085_v62, 0.0  ;;  %v7814_v59 = vsel %vm3156_vm3, %v7811_v35, %v7813_v3  ;;  %v5585_v10 = vmul.f32 %v17965_v58, %v5333_v1  ;;  %14937 = vmatprep.subr.bf16.mxu1 %v17125_v14  ;;  %14636 = vmatpush3.bf16.msra.mxu0 %v16879_v5  ;;  %v16882_v58 = vld [vmem:[%s18968_s3 + $0x50] sm:$0xff]   ;;  %v7815_v30 = vrot.slane %v18034_v4, 2  ;;  %v5511_v33 = vpop.permute.xlu1 %5510  ;;  %v16868_v55 = vld [vmem:[%s18968_s3 + $0x128] sm:$0xff]  }
 0x356   : > { %v5588_v6 = vmul.f32 %v17971_v9, %v5336_v38  ;;  %14558 = vmatmul.mubr.bf16.gmra.mrb[76].mxu0 %v5967_v7  ;;  %v18036_v9 = vpop.permute.xlu0 %5505  ;;  %14637 = vmatprep.subr.bf16.mxu0 %v17125_v14  ;;  %v5969_v48 = vsel %vm1428_vm1, %v5966_v63, %v5968_v20  ;;  %v16875_v50 = vld [vmem:[%s18968_s3 + $0x130] sm:$0xff]   ;;  %v5971_v5 = vsel %vm1428_vm1, %v5968_v20, %v5970_v52 }
 0x357   : > { %v5586_v12 = vmul.f32 %v17967_v2, %v5334_v32  ;;  %14561 = vmatprep.mubr.msk.bf16.mxu0 %vm17126_vm6, %v17125_v14  ;;  %14858 = vmatmul.mubr.bf16.gmra.mrb[4].mxu1 %v7814_v59  ;;  %v7816_v57 = vsel %vm3156_vm3, %v7813_v3, %v7815_v30  ;;  %v16888_v3 = vld [vmem:[%s18968_s3 + $0x68] sm:$0xff]  }
 0x358   : > { %v13358_v16 = vpack.c.bf16 %v5588_v6, %v5587_v26  ;;  %14861 = vmatprep.mubr.msk.bf16.mxu1 %vm17126_vm6, %v17125_v14  ;;  %14938 = vmatpush3.bf16.msra.mxu1 %v16851_v27 }
 0x359   : > { %v13353_v17 = vpack.c.bf16 %v5586_v12, %v5585_v10  ;;  %v14515_v18 = vpop.f32.mrb[16].mxu0  ;;  %14939 = vmatprep.subr.bf16.mxu1 %v17125_v14  ;;  %14638 = vmatpush3.bf16.msra.mxu0 %v16882_v58  ;;  %v5521_v42 = vpop.permute.xlu1 %5520 }
 0x35a   : > { %13512 = vst [vmem:[#allocation2 + $0x50] sm:$0xff] %v13358_v16   ;;  %v5339_v2 = vmax.f32 %v14515_v18, 0.0  ;;  %v5098_v19 = vpop.f32.mrb[17].mxu0  ;;  %14639 = vmatprep.subr.bf16.mxu0 %v17125_v14  ;;  %v18062_v35 = vpop.permute.xlu0 %5515  ;;  %v18093_v26 = vld [vmem:[#allocation2 + $0x34] sm:$0xff]   ;;  %v18101_v10 = vld [vmem:[#allocation2 + $0x3c] sm:$0xff]  }
 0x35b   : > { %13511 = vst [vmem:[#allocation2 + $0x48] sm:$0xff] %v13353_v17   ;;  %v5337_v22 = vmax.f32 %v5098_v19, 0.0  ;;  %v14516_v23 = vpop.f32.mrb[18].mxu0  ;;  %v5972_v17 = vrot.slane %v18093_v26, 1  ;;  %v16884_v18 = vld [vmem:[%s18968_s3 + $0x138] sm:$0xff]  }
 0x35c   : > { %v5340_v28 = vmax.f32 %v14516_v23, 0.0  ;;  %v5101_v29 = vpop.f32.mrb[19].mxu0  ;;  %v5591_v43 = vmul.f32 %v17980_v37, %v5339_v2  ;;  %14940 = vmatpush3.bf16.msra.mxu1 %v16856_v21  ;;  %v18070_v37 = vld [vmem:[#allocation2 + $0x34] sm:$0xff]  }
 0x35d   : > { %v5338_v39 = vmax.f32 %v5101_v29, 0.0  ;;  %v5589_v61 = vmul.f32 %v17973_v15, %v5337_v22  ;;  %14941 = vmatprep.subr.bf16.mxu1 %v17125_v14  ;;  %14640 = vmatpush3.bf16.msra.mxu0 %v16883_v34  ;;  %v16887_v15 = vld [vmem:[%s18968_s3 + $0x60] sm:$0xff]   ;;  %v7817_v1 = vrot.slane %v18070_v37, 2  ;;  %v5531_v12 = vpop.permute.xlu1 %5530  ;;  %v7819_v22 = vrot.slane %v18101_v10, 2 }
 0x35e   : > { %v5592_v45 = vmul.f32 %v18000_v13, %v5340_v28  ;;  %14562 = vmatmul.mubr.bf16.gmra.mrb[80].mxu0 %v5969_v48  ;;  %14641 = vmatprep.subr.bf16.mxu0 %v17125_v14  ;;  %v5526_v38 = vpop.permute.xlu0 %5525  ;;  %v16890_v28 = vld [vmem:[%s18968_s3 + $0x78] sm:$0xff]  }
 0x35f   : > { %v5590_v56 = vmul.f32 %v17977_v25, %v5338_v39  ;;  %14565 = vmatprep.mubr.msk.bf16.mxu0 %vm17126_vm6, %v17125_v14  ;;  %14862 = vmatmul.mubr.bf16.gmra.mrb[8].mxu1 %v7816_v57  ;;  %v7818_v8 = vsel %vm3156_vm3, %v7815_v30, %v7817_v1  ;;  %v7820_v48 = vsel %vm3156_vm3, %v7817_v1, %v7819_v22 }
 0x360   : > { %v13368_v40 = vpack.c.bf16 %v5592_v45, %v5591_v43  ;;  %14865 = vmatprep.mubr.msk.bf16.mxu1 %vm17126_vm6, %v17125_v14  ;;  %14942 = vmatpush3.bf16.msra.mxu1 %v16863_v31  ;;  %v5973_v31 = vsel %vm1428_vm1, %v5970_v52, %v5972_v17 }
 0x361   : > { %v13363_v60 = vpack.c.bf16 %v5590_v56, %v5589_v61  ;;  %v14519_v11 = vpop.f32.mrb[20].mxu0  ;;  %14943 = vmatprep.subr.bf16.mxu1 %v17125_v14  ;;  %14642 = vmatpush3.bf16.msra.mxu0 %v16887_v15  ;;  %v5541_v39 = vpop.permute.xlu1 %5540 }
 0x362   : > { %13514 = vst [vmem:[#allocation2 + $0x60] sm:$0xff] %v13368_v40   ;;  %v5343_v25 = vmax.f32 %v14519_v11, 0.0  ;;  %v5114_v13 = vpop.f32.mrb[21].mxu0  ;;  %14643 = vmatprep.subr.bf16.mxu0 %v17125_v14  ;;  %v5536_v58 = vpop.permute.xlu0 %5535  ;;  %v16850_v49 = vld [vmem:[#allocation2 + $0x44] sm:$0xff]  }
 0x363   : > { %13513 = vst [vmem:[#allocation2 + $0x58] sm:$0xff] %v13363_v60   ;;  %v5341_v46 = vmax.f32 %v5114_v13, 0.0  ;;  %v14520_v41 = vpop.f32.mrb[22].mxu0  ;;  %v7821_v13 = vrot.slane %v16850_v49, 2 }
 0x364   : > { %v5344_v63 = vmax.f32 %v14520_v41, 0.0  ;;  %v5117_v53 = vpop.f32.mrb[23].mxu0  ;;  %v5595_v27 = vmul.f32 %v18036_v9, %v5343_v25  ;;  %14944 = vmatpush3.bf16.msra.mxu1 %v16868_v55 }
 0x365   : > { %v5342_v62 = vmax.f32 %v5117_v53, 0.0  ;;  %v5593_v6 = vmul.f32 %v18010_v0, %v5341_v46  ;;  %14945 = vmatprep.subr.bf16.mxu1 %v17125_v14  ;;  %14644 = vmatpush3.bf16.msra.mxu0 %v16888_v3  ;;  %v16889_v0 = vld [vmem:[%s18968_s3 + $0x70] sm:$0xff]   ;;  %v5551_v52 = vpop.permute.xlu1 %5550 }
 0x366   : > { %v5596_v32 = vmul.f32 %v5511_v33, %v5344_v63  ;;  %14566 = vmatmul.mubr.bf16.gmra.mrb[84].mxu0 %v5971_v5  ;;  %14645 = vmatprep.subr.bf16.mxu0 %v17125_v14  ;;  %v18120_v33 = vld [vmem:[#allocation2 + $0x3c] sm:$0xff]   ;;  %v5546_v61 = vpop.permute.xlu0 %5545  ;;  %v16852_v63 = vld [vmem:[#allocation2 + $0x44] sm:$0xff]   ;;  %v16853_v3 = vld [vmem:[#allocation2 + $0x4c] sm:$0xff]  }
 0x367   : > { %v5594_v7 = vmul.f32 %v18027_v44, %v5342_v62  ;;  %14569 = vmatprep.mubr.msk.bf16.mxu0 %vm17126_vm6, %v17125_v14  ;;  %14866 = vmatmul.mubr.bf16.gmra.mrb[12].mxu1 %v7818_v8  ;;  %v5974_v37 = vrot.slane %v18120_v33, 1  ;;  %v7822_v62 = vsel %vm3156_vm3, %v7819_v22, %v7821_v13  ;;  %v5212_v8 = vld [vmem:[#allocation3 + $0x118] sm:$0x3f] }
 0x368   : > { %v13378_v59 = vpack.c.bf16 %v5596_v32, %v5595_v27  ;;  %14869 = vmatprep.mubr.msk.bf16.mxu1 %vm17126_vm6, %v17125_v14  ;;  %14946 = vmatpush3.bf16.msra.mxu1 %v16875_v50 }
 0x369   : > { %v13373_v16 = vpack.c.bf16 %v5594_v7, %v5593_v6  ;;  %v14523_v4 = vpop.f32.mrb[24].mxu0  ;;  %14947 = vmatprep.subr.bf16.mxu1 %v17125_v14  ;;  %14646 = vmatpush3.bf16.msra.mxu0 %v16889_v0  ;;  %v5975_v41 = vsel %vm1428_vm1, %v5972_v17, %v5974_v37  ;;  %v5976_v6 = vrot.slane %v16852_v63, 1 }
 0x36a   : > { %13516 = vst [vmem:[#allocation2 + $0x70] sm:$0xff] %v13378_v59   ;;  %v5347_v44 = vmax.f32 %v14523_v4, 0.0  ;;  %v5130_v9 = vpop.f32.mrb[25].mxu0  ;;  %14647 = vmatprep.subr.bf16.mxu0 %v17125_v14  ;;  %v5556_v53 = vpop.permute.xlu0 %5555  ;;  %v7823_v4 = vrot.slane %v16853_v3, 2 }
 0x36b   : > { %13515 = vst [vmem:[#allocation2 + $0x68] sm:$0xff] %v13373_v16   ;;  %v5345_v2 = vmax.f32 %v5130_v9, 0.0  ;;  %v14524_v19 = vpop.f32.mrb[26].mxu0 }
 0x36c   : > { %v5348_v20 = vmax.f32 %v14524_v19, 0.0  ;;  %v5133_v21 = vpop.f32.mrb[27].mxu0  ;;  %v5599_v29 = vmul.f32 %v5526_v38, %v5347_v44  ;;  %14948 = vmatpush3.bf16.msra.mxu1 %v16884_v18  ;;  %v16854_v18 = vld [vmem:[#allocation2 + $0x4c] sm:$0xff]  }
 0x36d   : > { %v5346_v23 = vmax.f32 %v5133_v21, 0.0  ;;  %v5597_v34 = vmul.f32 %v18062_v35, %v5345_v2  ;;  %15033 = vmatprep.subr.bf16.mxu1 %v17125_v14  ;;  %14648 = vmatpush3.bf16.msra.mxu0 %v16890_v28  ;;  %v5561_v2 = vpop.permute.xlu1 %5560 }
 0x36e   : > { %v5600_v30 = vmul.f32 %v5531_v12, %v5348_v20  ;;  %14570 = vmatmul.mubr.bf16.gmra.mrb[88].mxu0 %v5973_v31  ;;  %14733 = vmatprep.subr.bf16.mxu0 %v17125_v14  ;;  %v5566_v0 = vpop.permute.xlu0 %5565  ;;  %v16855_v20 = vld [vmem:[#allocation2 + $0x54] sm:$0xff]  }
 0x36f   : > { %v5598_v43 = vmul.f32 %v5521_v42, %v5346_v23  ;;  %14573 = vmatprep.mubr.msk.bf16.mxu0 %vm17126_vm6, %v17125_v14  ;;  %14870 = vmatmul.mubr.bf16.gmra.mrb[16].mxu1 %v7820_v48  ;;  %v7825_v28 = vrot.slane %v16855_v20, 2  ;;  %v16857_v31 = vld [vmem:[#allocation2 + $0x54] sm:$0xff]  }
 0x370   : > { %v13388_v45 = vpack.c.bf16 %v5600_v30, %v5599_v29  ;;  %14873 = vmatprep.mubr.msk.bf16.mxu1 %vm17126_vm6, %v17125_v14  ;;  %v5980_v48 = vrot.slane %v16857_v31, 1 }
 0x371   : > { %v13383_v56 = vpack.c.bf16 %v5598_v43, %v5597_v34  ;;  %v14527_v40 = vpop.f32.mrb[28].mxu0  ;;  %v7826_v34 = vsel %vm3156_vm3, %v7823_v4, %v7825_v28  ;;  %v16858_v43 = vld [vmem:[#allocation2 + $0x5c] sm:$0xff]  }
 0x372   : > { %13518 = vst [vmem:[#allocation2 + $0x80] sm:$0xff] %v13388_v45   ;;  %v5351_v35 = vmax.f32 %v14527_v40, 0.0  ;;  %v5146_v57 = vpop.f32.mrb[29].mxu0  ;;  %v16859_v40 = vld [vmem:[#allocation2 + $0x5c] sm:$0xff]  }
 0x373   : > { %13517 = vst [vmem:[#allocation2 + $0x78] sm:$0xff] %v13383_v56   ;;  %v5349_v60 = vmax.f32 %v5146_v57, 0.0  ;;  %v14528_v11 = vpop.f32.mrb[30].mxu0  ;;  %v16860_v57 = vld [vmem:[#allocation2 + $0x64] sm:$0xff]  }
 0x374   : > { %v5352_v15 = vmax.f32 %v14528_v11, 0.0  ;;  %v5149_v25 = vpop.f32.mrb[31].mxu0  ;;  %v5603_v42 = vmul.f32 %v5546_v61, %v5351_v35  ;;  %v7827_v61 = vrot.slane %v16858_v43, 2  ;;  %v16886_v43 = vld [vmem:[#allocation2 + $0xac] ss:$0 sps:$4 sm:$0xff]  }
 0x375   : > { %v5350_v55 = vmax.f32 %v5149_v25, 0.0  ;;  %v5601_v1 = vmul.f32 %v5536_v58, %v5349_v60  ;;  %v7829_v60 = vrot.slane %v16860_v57, 2  ;;  %v16894_v57 = vld [vmem:[#allocation2 + $0x14] sm:$0xff]  }
 0x376   : > { %v5604_v46 = vmul.f32 %v5551_v52, %v5352_v15  ;;  %14574 = vmatmul.mubr.bf16.gmra.mrb[92].mxu0 %v5975_v41  ;;  %v7828_v35 = vsel %vm3156_vm3, %v7825_v28, %v7827_v61  ;;  %v16861_v15 = vld [vmem:[#allocation2 + $0x64] sm:$0xff]  }
 0x377   : > { %v5602_v50 = vmul.f32 %v5541_v39, %v5350_v55  ;;  %14577 = vmatprep.mubr.msk.bf16.mxu0 %vm17126_vm6, %v17125_v14  ;;  %14874 = vmatmul.mubr.bf16.gmra.mrb[20].mxu1 %v7822_v62  ;;  %v5571_v39 = vpop.permute.xlu1 %5570  ;;  %v7830_v25 = vsel %vm3156_vm3, %v7827_v61, %v7829_v60  ;;  %v5984_v52 = vrot.slane %v16861_v15, 1  ;;  %v16891_v61 = vld [vmem:[#allocation2 + $0x4] sm:$0xfe]  }
 0x378   : > { %v13398_v38 = vpack.c.bf16 %v5604_v46, %v5603_v42  ;;  %14877 = vmatprep.mubr.msk.bf16.mxu1 %vm17126_vm6, %v17125_v14  ;;  %v16864_v46 = vld [vmem:[#allocation2 + $0x6c] sm:$0xff]  }
 0x379   : > { %v13393_v27 = vpack.c.bf16 %v5602_v50, %v5601_v1  ;;  %v14531_v32 = vpop.f32.mrb[64].mxu0 }
 0x37a   : > { %13520 = vst [vmem:[#allocation2 + $0x90] sm:$0xff] %v13398_v38   ;;  %v5247_v5 = vadd.f32 %v14531_v32, %v17957_v51  ;;  %v5162_v26 = vpop.f32.mrb[65].mxu0  ;;  %v5977_v51 = vsel %vm1428_vm1, %v5974_v37, %v5976_v6  ;;  %v5982_v37 = vrot.slane %v16859_v40, 1  ;;  %v16865_v63 = vld [vmem:[#allocation2 + $0x74] sm:$0xff]   ;;  %v16867_v3 = vld [vmem:[#allocation2 + $0x7c] sm:$0xff]  }
 0x37b   : > { %13519 = vst [vmem:[#allocation2 + $0x88] sm:$0xff] %v13393_v27   ;;  %v5245_v7 = vadd.f32 %v5162_v26, %v17961_v47  ;;  %v14532_v59 = vpop.f32.mrb[66].mxu0  ;;  %v7824_v47 = vsel %vm3156_vm3, %v7821_v13, %v7823_v4  ;;  %v16862_v13 = vld [vmem:[#allocation2 + $0x6c] sm:$0xff]   ;;  %v7833_v1 = vrot.slane %v16865_v63, 2  ;;  %v16866_v38 = vld [vmem:[#allocation2 + $0x74] sm:$0xff]   ;;  %v7835_v32 = vrot.slane %v16867_v3, 2 }
 0x37c   : > { %v5355_v10 = vmax.f32 %v5247_v5, 0.0  ;;  %v5248_v12 = vadd.f32 %v14532_v59, %v5212_v8  ;;  %v5165_v16 = vpop.f32.mrb[67].mxu0  ;;  %v5983_v11 = vsel %vm1428_vm1, %v5980_v48, %v5982_v37  ;;  %v7831_v55 = vrot.slane %v16862_v13, 2  ;;  %v16869_v26 = vld [vmem:[#allocation2 + $0x7c] sm:$0xff]  }
 0x37d   : > { %v5353_v44 = vmax.f32 %v5245_v7, 0.0  ;;  %v5246_v9 = vadd.f32 %v5165_v16, %v17963_v54  ;;  %v5978_v54 = vrot.slane %v16854_v18, 1  ;;  %v5985_v42 = vsel %vm1428_vm1, %v5982_v37, %v5984_v52 }
 0x37e   : > { %v5607_v17 = vmul.f32 %v5566_v0, %v5355_v10  ;;  %5284 = vst [vmem:[#allocation3 + $0x118] sm:$0x3f] %v5248_v12  ;;  %14578 = vmatmul.mubr.bf16.gmra.mrb[96].mxu0 %v5977_v51  ;;  %v7832_v41 = vsel %vm3156_vm3, %v7829_v60, %v7831_v55  ;;  %v7834_v62 = vsel %vm3156_vm3, %v7831_v55, %v7833_v1  ;;  %v5988_v27 = vrot.slane %v16866_v38, 1 }
 0x37f   : > { %v5354_v58 = vmax.f32 %v5246_v9, 0.0  ;;  %14581 = vmatprep.mubr.msk.bf16.mxu0 %vm17126_vm6, %v17125_v14  ;;  %v5605_v21 = vmul.f32 %v5556_v53, %v5353_v44  ;;  %14878 = vmatmul.mubr.bf16.gmra.mrb[24].mxu1 %v7824_v47  ;;  %v5979_v30 = vsel %vm1428_vm1, %v5976_v6, %v5978_v54  ;;  %v5981_v56 = vsel %vm1428_vm1, %v5978_v54, %v5980_v48 }
 0x380   : > { %v13277_v19 = vpack.c.bf16 %v5607_v17, %v5607_v17  ;;  %14881 = vmatprep.mubr.msk.bf16.mxu1 %vm17126_vm6, %v17125_v14  ;;  %v5986_v53 = vrot.slane %v16864_v46, 1  ;;  %v7836_v6 = vsel %vm3156_vm3, %v7833_v1, %v7835_v32  ;;  %v5990_v59 = vrot.slane %v16869_v26, 1 }
 0x381   : > { %v5606_v22 = vmul.f32 %v5561_v2, %v5354_v58  ;;  %v6474_v60 = vshrl.u32 %v16891_v61, 16  ;;  %v8414_v55 = vshrl.u32 %v16894_v57, 16 }
 0x382   : > { %5793 = vst [vmem:[#allocation2 + $0xa0] sm:$0xf] %v13277_v19  ;;  %v5987_v50 = vsel %vm1428_vm1, %v5984_v52, %v5986_v53  ;;  %v5989_v5 = vsel %vm1428_vm1, %v5986_v53, %v5988_v27  ;;  %v16870_v7 = vld [vmem:[#allocation2 + $0x84] sm:$0xff]   ;;  %v5991_v10 = vsel %vm1428_vm1, %v5988_v27, %v5990_v59  ;;  %v16872_v4 = vld [vmem:[#allocation2 + $0x8c] sm:$0xff]  }
 0x383   : > { %v13403_v23 = vpack.c.bf16 %v5606_v22, %v5605_v21  ;;  %v7837_v8 = vrot.slane %v16870_v7, 2  ;;  %v16871_v12 = vld [vmem:[#allocation2 + $0x84] sm:$0xff]   ;;  %v7839_v44 = vrot.slane %v16872_v4, 2  ;;  %v16873_v17 = vld [vmem:[#allocation2 + $0x8c] sm:$0xff]   ;;  %v6476_v46 = vrot.slane %v6474_v60, 1 }
 0x384   : > { %v5992_v0 = vrot.slane %v16871_v12, 1  ;;  %v5994_v58 = vrot.slane %v16873_v17, 1  ;;  %v8416_v27 = vrot.slane %v8414_v55, 2  ;;  %v16895_v4 = vld [vmem:[%s18968_s3 + $0x140] sm:$0xff]   ;;  %v16903_v60 = vld [vmem:[#allocation2 + $0x2c] sm:$0xff]  }
 0x385   : > { %13521 = vst [vmem:[#allocation2 + $0x98] sm:$0xff] %v13403_v23   ;;  %v5320_v29 = vld [vmem:[#allocation3 + $0x118] sm:$0x3f]  ;;  %v7838_v16 = vsel %vm3156_vm3, %v7835_v32, %v7837_v8  ;;  %v7840_v18 = vsel %vm3156_vm3, %v7837_v8, %v7839_v44 }
 0x386   : > { %v5356_v33 = vmax.f32 %v5320_v29, 0.0  ;;  %14582 = vmatmul.mubr.bf16.gmra.mrb[100].mxu0 %v5979_v30  ;;  %v5993_v9 = vsel %vm1428_vm1, %v5990_v59, %v5992_v0  ;;  %v5995_v19 = vsel %vm1428_vm1, %v5992_v0, %v5994_v58 }
 0x387   : > { %14585 = vmatprep.mubr.msk.bf16.mxu0 %vm17126_vm6, %v17125_v14  ;;  %14882 = vmatmul.mubr.bf16.gmra.mrb[28].mxu1 %v7826_v34 }
 0x388   : > { %v5608_v45 = vmul.f32 %v5571_v39, %v5356_v33  ;;  %14885 = vmatprep.mubr.msk.bf16.mxu1 %vm17126_vm6, %v17125_v14 }
 0x38a   : > { %v13278_v49 = vpack.c.bf16 %v5608_v45, %v5608_v45 }
 0x38c   : > { %5794 = vst [vmem:[#allocation2 + $0xa4] sm:$0x7] %v13278_v49  ;;  %v16874_v51 = vld [vmem:[#allocation2 + $0x94] sm:$0xff]   ;;  %v16877_v21 = vld [vmem:[#allocation2 + $0x9c] sm:$0xff]   ;;  %v7847_v49 = vrot.slane %v16886_v43, 2 }
 0x38d   : > { %v7841_v2 = vrot.slane %v16874_v51, 2  ;;  %v16876_v47 = vld [vmem:[#allocation2 + $0x94] sm:$0xff]   ;;  %v7843_v54 = vrot.slane %v16877_v21, 2  ;;  %v16880_v28 = vld [vmem:[#allocation2 + $0x9c] sm:$0xff]  }
 0x38e   : > { %14586 = vmatmul.mubr.bf16.gmra.mrb[104].mxu0 %v5981_v56  ;;  %v5996_v22 = vrot.slane %v16876_v47, 1  ;;  %v5998_v31 = vrot.slane %v16880_v28, 1  ;;  %v16892_v56 = vld [vmem:[#allocation2 + $0xc] sm:$0xff]  }
 0x38f   : > { %14589 = vmatprep.mubr.msk.bf16.mxu0 %vm17126_vm6, %v17125_v14  ;;  %14886 = vmatmul.mubr.bf16.gmra.mrb[32].mxu1 %v7828_v35  ;;  %v7842_v20 = vsel %vm3156_vm3, %v7839_v44, %v7841_v2  ;;  %v7844_v29 = vsel %vm3156_vm3, %v7841_v2, %v7843_v54  ;;  %v16893_v35 = vld [vmem:[#allocation2 + $0xc] sm:$0xfc]   ;;  %v6482_v15 = vshrl.u32 %v16892_v56, 16 }
 0x390   : > { %14889 = vmatprep.mubr.msk.bf16.mxu1 %vm17126_vm6, %v17125_v14  ;;  %v5997_v23 = vsel %vm1428_vm1, %v5994_v58, %v5996_v22  ;;  %v5999_v34 = vsel %vm1428_vm1, %v5996_v22, %v5998_v31  ;;  %v8406_v13 = vshrl.u32 %v16893_v35, 16  ;;  %v8409_v52 = vshll.u32 %v16893_v35, 16  ;;  %v16900_v47 = vld [vmem:[%s18968_s3 + $0x148] sm:$0xff]  }
 0x391   : > { %v6484_v63 = vrot.slane %v6482_v15, 1 }
 0x392   : > { %v8408_v1 = vrot.slane %v8406_v13, 2  ;;  %v8411_v38 = vrot.slane %v8409_v52, 3 }
 0x393   : > { %v16881_v30 = vld [vmem:[#allocation2 + $0xa4] sm:$0xff]  }
 0x394   : > { %v7845_v33 = vrot.slane %v16881_v30, 2  ;;  %v16885_v39 = vld [vmem:[#allocation2 + $0xa4] ss:$0 sps:$4 sm:$0x77]   ;;  %v8412_v7 = vor.u32 %v8411_v38, %v8408_v1  ;;  %v16907_v30 = vld [vmem:[%s18968_s3 + $0x150] sm:$0xff]   ;;  %v16926_v1 = vld [vmem:[%s18968_s3 + $0x168] sm:$0xff]  }
 0x395   : > { %v6000_v48 = vrot.slane %v16885_v39, 1 }
 0x396   : > { %14590 = vmatmul.mubr.bf16.gmra.mrb[108].mxu0 %v5983_v11  ;;  %v7846_v45 = vsel %vm3156_vm3, %v7843_v54, %v7845_v33  ;;  %v7848_v37 = vsel %vm3156_vm3, %v7845_v33, %v7847_v49  ;;  %v6477_v11 = vshll.u32 %v16891_v61, 16  ;;  %v16914_v61 = vld [vmem:[%s18968_s3 + $0x158] sm:$0xff]  }
 0x397   : > { %14593 = vmatprep.mubr.msk.bf16.mxu0 %vm17126_vm6, %v17125_v14  ;;  %14890 = vmatmul.mubr.bf16.gmra.mrb[36].mxu1 %v7830_v25  ;;  %v6001_v40 = vsel %vm1428_vm1, %v5998_v31, %v6000_v48  ;;  %v6485_v25 = vshll.u32 %v16892_v56, 16  ;;  %v16902_v31 = vld [vmem:[#allocation2 + $0x2c] sm:$0xff]  }
 0x398   : > { %14893 = vmatprep.mubr.msk.bf16.mxu1 %vm17126_vm6, %v17125_v14  ;;  %v8441_v56 = vshrl.u32 %v16902_v31, 16  ;;  %v8444_v35 = vshll.u32 %v16902_v31, 16 }
 0x399   : > { %v6487_v53 = vrot.slane %v6485_v25, 2  ;;  %v16919_v25 = vld [vmem:[%s18968_s3 + $0x160] sm:$0xff]  }
 0x39a   : > { %v8443_v52 = vrot.slane %v8441_v56, 2  ;;  %v8446_v55 = vrot.slane %v8444_v35, 3 }
 0x39e   : > { %14594 = vmatmul.mubr.bf16.gmra.mrb[112].mxu0 %v5985_v42  ;;  %v8417_v42 = vshll.u32 %v16894_v57, 16  ;;  %v16937_v57 = vld [vmem:[%s18968_s3 + $0x88] sm:$0xff]  }
 0x39f   : > { %14597 = vmatprep.mubr.msk.bf16.mxu0 %vm17126_vm6, %v17125_v14  ;;  %14894 = vmatmul.mubr.bf16.gmra.mrb[40].mxu1 %v7832_v41  ;;  %v6479_v41 = vrot.slane %v6477_v11, 2 }
 0x3a0   : > { %14897 = vmatprep.mubr.msk.bf16.mxu1 %vm17126_vm6, %v17125_v14  ;;  %v8419_v32 = vrot.slane %v8417_v42, 3  ;;  %v16904_v42 = vld [vmem:[#allocation2 + $0x34] sm:$0xff]  }
 0x3a1   : > { %v6480_v3 = vor.u32 %v6479_v41, %v6476_v46  ;;  %v6518_v46 = vshrl.u32 %v16903_v60, 16  ;;  %v16940_v41 = vld [vmem:[%s18968_s3 + $0x90] sm:$0xff]   ;;  %v8450_v38 = vshrl.u32 %v16904_v42, 16 }
 0x3a2   : > { %v8420_v8 = vor.u32 %v8419_v32, %v8416_v27  ;;  %v16905_v32 = vld [vmem:[#allocation2 + $0x34] sm:$0xff]  }
 0x3a3   : > { %v6520_v27 = vrot.slane %v6518_v46, 1 }
 0x3a4   : > { %v8421_v17 = vsel %vm4227_vm4, %v8412_v7, %v8420_v8 }
 0x3a6   : > { %14598 = vmatmul.mubr.bf16.gmra.mrb[116].mxu0 %v5987_v50  ;;  %v16896_v50 = vld [vmem:[#allocation2 + $0x14] sm:$0xff]  }
 0x3a7   : > { %14601 = vmatprep.mubr.msk.bf16.mxu0 %vm17126_vm6, %v17125_v14  ;;  %14898 = vmatmul.mubr.bf16.gmra.mrb[44].mxu1 %v7834_v62  ;;  %v16897_v62 = vld [vmem:[#allocation2 + $0x1c] sm:$0xff]   ;;  %v6491_v26 = vshrl.u32 %v16896_v50, 16 }
 0x3a8   : > { %14901 = vmatprep.mubr.msk.bf16.mxu1 %vm17126_vm6, %v17125_v14  ;;  %v8426_v12 = vshll.u32 %v16897_v62, 16 }
 0x3a9   : > { %v6493_v0 = vrot.slane %v6491_v26, 1 }
 0x3ae   : > { %14602 = vmatmul.mubr.bf16.gmra.mrb[120].mxu0 %v5989_v5  ;;  %v6488_v5 = vor.u32 %v6487_v53, %v6484_v63  ;;  %v6521_v53 = vshll.u32 %v16903_v60, 16 }
 0x3af   : > { %14605 = vmatprep.mubr.msk.bf16.mxu0 %vm17126_vm6, %v17125_v14  ;;  %14902 = vmatmul.mubr.bf16.gmra.mrb[48].mxu1 %v7836_v6  ;;  %v6494_v6 = vshll.u32 %v16896_v50, 16  ;;  %v8447_v50 = vor.u32 %v8446_v55, %v8443_v52 }
 0x3b0   : > { %14905 = vmatprep.mubr.msk.bf16.mxu1 %vm17126_vm6, %v17125_v14  ;;  %v6489_v59 = vsel %vm2491_vm2, %v6480_v3, %v6488_v5  ;;  %v16942_v3 = vld [vmem:[%s18968_s3 + $0x98] sm:$0xff]   ;;  %v6523_v26 = vrot.slane %v6521_v53, 2 }
 0x3b1   : > { %v6496_v44 = vrot.slane %v6494_v6, 2  ;;  %v16931_v6 = vld [vmem:[%s18968_s3 + $0x170] sm:$0xff]  }
 0x3b2   : > { %v16913_v53 = vld [vmem:[#allocation2 + $0x54] sm:$0xff]  }
 0x3b3   : > { %v6497_v2 = vor.u32 %v6496_v44, %v6493_v0  ;;  %v6530_v0 = vshll.u32 %v16905_v32, 16  ;;  %v16941_v44 = vld [vmem:[%s18968_s3 + $0x178] sm:$0xff]  }
 0x3b5   : > { %v6498_v28 = vsel %vm2491_vm2, %v6488_v5, %v6497_v2 }
 0x3b6   : > { %14606 = vmatmul.mubr.bf16.gmra.mrb[124].mxu0 %v5991_v10  ;;  %v8423_v10 = vshrl.u32 %v16897_v62, 16  ;;  %v8453_v62 = vshll.u32 %v16904_v42, 16  ;;  %v16912_v42 = vld [vmem:[#allocation2 + $0x4c] sm:$0xff]  }
 0x3b7   : > { %14609 = vmatprep.mubr.msk.bf16.mxu0 %vm17126_vm6, %v17125_v14  ;;  %14906 = vmatmul.mubr.bf16.gmra.mrb[52].mxu1 %v7838_v16  ;;  %v16898_v16 = vld [vmem:[#allocation2 + $0x1c] sm:$0xff]  }
 0x3b8   : > { %14909 = vmatprep.mubr.msk.bf16.mxu1 %vm17126_vm6, %v17125_v14  ;;  %v8425_v51 = vrot.slane %v8423_v10, 2  ;;  %v6500_v58 = vshrl.u32 %v16898_v16, 16  ;;  %v16906_v10 = vld [vmem:[#allocation2 + $0x3c] sm:$0xff]  }
 0x3ba   : > { %v6502_v54 = vrot.slane %v6500_v58, 1  ;;  %v16908_v58 = vld [vmem:[#allocation2 + $0x3c] sm:$0xff]  }
 0x3be   : > { %14610 = vmatmul.mubr.bf16.gmra.mrb[128].mxu0 %v5993_v9  ;;  %v16899_v9 = vld [vmem:[#allocation2 + $0x24] sm:$0xff]  }
 0x3bf   : > { %14613 = vmatprep.mubr.msk.bf16.mxu0 %vm17126_vm6, %v17125_v14  ;;  %14910 = vmatmul.mubr.bf16.gmra.mrb[56].mxu1 %v7840_v18  ;;  %v8428_v18 = vrot.slane %v8426_v12, 3  ;;  %v8432_v21 = vshrl.u32 %v16899_v9, 16  ;;  %v8435_v22 = vshll.u32 %v16899_v9, 16  ;;  %v16945_v12 = vld [vmem:[%s18968_s3 + $0xa0] sm:$0xff]  }
 0x3c0   : > { %14913 = vmatprep.mubr.msk.bf16.mxu1 %vm17126_vm6, %v17125_v14 }
 0x3c1   : > { %v8434_v39 = vrot.slane %v8432_v21, 2 }
 0x3c6   : > { %14614 = vmatmul.mubr.bf16.gmra.mrb[132].mxu0 %v5995_v19  ;;  %v6503_v19 = vshll.u32 %v16898_v16, 16  ;;  %v6524_v16 = vor.u32 %v6523_v26, %v6520_v27  ;;  %v8489_v27 = vshll.u32 %v16913_v53, 16 }
 0x3c7   : > { %14617 = vmatprep.mubr.msk.bf16.mxu0 %vm17126_vm6, %v17125_v14  ;;  %14914 = vmatmul.mubr.bf16.gmra.mrb[60].mxu1 %v7842_v20  ;;  %v8429_v20 = vor.u32 %v8428_v18, %v8425_v51  ;;  %v8462_v51 = vshll.u32 %v16906_v10, 16  ;;  %v16946_v18 = vld [vmem:[%s18968_s3 + $0xa8] sm:$0xff]  }
 0x3c8   : > { %14917 = vmatprep.mubr.msk.bf16.mxu1 %vm17126_vm6, %v17125_v14 }
 0x3c9   : > { %v8430_v33 = vsel %vm4227_vm4, %v8420_v8, %v8429_v20  ;;  %v8455_v8 = vrot.slane %v8453_v62, 3 }
 0x3ce   : > { %14618 = vmatmul.mubr.bf16.gmra.mrb[136].mxu0 %v5997_v23  ;;  %v16901_v23 = vld [vmem:[#allocation2 + $0x24] sm:$0xff]  }
 0x3cf   : > { %14621 = vmatprep.mubr.msk.bf16.mxu0 %vm17126_vm6, %v17125_v14  ;;  %14918 = vmatmul.mubr.bf16.gmra.mrb[64].mxu1 %v7844_v29  ;;  %v6505_v29 = vrot.slane %v6503_v19, 2  ;;  %v6509_v43 = vshrl.u32 %v16901_v23, 16 }
 0x3d0   : > { %14921 = vmatprep.mubr.msk.bf16.mxu1 %vm17126_vm6, %v17125_v14 }
 0x3d6   : > { %14622 = vmatmul.mubr.bf16.gmra.mrb[140].mxu0 %v5999_v34  ;;  %v8437_v34 = vrot.slane %v8435_v22, 3 }
 0x3d7   : > { %14625 = vmatprep.mubr.msk.bf16.mxu0 %vm17126_vm6, %v17125_v14  ;;  %14922 = vmatmul.mubr.bf16.gmra.mrb[68].mxu1 %v7846_v45  ;;  %v16936_v45 = vld [vmem:[%s18968_s3 + $0x80] sm:$0xff]  }
 0x3d8   : > { %14925 = vmatprep.mubr.msk.bf16.mxu1 %vm17126_vm6, %v17125_v14 }
 0x3de   : > { %14626 = vmatmul.mubr.bf16.gmra.mrb[144].mxu0 %v6001_v40  ;;  %v8438_v40 = vor.u32 %v8437_v34, %v8434_v39  ;;  %v16948_v34 = vld [vmem:[%s18968_s3 + $0xb8] sm:$0xff]  }
 0x3df   : > { %14629 = vmatprep.mubr.msk.bf16.mxu0 %vm17126_vm6, %v17125_v14  ;;  %14926 = vmatmul.mubr.bf16.gmra.mrb[72].mxu1 %v7848_v37  ;;  %v6511_v37 = vrot.slane %v6509_v43, 1  ;;  %v16910_v43 = vld [vmem:[#allocation2 + $0x44] sm:$0xff]  }
 0x3e0   : > { %14929 = vmatprep.mubr.msk.bf16.mxu1 %vm17126_vm6, %v17125_v14  ;;  %v8439_v13 = vsel %vm4227_vm4, %v8429_v20, %v8438_v40  ;;  %v8448_v7 = vsel %vm4227_vm4, %v8438_v40, %v8447_v50  ;;  %v16909_v20 = vld [vmem:[#allocation2 + $0x44] sm:$0xff]   ;;  %v6548_v60 = vshll.u32 %v16910_v43, 16 }
 0x3e1   : > { %v8468_v31 = vshrl.u32 %v16909_v20, 16  ;;  %v8471_v39 = vshll.u32 %v16909_v20, 16  ;;  %v16918_v20 = vld [vmem:[#allocation2 + $0x64] sm:$0xff]  }
 0x3e2   : > { %v6550_v55 = vrot.slane %v6548_v60, 2 }
 0x3e3   : > { %v8470_v40 = vrot.slane %v8468_v31, 2  ;;  %v8473_v35 = vrot.slane %v8471_v39, 3  ;;  %v16920_v39 = vld [vmem:[#allocation2 + $0x64] sm:$0xff]  }
 0x3e6   : > { %14630 = vmatmul.mubr.bf16.gmra.mrb[148].mxu0 %v6000_v48  ;;  %v6506_v48 = vor.u32 %v6505_v29, %v6502_v54  ;;  %v8464_v54 = vrot.slane %v8462_v51, 3  ;;  %v6536_v29 = vshrl.u32 %v16908_v58, 16 }
 0x3e7   : > { %14649 = vmatprep.mubr.msk.bf16.mxu0 %vm17126_vm6, %v17125_v14  ;;  %14930 = vmatmul.mubr.bf16.gmra.mrb[76].mxu1 %v7847_v49  ;;  %v6512_v49 = vshll.u32 %v16901_v23, 16  ;;  %v16947_v23 = vld [vmem:[%s18968_s3 + $0xb0] sm:$0xff]  }
 0x3e8   : > { %14949 = vmatprep.mubr.msk.bf16.mxu1 %vm17126_vm6, %v17125_v14  ;;  %v6507_v11 = vsel %vm2491_vm2, %v6497_v2, %v6506_v48 }
 0x3e9   : > { %v6514_v15 = vrot.slane %v6512_v49, 2 }
 0x3eb   : > { %v6515_v63 = vor.u32 %v6514_v15, %v6511_v37  ;;  %v6545_v37 = vshrl.u32 %v16910_v43, 16 }
 0x3ed   : > { %v6516_v5 = vsel %vm2491_vm2, %v6506_v48, %v6515_v63  ;;  %v6525_v2 = vsel %vm2491_vm2, %v6515_v63, %v6524_v16  ;;  %v6538_v48 = vrot.slane %v6536_v29, 1  ;;  %v6547_v52 = vrot.slane %v6545_v37, 1 }
 0x3ee   : > { %14650 = vmatmul.mubr.bf16.vlgmr.msra.gmra.mrb[68].mxu0 %v6489_v59  ;;  %v8452_v59 = vrot.slane %v8450_v38, 2  ;;  %v6557_v38 = vshll.u32 %v16912_v42, 16  ;;  %v8507_v29 = vshll.u32 %v16918_v20, 16 }
 0x3ef   : > { %14653 = vmatprep.mubr.msk.bf16.mxu0 %vm17126_vm6, %v17125_v14  ;;  %14950 = vmatmul.mubr.bf16.vlgmr.msra.gmra.mrb[80].mxu1 %v8421_v17  ;;  %v8459_v17 = vshrl.u32 %v16906_v10, 16  ;;  %v16916_v10 = vld [vmem:[#allocation2 + $0x5c] sm:$0xff]  }
 0x3f0   : > { %15034 = vmatpush3.bf16.msra.mxu1 %v16895_v4  ;;  %14953 = vmatprep.mubr.msk.bf16.mxu1 %vm17126_vm6, %v17125_v14  ;;  %v6527_v4 = vshrl.u32 %v16905_v32, 16  ;;  %v8456_v9 = vor.u32 %v8455_v8, %v8452_v59  ;;  %v6559_v26 = vrot.slane %v6557_v38, 2  ;;  %v8491_v8 = vrot.slane %v8489_v27, 3 }
 0x3f1   : > { %15035 = vmatprep.subr.bf16.mxu1 %v17125_v14  ;;  %14734 = vmatpush3.bf16.msra.mxu0 %v16936_v45  ;;  %v8461_v22 = vrot.slane %v8459_v17, 2 }
 0x3f2   : > { %14735 = vmatprep.subr.bf16.mxu0 %v17125_v14  ;;  %v6529_v19 = vrot.slane %v6527_v4, 1  ;;  %v8457_v21 = vsel %vm4227_vm4, %v8447_v50, %v8456_v9  ;;  %v6554_v50 = vshrl.u32 %v16912_v42, 16 }
 0x3f4   : > { %15036 = vmatpush3.bf16.msra.mxu1 %v16900_v47  ;;  %v6532_v47 = vrot.slane %v6530_v0, 2 }
 0x3f5   : > { %15037 = vmatprep.subr.bf16.mxu1 %v17125_v14  ;;  %14736 = vmatpush3.bf16.msra.mxu0 %v16937_v57 }
 0x3f6   : > { %14654 = vmatmul.mubr.bf16.gmra.mrb[72].mxu0 %v6498_v28  ;;  %14737 = vmatprep.subr.bf16.mxu0 %v17125_v14  ;;  %v6533_v28 = vor.u32 %v6532_v47, %v6529_v19 }
 0x3f7   : > { %14657 = vmatprep.mubr.msk.bf16.mxu0 %vm17126_vm6, %v17125_v14  ;;  %14954 = vmatmul.mubr.bf16.gmra.mrb[0].mxu1 %v8430_v33  ;;  %v8465_v33 = vor.u32 %v8464_v54, %v8461_v22 }
 0x3f8   : > { %14957 = vmatprep.mubr.msk.bf16.mxu1 %vm17126_vm6, %v17125_v14  ;;  %15038 = vmatpush3.bf16.msra.mxu1 %v16907_v30  ;;  %v6539_v30 = vshll.u32 %v16908_v58, 16  ;;  %v6534_v45 = vsel %vm2491_vm2, %v6524_v16, %v6533_v28  ;;  %v16917_v58 = vld [vmem:[#allocation2 + $0x5c] sm:$0xff]  }
 0x3f9   : > { %15039 = vmatprep.subr.bf16.mxu1 %v17125_v14  ;;  %14738 = vmatpush3.bf16.msra.mxu0 %v16940_v41  ;;  %v8466_v56 = vsel %vm4227_vm4, %v8456_v9, %v8465_v33  ;;  %v8498_v9 = vshll.u32 %v16916_v10, 16  ;;  %v6572_v22 = vshrl.u32 %v16917_v58, 16  ;;  %v6575_v54 = vshll.u32 %v16917_v58, 16 }
 0x3fa   : > { %14739 = vmatprep.subr.bf16.mxu0 %v17125_v14  ;;  %v6541_v49 = vrot.slane %v6539_v30, 2 }
 0x3fb   : > { %v8500_v47 = vrot.slane %v8498_v9, 3  ;;  %v6574_v31 = vrot.slane %v6572_v22, 1 }
 0x3fc   : > { %15040 = vmatpush3.bf16.msra.mxu1 %v16914_v61  ;;  %v16911_v61 = vld [vmem:[#allocation2 + $0x4c] sm:$0xff]   ;;  %v6542_v57 = vor.u32 %v6541_v49, %v6538_v48 }
 0x3fd   : > { %15041 = vmatprep.subr.bf16.mxu1 %v17125_v14  ;;  %14740 = vmatpush3.bf16.msra.mxu0 %v16942_v3  ;;  %v8477_v15 = vshrl.u32 %v16911_v61, 16  ;;  %v8486_v3 = vshrl.u32 %v16913_v53, 16  ;;  %v16921_v48 = vld [vmem:[#allocation2 + $0x6c] sm:$0xff]  }
 0x3fe   : > { %14658 = vmatmul.mubr.bf16.gmra.mrb[76].mxu0 %v6507_v11  ;;  %14741 = vmatprep.subr.bf16.mxu0 %v17125_v14  ;;  %v8474_v11 = vor.u32 %v8473_v35, %v8470_v40  ;;  %v8513_v35 = vshrl.u32 %v16921_v48, 16 }
 0x3ff   : > { %14661 = vmatprep.mubr.msk.bf16.mxu0 %vm17126_vm6, %v17125_v14  ;;  %14958 = vmatmul.mubr.bf16.gmra.mrb[4].mxu1 %v8439_v13  ;;  %v6543_v13 = vsel %vm2491_vm2, %v6533_v28, %v6542_v57  ;;  %v8479_v41 = vrot.slane %v8477_v15, 2  ;;  %v8488_v59 = vrot.slane %v8486_v3, 2  ;;  %v8504_v28 = vshrl.u32 %v16918_v20, 16  ;;  %v16922_v15 = vld [vmem:[#allocation2 + $0x6c] sm:$0xff]   ;;  %v16924_v3 = vld [vmem:[#allocation2 + $0x74] sm:$0xff]  }
 0x400   : > { %14961 = vmatprep.mubr.msk.bf16.mxu1 %vm17126_vm6, %v17125_v14  ;;  %15042 = vmatpush3.bf16.msra.mxu1 %v16919_v25  ;;  %v8480_v25 = vshll.u32 %v16911_v61, 16  ;;  %v8475_v46 = vsel %vm4227_vm4, %v8465_v33, %v8474_v11  ;;  %v6577_v33 = vrot.slane %v6575_v54, 2  ;;  %v6581_v61 = vshrl.u32 %v16920_v39, 16 }
 0x401   : > { %15043 = vmatprep.subr.bf16.mxu1 %v17125_v14  ;;  %14742 = vmatpush3.bf16.msra.mxu0 %v16945_v12  ;;  %v8492_v0 = vor.u32 %v8491_v8, %v8488_v59  ;;  %v8506_v43 = vrot.slane %v8504_v28, 2  ;;  %v6602_v59 = vshll.u32 %v16924_v3, 16  ;;  %v16929_v28 = vld [vmem:[#allocation2 + $0x84] sm:$0xff]  }
 0x402   : > { %14743 = vmatprep.subr.bf16.mxu0 %v17125_v14  ;;  %v8482_v63 = vrot.slane %v8480_v25, 3  ;;  %v6578_v49 = vor.u32 %v6577_v33, %v6574_v31  ;;  %v6583_v60 = vrot.slane %v6581_v61, 1  ;;  %v16930_v33 = vld [vmem:[#allocation2 + $0x8c] sm:$0xff]  }
 0x404   : > { %15044 = vmatpush3.bf16.msra.mxu1 %v16926_v1  ;;  %v6551_v1 = vor.u32 %v6550_v55, %v6547_v52  ;;  %v8483_v62 = vor.u32 %v8482_v63, %v8479_v41  ;;  %v16923_v55 = vld [vmem:[#allocation2 + $0x74] sm:$0xff]   ;;  %v6593_v41 = vshll.u32 %v16922_v15, 16 }
 0x405   : > { %15045 = vmatprep.subr.bf16.mxu1 %v17125_v14  ;;  %14744 = vmatpush3.bf16.msra.mxu0 %v16946_v18  ;;  %v8522_v53 = vshrl.u32 %v16923_v55, 16 }
 0x406   : > { %14662 = vmatmul.mubr.bf16.gmra.mrb[80].mxu0 %v6516_v5  ;;  %14745 = vmatprep.subr.bf16.mxu0 %v17125_v14  ;;  %v6552_v32 = vsel %vm2491_vm2, %v6542_v57, %v6551_v1  ;;  %v6556_v5 = vrot.slane %v6554_v50, 1  ;;  %v8516_v57 = vshll.u32 %v16921_v48, 16  ;;  %v8549_v48 = vshrl.u32 %v16930_v33, 16 }
 0x407   : > { %14665 = vmatprep.mubr.msk.bf16.mxu0 %vm17126_vm6, %v17125_v14  ;;  %14962 = vmatmul.mubr.bf16.gmra.mrb[8].mxu1 %v8448_v7  ;;  %v8484_v7 = vsel %vm4227_vm4, %v8474_v11, %v8483_v62 }
 0x408   : > { %14965 = vmatprep.mubr.msk.bf16.mxu1 %vm17126_vm6, %v17125_v14  ;;  %15046 = vmatpush3.bf16.msra.mxu1 %v16931_v6  ;;  %v16915_v6 = vld [vmem:[#allocation2 + $0x54] sm:$0xff]   ;;  %v6560_v12 = vor.u32 %v6559_v26, %v6556_v5  ;;  %v8518_v52 = vrot.slane %v8516_v57, 3  ;;  %v16925_v26 = vld [vmem:[#allocation2 + $0x7c] sm:$0xff]  }
 0x409   : > { %15047 = vmatprep.subr.bf16.mxu1 %v17125_v14  ;;  %14746 = vmatpush3.bf16.msra.mxu0 %v16947_v23  ;;  %v6563_v16 = vshrl.u32 %v16915_v6, 16  ;;  %v6566_v4 = vshll.u32 %v16915_v6, 16 }
 0x40a   : > { %14747 = vmatprep.subr.bf16.mxu0 %v17125_v14  ;;  %v6561_v17 = vsel %vm2491_vm2, %v6551_v1, %v6560_v12  ;;  %v8525_v1 = vshll.u32 %v16923_v55, 16 }
 0x40b   : > { %v6565_v51 = vrot.slane %v6563_v16, 1  ;;  %v6568_v18 = vrot.slane %v6566_v4, 2 }
 0x40c   : > { %15048 = vmatpush3.bf16.msra.mxu1 %v16941_v44  ;;  %v8495_v44 = vshrl.u32 %v16916_v10, 16  ;;  %v8527_v5 = vrot.slane %v8525_v1, 3  ;;  %v8531_v10 = vshrl.u32 %v16925_v26, 16 }
 0x40d   : > { %15133 = vmatprep.subr.bf16.mxu1 %v17125_v14  ;;  %14748 = vmatpush3.bf16.msra.mxu0 %v16948_v34 }
 0x40e   : > { %14666 = vmatmul.mubr.bf16.gmra.mrb[84].mxu0 %v6525_v2  ;;  %14833 = vmatprep.subr.bf16.mxu0 %v17125_v14  ;;  %v8493_v2 = vsel %vm4227_vm4, %v8483_v62, %v8492_v0  ;;  %v8497_v19 = vrot.slane %v8495_v44, 2  ;;  %v6595_v62 = vrot.slane %v6593_v41, 2  ;;  %v16927_v44 = vld [vmem:[#allocation2 + $0x7c] sm:$0xff]  }
 0x40f   : > { %14669 = vmatprep.mubr.msk.bf16.mxu0 %vm17126_vm6, %v17125_v14  ;;  %14966 = vmatmul.mubr.bf16.gmra.mrb[12].mxu1 %v8457_v21  ;;  %v6569_v21 = vor.u32 %v6568_v18, %v6565_v51  ;;  %v16928_v18 = vld [vmem:[#allocation2 + $0x84] sm:$0xff]  }
 0x410   : > { %14969 = vmatprep.mubr.msk.bf16.mxu1 %vm17126_vm6, %v17125_v14  ;;  %v8501_v23 = vor.u32 %v8500_v47, %v8497_v19  ;;  %v6611_v19 = vshll.u32 %v16927_v44, 16  ;;  %v8540_v20 = vshrl.u32 %v16928_v18, 16 }
 0x411   : > { %v6570_v30 = vsel %vm2491_vm2, %v6560_v12, %v6569_v21  ;;  %v6579_v37 = vsel %vm2491_vm2, %v6569_v21, %v6578_v49  ;;  %v8534_v12 = vshll.u32 %v16925_v26, 16  ;;  %v8543_v21 = vshll.u32 %v16928_v18, 16 }
 0x412   : > { %v8502_v34 = vsel %vm4227_vm4, %v8492_v0, %v8501_v23  ;;  %v6604_v0 = vrot.slane %v6602_v59, 2 }
 0x413   : > { %v8536_v51 = vrot.slane %v8534_v12, 3  ;;  %v8545_v31 = vrot.slane %v8543_v21, 3 }
 0x416   : > { %14670 = vmatmul.mubr.bf16.gmra.mrb[88].mxu0 %v6534_v45  ;;  %v8509_v45 = vrot.slane %v8507_v29, 3 }
 0x417   : > { %14673 = vmatprep.mubr.msk.bf16.mxu0 %vm17126_vm6, %v17125_v14  ;;  %14970 = vmatmul.mubr.bf16.gmra.mrb[16].mxu1 %v8466_v56  ;;  %v6584_v56 = vshll.u32 %v16920_v39, 16 }
 0x418   : > { %14973 = vmatprep.mubr.msk.bf16.mxu1 %vm17126_vm6, %v17125_v14  ;;  %v8510_v40 = vor.u32 %v8509_v45, %v8506_v43  ;;  %v6620_v43 = vshll.u32 %v16929_v28, 16 }
 0x419   : > { %v6586_v11 = vrot.slane %v6584_v56, 2 }
 0x41a   : > { %v8511_v25 = vsel %vm4227_vm4, %v8501_v23, %v8510_v40  ;;  %v6613_v23 = vrot.slane %v6611_v19, 2 }
 0x41b   : > { %v6587_v42 = vor.u32 %v6586_v11, %v6583_v60  ;;  %v16933_v11 = vld [vmem:[#allocation2 + $0x94] sm:$0xff]  }
 0x41c   : > { %v8558_v55 = vshrl.u32 %v16933_v11, 16 }
 0x41d   : > { %v6588_v50 = vsel %vm2491_vm2, %v6578_v49, %v6587_v42  ;;  %v8552_v49 = vshll.u32 %v16930_v33, 16 }
 0x41e   : > { %14674 = vmatmul.mubr.bf16.gmra.mrb[92].mxu0 %v6543_v13  ;;  %v8515_v13 = vrot.slane %v8513_v35, 2  ;;  %v16932_v35 = vld [vmem:[#allocation2 + $0x8c] sm:$0xff]  }
 0x41f   : > { %14677 = vmatprep.mubr.msk.bf16.mxu0 %vm17126_vm6, %v17125_v14  ;;  %14974 = vmatmul.mubr.bf16.gmra.mrb[20].mxu1 %v8475_v46  ;;  %v6590_v46 = vshrl.u32 %v16922_v15, 16  ;;  %v8554_v60 = vrot.slane %v8552_v49, 3 }
 0x420   : > { %14977 = vmatprep.mubr.msk.bf16.mxu1 %vm17126_vm6, %v17125_v14  ;;  %v8519_v63 = vor.u32 %v8518_v52, %v8515_v13  ;;  %v6629_v13 = vshll.u32 %v16932_v35, 16 }
 0x421   : > { %v6592_v38 = vrot.slane %v6590_v46, 1 }
 0x422   : > { %v8520_v27 = vsel %vm4227_vm4, %v8510_v40, %v8519_v63  ;;  %v6622_v40 = vrot.slane %v6620_v43, 2 }
 0x423   : > { %v6596_v6 = vor.u32 %v6595_v62, %v6592_v38  ;;  %v16935_v62 = vld [vmem:[#allocation2 + $0x9c] sm:$0xff]  }
 0x424   : > { %v8567_v26 = vshrl.u32 %v16935_v62, 16 }
 0x425   : > { %v6597_v16 = vsel %vm2491_vm2, %v6587_v42, %v6596_v6  ;;  %v8561_v42 = vshll.u32 %v16933_v11, 16 }
 0x426   : > { %14678 = vmatmul.mubr.bf16.gmra.mrb[96].mxu0 %v6552_v32  ;;  %v8524_v32 = vrot.slane %v8522_v53, 2  ;;  %v16934_v53 = vld [vmem:[#allocation2 + $0x94] sm:$0xff]  }
 0x427   : > { %14681 = vmatprep.mubr.msk.bf16.mxu0 %vm17126_vm6, %v17125_v14  ;;  %14978 = vmatmul.mubr.bf16.gmra.mrb[24].mxu1 %v8484_v7  ;;  %v6599_v7 = vshrl.u32 %v16924_v3, 16  ;;  %v8563_v38 = vrot.slane %v8561_v42, 3 }
 0x428   : > { %14981 = vmatprep.mubr.msk.bf16.mxu1 %vm17126_vm6, %v17125_v14  ;;  %v8528_v8 = vor.u32 %v8527_v5, %v8524_v32  ;;  %v6638_v32 = vshll.u32 %v16934_v53, 16 }
 0x429   : > { %v6601_v4 = vrot.slane %v6599_v7, 1 }
 0x42a   : > { %v8529_v9 = vsel %vm4227_vm4, %v8519_v63, %v8528_v8  ;;  %v6631_v63 = vrot.slane %v6629_v13, 2 }
 0x42b   : > { %v6605_v58 = vor.u32 %v6604_v0, %v6601_v4  ;;  %v16939_v0 = vld [vmem:[#allocation2 + $0xa4] sm:$0xff]  }
 0x42c   : > { %v8576_v18 = vshrl.u32 %v16939_v0, 16 }
 0x42d   : > { %v6606_v22 = vsel %vm2491_vm2, %v6596_v6, %v6605_v58  ;;  %v8570_v6 = vshll.u32 %v16935_v62, 16 }
 0x42e   : > { %14682 = vmatmul.mubr.bf16.gmra.mrb[100].mxu0 %v6561_v17  ;;  %v8533_v17 = vrot.slane %v8531_v10, 2  ;;  %v16938_v10 = vld [vmem:[#allocation2 + $0x9c] sm:$0xff]  }
 0x42f   : > { %14685 = vmatprep.mubr.msk.bf16.mxu0 %vm17126_vm6, %v17125_v14  ;;  %14982 = vmatmul.mubr.bf16.gmra.mrb[28].mxu1 %v8493_v2  ;;  %v6608_v2 = vshrl.u32 %v16927_v44, 16  ;;  %v8572_v4 = vrot.slane %v8570_v6, 3  ;;  %v16957_v6 = vld [vmem:[#allocation2 + $0x24] sm:$0xff]  }
 0x430   : > { %14985 = vmatprep.mubr.msk.bf16.mxu1 %vm17126_vm6, %v17125_v14  ;;  %v8537_v47 = vor.u32 %v8536_v51, %v8533_v17  ;;  %v6647_v17 = vshll.u32 %v16938_v10, 16 }
 0x431   : > { %v6610_v54 = vrot.slane %v6608_v2, 1 }
 0x432   : > { %v8538_v29 = vsel %vm4227_vm4, %v8528_v8, %v8537_v47  ;;  %v6640_v8 = vrot.slane %v6638_v32, 2  ;;  %v16956_v32 = vld [vmem:[#allocation2 + $0x1c] sm:$0xff]  }
 0x433   : > { %v6614_v39 = vor.u32 %v6613_v23, %v6610_v54  ;;  %v16944_v23 = vld [vmem:[#allocation2 + $0xac] sm:$0x1f]  }
 0x434   : > { %v8585_v33 = vshrl.u32 %v16944_v23, 16 }
 0x435   : > { %v6615_v61 = vsel %vm2491_vm2, %v6605_v58, %v6614_v39  ;;  %v8579_v58 = vshll.u32 %v16939_v0, 16  ;;  %v16977_v0 = vld [vmem:[%s18968_s3 + $0x1a0] sm:$0xff]  }
 0x436   : > { %14686 = vmatmul.mubr.bf16.gmra.mrb[104].mxu0 %v6570_v30  ;;  %v8542_v30 = vrot.slane %v8540_v20, 2  ;;  %v16943_v20 = vld [vmem:[#allocation2 + $0xa4] ss:$0 sps:$4 sm:$0xff]   ;;  %v8587_v49 = vrot.slane %v8585_v33, 2  ;;  %v16963_v33 = vld [vmem:[#allocation2 + $0x34] sm:$0xff]  }
 0x437   : > { %14689 = vmatprep.mubr.msk.bf16.mxu0 %vm17126_vm6, %v17125_v14  ;;  %14986 = vmatmul.mubr.bf16.gmra.mrb[32].mxu1 %v8502_v34  ;;  %v6617_v34 = vshrl.u32 %v16929_v28, 16  ;;  %v8581_v54 = vrot.slane %v8579_v58, 3 }
 0x438   : > { %14989 = vmatprep.mubr.msk.bf16.mxu1 %vm17126_vm6, %v17125_v14  ;;  %v8546_v45 = vor.u32 %v8545_v31, %v8542_v30  ;;  %v6656_v30 = vshll.u32 %v16943_v20, 16 }
 0x439   : > { %v6619_v56 = vrot.slane %v6617_v34, 1 }
 0x43a   : > { %v8547_v57 = vsel %vm4227_vm4, %v8537_v47, %v8546_v45  ;;  %v6649_v47 = vrot.slane %v6647_v17, 2  ;;  %v17112_v17 = vld [vmem:[%s18968_s3 + $0xe0] sm:$0xff]  }
 0x43b   : > { %v6623_v15 = vor.u32 %v6622_v40, %v6619_v56 }
 0x43d   : > { %v6624_v46 = vsel %vm2491_vm2, %v6614_v39, %v6623_v15  ;;  %v8588_v39 = vshll.u32 %v16944_v23, 16 }
 0x43e   : > { %14690 = vmatmul.mubr.bf16.gmra.mrb[108].mxu0 %v6579_v37  ;;  %v8551_v37 = vrot.slane %v8549_v48, 2 }
 0x43f   : > { %14693 = vmatprep.mubr.msk.bf16.mxu0 %vm17126_vm6, %v17125_v14  ;;  %14990 = vmatmul.mubr.bf16.gmra.mrb[36].mxu1 %v8511_v25  ;;  %v6626_v25 = vshrl.u32 %v16932_v35, 16 }
 0x440   : > { %14993 = vmatprep.mubr.msk.bf16.mxu1 %vm17126_vm6, %v17125_v14  ;;  %v8555_v52 = vor.u32 %v8554_v60, %v8551_v37  ;;  %v16949_v37 = vld [vmem:[#allocation2 + $0x4] sm:$0xfc]   ;;  %v16950_v60 = vld [vmem:[#allocation2 + $0xc] sm:$0xff]  }
 0x441   : > { %v6628_v41 = vrot.slane %v6626_v25, 1  ;;  %v7214_v11 = vrot.slane %v16949_v37, 2  ;;  %v16952_v25 = vld [vmem:[#allocation2 + $0x14] sm:$0xff]   ;;  %v7215_v13 = vrot.slane %v16950_v60, 2  ;;  %v16966_v60 = vld [vmem:[#allocation2 + $0x3c] sm:$0xff]  }
 0x442   : > { %v8556_v1 = vsel %vm4227_vm4, %v8546_v45, %v8555_v52  ;;  %v6658_v45 = vrot.slane %v6656_v30, 2  ;;  %v9150_v42 = vrot.slane %v16952_v25, 3  ;;  %v17115_v30 = vld [vmem:[%s18968_s3 + $0xf8] sm:$0xff]   ;;  %v16967_v25 = vld [vmem:[#allocation2 + $0x44] sm:$0xff]  }
 0x443   : > { %v6632_v3 = vor.u32 %v6631_v63, %v6628_v41  ;;  %v16954_v41 = vld [vmem:[#allocation2 + $0x14] sm:$0xff]  }
 0x445   : > { %v6633_v7 = vsel %vm2491_vm2, %v6623_v15, %v6632_v3  ;;  %v16951_v15 = vld [vmem:[#allocation2 + $0xc] sm:$0xf8]  }
 0x446   : > { %14694 = vmatmul.mubr.bf16.gmra.mrb[112].mxu0 %v6588_v50  ;;  %v8560_v50 = vrot.slane %v8558_v55, 2  ;;  %v9149_v55 = vrot.slane %v16951_v15, 3 }
 0x447   : > { %14697 = vmatprep.mubr.msk.bf16.mxu0 %vm17126_vm6, %v17125_v14  ;;  %14994 = vmatmul.mubr.bf16.gmra.mrb[40].mxu1 %v8520_v27  ;;  %v6635_v27 = vshrl.u32 %v16934_v53, 16  ;;  %v16955_v53 = vld [vmem:[#allocation2 + $0x1c] sm:$0xff]  }
 0x448   : > { %14997 = vmatprep.mubr.msk.bf16.mxu1 %vm17126_vm6, %v17125_v14  ;;  %v8564_v5 = vor.u32 %v8563_v38, %v8560_v50  ;;  %v9151_v63 = vsel %vm4896_vm5, %v9149_v55, %v9150_v42  ;;  %v7217_v50 = vrot.slane %v16954_v41, 2  ;;  %v16958_v38 = vld [vmem:[%s18968_s3 + $0x188] sm:$0xff]   ;;  %v9152_v62 = vrot.slane %v16955_v53, 3 }
 0x449   : > { %v6637_v59 = vrot.slane %v6635_v27, 1  ;;  %v16969_v41 = vld [vmem:[#allocation2 + $0x4c] sm:$0xff]  }
 0x44a   : > { %v8565_v12 = vsel %vm4227_vm4, %v8555_v52, %v8564_v5  ;;  %v7216_v52 = vsel %vm3156_vm3, %v7214_v11, %v7215_v13  ;;  %v7218_v27 = vsel %vm3156_vm3, %v7215_v13, %v7217_v50  ;;  %v7227_v13 = vrot.slane %v16966_v60, 2 }
 0x44b   : > { %v6641_v44 = vor.u32 %v6640_v8, %v6637_v59  ;;  %v7219_v59 = vrot.slane %v16956_v32, 2  ;;  %v16972_v8 = vld [vmem:[%s18968_s3 + $0x198] sm:$0xff]   ;;  %v9164_v53 = vrot.slane %v16969_v41, 3 }
 0x44c   : > { %v16993_v41 = vld [vmem:[#allocation2 + $0x9c] sm:$0xff]  }
 0x44d   : > { %v6642_v2 = vsel %vm2491_vm2, %v6632_v3, %v6641_v44  ;;  %v17109_v3 = vld [vmem:[%s18968_s3 + $0xc8] sm:$0xff]  }
 0x44e   : > { %14698 = vmatmul.mubr.bf16.gmra.mrb[116].mxu0 %v6597_v16  ;;  %v8569_v16 = vrot.slane %v8567_v26, 2  ;;  %v9153_v26 = vsel %vm4896_vm5, %v9150_v42, %v9152_v62  ;;  %v16968_v42 = vld [vmem:[#allocation2 + $0x44] sm:$0xff]  }
 0x44f   : > { %14701 = vmatprep.mubr.msk.bf16.mxu0 %vm17126_vm6, %v17125_v14  ;;  %14998 = vmatmul.mubr.bf16.gmra.mrb[44].mxu1 %v8529_v9  ;;  %v6644_v9 = vshrl.u32 %v16938_v10, 16  ;;  %v9154_v10 = vrot.slane %v16957_v6, 3  ;;  %v16974_v6 = vld [vmem:[#allocation2 + $0x5c] sm:$0xff]  }
 0x450   : > { %15001 = vmatprep.mubr.msk.bf16.mxu1 %vm17126_vm6, %v17125_v14  ;;  %v8573_v51 = vor.u32 %v8572_v4, %v8569_v16  ;;  %v7220_v16 = vsel %vm3156_vm3, %v7217_v50, %v7219_v59  ;;  %v16959_v4 = vld [vmem:[#allocation2 + $0x24] sm:$0xff]   ;;  %v16970_v50 = vld [vmem:[#allocation2 + $0x4c] sm:$0xff]  }
 0x451   : > { %v6646_v19 = vrot.slane %v6644_v9, 1  ;;  %v16960_v9 = vld [vmem:[#allocation2 + $0x2c] sm:$0xff]  }
 0x452   : > { %v8574_v21 = vsel %vm4227_vm4, %v8564_v5, %v8573_v51  ;;  %v16965_v5 = vld [vmem:[%s18968_s3 + $0x190] sm:$0xff]   ;;  %v9156_v58 = vrot.slane %v16960_v9, 3  ;;  %v16978_v9 = vld [vmem:[#allocation2 + $0x64] sm:$0xff]  }
 0x453   : > { %v6650_v28 = vor.u32 %v6649_v47, %v6646_v19  ;;  %v16961_v47 = vld [vmem:[#allocation2 + $0x2c] sm:$0xff]  }
 0x454   : > { %v7223_v23 = vrot.slane %v16961_v47, 2 }
 0x455   : > { %v6651_v34 = vsel %vm2491_vm2, %v6641_v44, %v6650_v28  ;;  %v9155_v44 = vsel %vm4896_vm5, %v9152_v62, %v9154_v10  ;;  %v16971_v62 = vld [vmem:[#allocation2 + $0x54] sm:$0xff]  }
 0x456   : > { %14702 = vmatmul.mubr.bf16.gmra.mrb[120].mxu0 %v6606_v22  ;;  %v8578_v22 = vrot.slane %v8576_v18, 2  ;;  %v16984_v18 = vld [vmem:[%s18968_s3 + $0x1a8] sm:$0xff]  }
 0x457   : > { %14705 = vmatprep.mubr.msk.bf16.mxu0 %vm17126_vm6, %v17125_v14  ;;  %15002 = vmatmul.mubr.bf16.gmra.mrb[48].mxu1 %v8538_v29  ;;  %v6653_v29 = vshrl.u32 %v16943_v20, 16  ;;  %v16989_v20 = vld [vmem:[%s18968_s3 + $0x1b0] sm:$0xff]  }
 0x458   : > { %15005 = vmatprep.mubr.msk.bf16.mxu1 %vm17126_vm6, %v17125_v14  ;;  %v8582_v31 = vor.u32 %v8581_v54, %v8578_v22  ;;  %v16962_v22 = vld [vmem:[#allocation2 + $0x34] sm:$0xff]  }
 0x459   : > { %v6655_v43 = vrot.slane %v6653_v29, 1  ;;  %v17114_v54 = vld [vmem:[%s18968_s3 + $0xf0] sm:$0xff]   ;;  %v9158_v29 = vrot.slane %v16962_v22, 3 }
 0x45a   : > { %v8583_v48 = vsel %vm4227_vm4, %v8573_v51, %v8582_v31  ;;  %v7221_v51 = vrot.slane %v16959_v4, 2 }
 0x45b   : > { %v6659_v56 = vor.u32 %v6658_v45, %v6655_v43  ;;  %v7225_v45 = vrot.slane %v16963_v33, 2 }
 0x45c   : > { %v7222_v19 = vsel %vm3156_vm3, %v7219_v59, %v7221_v51  ;;  %v9168_v59 = vrot.slane %v16974_v6, 3  ;;  %v16998_v6 = vld [vmem:[#allocation2 + $0xac] sm:$0x1f]  }
 0x45d   : > { %v6660_v35 = vsel %vm2491_vm2, %v6650_v28, %v6659_v56  ;;  %v16996_v28 = vld [vmem:[%s18968_s3 + $0x1b8] sm:$0xff]   ;;  %v7226_v37 = vsel %vm3156_vm3, %v7223_v23, %v7225_v45  ;;  %v7228_v55 = vsel %vm3156_vm3, %v7225_v45, %v7227_v13 }
 0x45e   : > { %14706 = vmatmul.mubr.bf16.gmra.mrb[124].mxu0 %v6615_v61  ;;  %v8590_v61 = vrot.slane %v8588_v39, 3  ;;  %v9159_v39 = vsel %vm4896_vm5, %v9156_v58, %v9158_v29 }
 0x45f   : > { %14709 = vmatprep.mubr.msk.bf16.mxu0 %vm17126_vm6, %v17125_v14  ;;  %15006 = vmatmul.mubr.bf16.gmra.mrb[52].mxu1 %v8547_v57 }
 0x460   : > { %15009 = vmatprep.mubr.msk.bf16.mxu1 %vm17126_vm6, %v17125_v14  ;;  %v8591_v40 = vor.u32 %v8590_v61, %v8587_v49 }
 0x462   : > { %v8592_v57 = vsel %vm4227_vm4, %v8582_v31, %v8591_v40  ;;  %v7224_v31 = vsel %vm3156_vm3, %v7221_v51, %v7223_v23  ;;  %v16979_v51 = vld [vmem:[#allocation2 + $0x6c] sm:$0xff]   ;;  %v16982_v23 = vld [vmem:[#allocation2 + $0x74] sm:$0xff]  }
 0x466   : > { %14710 = vmatmul.mubr.bf16.gmra.mrb[128].mxu0 %v6624_v46  ;;  %v16953_v46 = vld [vmem:[%s18968_s3 + $0x180] sm:$0xff]  }
 0x467   : > { %14713 = vmatprep.mubr.msk.bf16.mxu0 %vm17126_vm6, %v17125_v14  ;;  %15010 = vmatmul.mubr.bf16.gmra.mrb[56].mxu1 %v8556_v1  ;;  %v17108_v1 = vld [vmem:[%s18968_s3 + $0xc0] sm:$0xff]  }
 0x468   : > { %15013 = vmatprep.mubr.msk.bf16.mxu1 %vm17126_vm6, %v17125_v14 }
 0x46e   : > { %14714 = vmatmul.mubr.bf16.gmra.mrb[132].mxu0 %v6633_v7  ;;  %v17110_v7 = vld [vmem:[%s18968_s3 + $0xd0] sm:$0xff]  }
 0x46f   : > { %14717 = vmatprep.mubr.msk.bf16.mxu0 %vm17126_vm6, %v17125_v14  ;;  %15014 = vmatmul.mubr.bf16.gmra.mrb[60].mxu1 %v8565_v12  ;;  %v17111_v12 = vld [vmem:[%s18968_s3 + $0xd8] sm:$0xff]  }
 0x470   : > { %15017 = vmatprep.mubr.msk.bf16.mxu1 %vm17126_vm6, %v17125_v14 }
 0x476   : > { %14718 = vmatmul.mubr.bf16.gmra.mrb[136].mxu0 %v6642_v2  ;;  %v17113_v2 = vld [vmem:[%s18968_s3 + $0xe8] sm:$0xff]  }
 0x477   : > { %14721 = vmatprep.mubr.msk.bf16.mxu0 %vm17126_vm6, %v17125_v14  ;;  %15018 = vmatmul.mubr.bf16.gmra.mrb[64].mxu1 %v8574_v21  ;;  %v9157_v21 = vsel %vm4896_vm5, %v9154_v10, %v9156_v58  ;;  %v16975_v10 = vld [vmem:[#allocation2 + $0x5c] sm:$0xff]   ;;  %v9172_v58 = vrot.slane %v16979_v51, 3 }
 0x478   : > { %15021 = vmatprep.mubr.msk.bf16.mxu1 %vm17126_vm6, %v17125_v14  ;;  %v7235_v4 = vrot.slane %v16975_v10, 2  ;;  %v17002_v51 = vld [vmem:[%s18968_s3 + $0x1c0] sm:$0xff]  }
 0x47e   : > { %14722 = vmatmul.mubr.bf16.gmra.mrb[140].mxu0 %v6651_v34  ;;  %v16964_v34 = vld [vmem:[#allocation2 + $0x3c] sm:$0xff]  }
 0x47f   : > { %14725 = vmatprep.mubr.msk.bf16.mxu0 %vm17126_vm6, %v17125_v14  ;;  %15022 = vmatmul.mubr.bf16.gmra.mrb[68].mxu1 %v8583_v48 }
 0x480   : > { %15025 = vmatprep.mubr.msk.bf16.mxu1 %vm17126_vm6, %v17125_v14 }
 0x486   : > { %14726 = vmatmul.mubr.bf16.gmra.mrb[144].mxu0 %v6660_v35 }
 0x487   : > { %14729 = vmatprep.mubr.msk.bf16.mxu0 %vm17126_vm6, %v17125_v14  ;;  %15026 = vmatmul.mubr.bf16.gmra.mrb[72].mxu1 %v8592_v57 }
 0x488   : > { %15029 = vmatprep.mubr.msk.bf16.mxu1 %vm17126_vm6, %v17125_v14 }
 0x48e   : > { %14730 = vmatmul.mubr.bf16.gmra.mrb[152].mxu0 %v6659_v56  ;;  %v9160_v56 = vrot.slane %v16964_v34, 3 }
 0x48f   : > { %14749 = vmatprep.mubr.msk.bf16.mxu0 %vm17126_vm6, %v17125_v14  ;;  %15030 = vmatmul.mubr.bf16.gmra.mrb[84].mxu1 %v8591_v40 }
 0x490   : > { %15049 = vmatprep.mubr.msk.bf16.mxu1 %vm17126_vm6, %v17125_v14  ;;  %v9161_v15 = vsel %vm4896_vm5, %v9158_v29, %v9160_v56  ;;  %v16983_v29 = vld [vmem:[#allocation2 + $0x7c] sm:$0xff]  }
 0x496   : > { %14750 = vmatmul.mubr.bf16.vlgmr.msra.gmra.mrb[68].mxu0 %v7216_v52  ;;  %v9162_v52 = vrot.slane %v16967_v25, 3  ;;  %v16991_v25 = vld [vmem:[#allocation2 + $0x94] sm:$0xff]  }
 0x497   : > { %14753 = vmatprep.mubr.msk.bf16.mxu0 %vm17126_vm6, %v17125_v14  ;;  %14834 = vmatpush3.bf16.msra.mxu0 %v17108_v1 }
 0x498   : > { %15050 = vmatmul.mubr.bf16.vlgmr.msra.gmra.mrb[80].mxu1 %v9151_v63  ;;  %14835 = vmatprep.subr.bf16.mxu0 %v17125_v14  ;;  %v7229_v63 = vrot.slane %v16968_v42, 2  ;;  %v16992_v42 = vld [vmem:[#allocation2 + $0x94] sm:$0xff]  }
 0x499   : > { %15134 = vmatpush3.bf16.msra.mxu1 %v16953_v46  ;;  %15053 = vmatprep.mubr.msk.bf16.mxu1 %vm17126_vm6, %v17125_v14  ;;  %v9163_v46 = vsel %vm4896_vm5, %v9160_v56, %v9162_v52  ;;  %v16987_v56 = vld [vmem:[#allocation2 + $0x84] sm:$0xff]  }
 0x49a   : > { %15135 = vmatprep.subr.bf16.mxu1 %v17125_v14  ;;  %v7230_v1 = vsel %vm3156_vm3, %v7227_v13, %v7229_v63 }
 0x49b   : > { %14836 = vmatpush3.bf16.msra.mxu0 %v17109_v3  ;;  %v7231_v3 = vrot.slane %v16970_v50, 2  ;;  %v16994_v50 = vld [vmem:[#allocation2 + $0x9c] sm:$0xff]  }
 0x49c   : > { %14837 = vmatprep.subr.bf16.mxu0 %v17125_v14 }
 0x49d   : > { %15136 = vmatpush3.bf16.msra.mxu1 %v16958_v38  ;;  %v9165_v38 = vsel %vm4896_vm5, %v9162_v52, %v9164_v53  ;;  %v7232_v32 = vsel %vm3156_vm3, %v7229_v63, %v7231_v3  ;;  %v9182_v52 = vrot.slane %v16991_v25, 3  ;;  %v7249_v63 = vrot.slane %v16992_v42, 2 }
 0x49e   : > { %14754 = vmatmul.mubr.bf16.gmra.mrb[72].mxu0 %v7218_v27  ;;  %15137 = vmatprep.subr.bf16.mxu1 %v17125_v14  ;;  %v9166_v27 = vrot.slane %v16971_v62, 3  ;;  %v16995_v62 = vld [vmem:[#allocation2 + $0xa4] sm:$0xff]  }
 0x49f   : > { %14757 = vmatprep.mubr.msk.bf16.mxu0 %vm17126_vm6, %v17125_v14  ;;  %14838 = vmatpush3.bf16.msra.mxu0 %v17110_v7 }
 0x4a0   : > { %15054 = vmatmul.mubr.bf16.gmra.mrb[0].mxu1 %v9153_v26  ;;  %14839 = vmatprep.subr.bf16.mxu0 %v17125_v14  ;;  %v9167_v26 = vsel %vm4896_vm5, %v9164_v53, %v9166_v27  ;;  %v9184_v53 = vrot.slane %v16993_v41, 3 }
 0x4a1   : > { %15057 = vmatprep.mubr.msk.bf16.mxu1 %vm17126_vm6, %v17125_v14  ;;  %15138 = vmatpush3.bf16.msra.mxu1 %v16965_v5  ;;  %v16973_v5 = vld [vmem:[#allocation2 + $0x54] sm:$0xff]  }
 0x4a2   : > { %15139 = vmatprep.subr.bf16.mxu1 %v17125_v14  ;;  %v7233_v7 = vrot.slane %v16973_v5, 2  ;;  %v16997_v5 = vld [vmem:[#allocation2 + $0xa4] ss:$0 sps:$4 sm:$0xff]  }
 0x4a3   : > { %14840 = vmatpush3.bf16.msra.mxu0 %v17111_v12  ;;  %v9169_v12 = vsel %vm4896_vm5, %v9166_v27, %v9168_v59  ;;  %v9186_v27 = vrot.slane %v16995_v62, 3  ;;  %v17012_v62 = vld [vmem:[#allocation2 + $0x5c] sm:$0xff]  }
 0x4a4   : > { %14841 = vmatprep.subr.bf16.mxu0 %v17125_v14 }
 0x4a5   : > { %15140 = vmatpush3.bf16.msra.mxu1 %v16972_v8  ;;  %v7234_v8 = vsel %vm3156_vm3, %v7231_v3, %v7233_v7  ;;  %v7251_v3 = vrot.slane %v16994_v50, 2 }
 0x4a6   : > { %14758 = vmatmul.mubr.bf16.gmra.mrb[76].mxu0 %v7220_v16  ;;  %15141 = vmatprep.subr.bf16.mxu1 %v17125_v14  ;;  %v16976_v16 = vld [vmem:[#allocation2 + $0x64] sm:$0xff]  }
 0x4a7   : > { %14761 = vmatprep.mubr.msk.bf16.mxu0 %vm17126_vm6, %v17125_v14  ;;  %14842 = vmatpush3.bf16.msra.mxu0 %v17112_v17 }
 0x4a8   : > { %15058 = vmatmul.mubr.bf16.gmra.mrb[4].mxu1 %v9155_v44  ;;  %14843 = vmatprep.subr.bf16.mxu0 %v17125_v14  ;;  %v7236_v44 = vsel %vm3156_vm3, %v7233_v7, %v7235_v4  ;;  %v7253_v7 = vrot.slane %v16997_v5, 2  ;;  %v9763_v5 = vrot.slane %v17012_v62, 3 }
 0x4a9   : > { %15061 = vmatprep.mubr.msk.bf16.mxu1 %vm17126_vm6, %v17125_v14  ;;  %15142 = vmatpush3.bf16.msra.mxu1 %v16977_v0  ;;  %v9170_v0 = vrot.slane %v16976_v16, 3  ;;  %v17000_v16 = vld [vmem:[#allocation2 + $0x14] sm:$0xf8]  }
 0x4aa   : > { %15143 = vmatprep.subr.bf16.mxu1 %v17125_v14 }
 0x4ab   : > { %14844 = vmatpush3.bf16.msra.mxu0 %v17113_v2  ;;  %v9171_v17 = vsel %vm4896_vm5, %v9168_v59, %v9170_v0  ;;  %v9173_v47 = vsel %vm4896_vm5, %v9170_v0, %v9172_v58  ;;  %v9188_v59 = vrot.slane %v16998_v6, 3 }
 0x4ac   : > { %14845 = vmatprep.subr.bf16.mxu0 %v17125_v14 }
 0x4ad   : > { %15144 = vmatpush3.bf16.msra.mxu1 %v16984_v18  ;;  %v7237_v18 = vrot.slane %v16978_v9, 2  ;;  %v9189_v10 = vsel %vm4896_vm5, %v9186_v27, %v9188_v59 }
 0x4ae   : > { %14762 = vmatmul.mubr.bf16.gmra.mrb[80].mxu0 %v7222_v19  ;;  %15145 = vmatprep.subr.bf16.mxu1 %v17125_v14  ;;  %v16980_v19 = vld [vmem:[#allocation2 + $0x6c] sm:$0xff]  }
 0x4af   : > { %14765 = vmatprep.mubr.msk.bf16.mxu0 %vm17126_vm6, %v17125_v14  ;;  %14846 = vmatpush3.bf16.msra.mxu0 %v17114_v54  ;;  %v7238_v2 = vsel %vm3156_vm3, %v7235_v4, %v7237_v18  ;;  %v17001_v4 = vld [vmem:[#allocation2 + $0x1c] sm:$0xff]  }
 0x4b0   : > { %15062 = vmatmul.mubr.bf16.gmra.mrb[8].mxu1 %v9157_v21  ;;  %14847 = vmatprep.subr.bf16.mxu0 %v17125_v14  ;;  %v7239_v21 = vrot.slane %v16980_v19, 2  ;;  %v9747_v9 = vrot.slane %v17001_v4, 3 }
 0x4b1   : > { %15065 = vmatprep.mubr.msk.bf16.mxu1 %vm17126_vm6, %v17125_v14  ;;  %15146 = vmatpush3.bf16.msra.mxu1 %v16989_v20  ;;  %v16981_v20 = vld [vmem:[#allocation2 + $0x74] sm:$0xff]  }
 0x4b2   : > { %15147 = vmatprep.subr.bf16.mxu1 %v17125_v14  ;;  %v9174_v22 = vrot.slane %v16981_v20, 3  ;;  %v7240_v54 = vsel %vm3156_vm3, %v7237_v18, %v7239_v21  ;;  %v17013_v20 = vld [vmem:[%s18968_s3 + $0x1d8] sm:$0xff]  }
 0x4b3   : > { %14848 = vmatpush3.bf16.msra.mxu0 %v17115_v30  ;;  %v7241_v30 = vrot.slane %v16982_v23, 2  ;;  %v17006_v23 = vld [vmem:[#allocation2 + $0x34] sm:$0xff]  }
 0x4b5   : > { %15148 = vmatpush3.bf16.msra.mxu1 %v16996_v28  ;;  %v9175_v28 = vsel %vm4896_vm5, %v9172_v58, %v9174_v22  ;;  %v7242_v33 = vsel %vm3156_vm3, %v7239_v21, %v7241_v30  ;;  %v17003_v58 = vld [vmem:[#allocation2 + $0x24] sm:$0xff]  }
 0x4b6   : > { %14766 = vmatmul.mubr.bf16.gmra.mrb[84].mxu0 %v7224_v31  ;;  %15233 = vmatprep.subr.bf16.mxu1 %v17125_v14  ;;  %v9176_v31 = vrot.slane %v16983_v29, 3  ;;  %v9749_v24 = vrot.slane %v17003_v58, 3  ;;  %v9753_v29 = vrot.slane %v17006_v23, 3 }
 0x4b7   : > { %14769 = vmatprep.mubr.msk.bf16.mxu0 %vm17126_vm6, %v17125_v14 }
 0x4b8   : > { %15066 = vmatmul.mubr.bf16.gmra.mrb[12].mxu1 %v9159_v39  ;;  %v16985_v39 = vld [vmem:[#allocation2 + $0x7c] sm:$0xff]   ;;  %v9177_v34 = vsel %vm4896_vm5, %v9174_v22, %v9176_v31  ;;  %v9750_v19 = vsel %vm4896_vm5, %v9747_v9, %v9749_v24 }
 0x4b9   : > { %v6265_v43 = vpop.f32.mrb[148].mxu0  ;;  %15069 = vmatprep.mubr.msk.bf16.mxu1 %vm17126_vm6, %v17125_v14  ;;  %v7243_v45 = vrot.slane %v16985_v39, 2  ;;  %v17016_v22 = vld [vmem:[%s18968_s3 + $0x1e0] sm:$0xff]   ;;  %v17027_v39 = vld [vmem:[%s18968_s3 + $0x1f8] sm:$0xff]  }
 0x4ba   : > { %6311 = vst [vmem:[#allocation3 + $0x140] sm:$0xf] %v6265_v43  ;;  %v14631_v48 = vpop.f32.mrb[149].mxu0  ;;  %v18503_v49 = vpop.f32.mrb[76].mxu1  ;;  %v16986_v43 = vld [vmem:[#allocation2 + $0x84] sm:$0xff]  }
 0x4bb   : > { %v6268_v61 = vpop.f32.mrb[150].mxu0  ;;  %v14931_v40 = vpop.f32.mrb[77].mxu1  ;;  %v9178_v48 = vrot.slane %v16986_v43, 3 }
 0x4bc   : > { %v14632_v35 = vpop.f32.mrb[151].mxu0  ;;  %v8115_v57 = vpop.f32.mrb[78].mxu1  ;;  %v7244_v61 = vsel %vm3156_vm3, %v7241_v30, %v7243_v45  ;;  %v17023_v30 = vld [vmem:[%s18968_s3 + $0x1f0] sm:$0xff]  }
 0x4bd   : > { %v14932_v11 = vpop.f32.mrb[79].mxu1  ;;  %v9179_v40 = vsel %vm4896_vm5, %v9176_v31, %v9178_v48  ;;  %v16988_v35 = vld [vmem:[#allocation2 + $0x8c] sm:$0xff]   ;;  %v7245_v57 = vrot.slane %v16987_v56, 2 }
 0x4be   : > { %14770 = vmatmul.mubr.bf16.gmra.mrb[88].mxu0 %v7226_v37  ;;  %v9180_v37 = vrot.slane %v16988_v35, 3  ;;  %v16990_v11 = vld [vmem:[#allocation2 + $0x8c] sm:$0xff]  }
 0x4bf   : > { %14773 = vmatprep.mubr.msk.bf16.mxu0 %vm17126_vm6, %v17125_v14  ;;  %v7246_v60 = vsel %vm3156_vm3, %v7243_v45, %v7245_v57  ;;  %v7247_v13 = vrot.slane %v16990_v11, 2  ;;  %v17008_v45 = vld [vmem:[#allocation2 + $0x44] sm:$0xff]  }
 0x4c0   : > { %15070 = vmatmul.mubr.bf16.gmra.mrb[16].mxu1 %v9161_v15  ;;  %v9181_v15 = vsel %vm4896_vm5, %v9178_v48, %v9180_v37 }
 0x4c1   : > { %15073 = vmatprep.mubr.msk.bf16.mxu1 %vm17126_vm6, %v17125_v14 }
 0x4c6   : > { %14774 = vmatmul.mubr.bf16.gmra.mrb[92].mxu0 %v7228_v55  ;;  %v7248_v55 = vsel %vm3156_vm3, %v7245_v57, %v7247_v13 }
 0x4c7   : > { %14777 = vmatprep.mubr.msk.bf16.mxu0 %vm17126_vm6, %v17125_v14 }
 0x4c8   : > { %15074 = vmatmul.mubr.bf16.gmra.mrb[20].mxu1 %v9163_v46  ;;  %v9183_v46 = vsel %vm4896_vm5, %v9180_v37, %v9182_v52  ;;  %v9757_v37 = vrot.slane %v17008_v45, 3 }
 0x4c9   : > { %15077 = vmatprep.mubr.msk.bf16.mxu1 %vm17126_vm6, %v17125_v14 }
 0x4ce   : > { %14778 = vmatmul.mubr.bf16.gmra.mrb[96].mxu0 %v7230_v1  ;;  %v7250_v1 = vsel %vm3156_vm3, %v7247_v13, %v7249_v63 }
 0x4cf   : > { %14781 = vmatprep.mubr.msk.bf16.mxu0 %vm17126_vm6, %v17125_v14 }
 0x4d0   : > { %15078 = vmatmul.mubr.bf16.gmra.mrb[24].mxu1 %v9165_v38  ;;  %v9185_v38 = vsel %vm4896_vm5, %v9182_v52, %v9184_v53  ;;  %v17010_v52 = vld [vmem:[#allocation2 + $0x4c] sm:$0xff]  }
 0x4d1   : > { %15081 = vmatprep.mubr.msk.bf16.mxu1 %vm17126_vm6, %v17125_v14 }
 0x4d6   : > { %14782 = vmatmul.mubr.bf16.gmra.mrb[100].mxu0 %v7232_v32  ;;  %v7252_v32 = vsel %vm3156_vm3, %v7249_v63, %v7251_v3 }
 0x4d7   : > { %14785 = vmatprep.mubr.msk.bf16.mxu0 %vm17126_vm6, %v17125_v14 }
 0x4d8   : > { %15082 = vmatmul.mubr.bf16.gmra.mrb[28].mxu1 %v9167_v26  ;;  %v9187_v26 = vsel %vm4896_vm5, %v9184_v53, %v9186_v27 }
 0x4d9   : > { %15085 = vmatprep.mubr.msk.bf16.mxu1 %vm17126_vm6, %v17125_v14 }
 0x4de   : > { %14786 = vmatmul.mubr.bf16.gmra.mrb[104].mxu0 %v7234_v8  ;;  %v7254_v8 = vsel %vm3156_vm3, %v7251_v3, %v7253_v7 }
 0x4df   : > { %14789 = vmatprep.mubr.msk.bf16.mxu0 %vm17126_vm6, %v17125_v14 }
 0x4e0   : > { %15086 = vmatmul.mubr.bf16.gmra.mrb[32].mxu1 %v9169_v12  ;;  %v16999_v12 = vld [vmem:[#allocation2 + $0xc] sm:$0xfc]  }
 0x4e1   : > { %15089 = vmatprep.mubr.msk.bf16.mxu1 %vm17126_vm6, %v17125_v14  ;;  %v7808_v0 = vrot.slane %v16999_v12, 2 }
 0x4e6   : > { %14790 = vmatmul.mubr.bf16.gmra.mrb[108].mxu0 %v7236_v44  ;;  %v9746_v44 = vrot.slane %v17000_v16, 3 }
 0x4e7   : > { %14793 = vmatprep.mubr.msk.bf16.mxu0 %vm17126_vm6, %v17125_v14 }
 0x4e8   : > { %15090 = vmatmul.mubr.bf16.gmra.mrb[36].mxu1 %v9171_v17  ;;  %v7810_v17 = vsel %vm3156_vm3, %v7808_v0, %v7809_v36  ;;  %v9748_v18 = vsel %vm4896_vm5, %v9746_v44, %v9747_v9  ;;  %v17009_v36 = vld [vmem:[%s18968_s3 + $0x1d0] sm:$0xff]  }
 0x4e9   : > { %15093 = vmatprep.mubr.msk.bf16.mxu1 %vm17126_vm6, %v17125_v14  ;;  %v17015_v0 = vld [vmem:[#allocation2 + $0x6c] sm:$0xff]  }
 0x4ee   : > { %14794 = vmatmul.mubr.bf16.gmra.mrb[112].mxu0 %v7238_v2  ;;  %v17005_v2 = vld [vmem:[%s18968_s3 + $0x1c8] sm:$0xff]  }
 0x4ef   : > { %14797 = vmatprep.mubr.msk.bf16.mxu0 %vm17126_vm6, %v17125_v14 }
 0x4f0   : > { %15094 = vmatmul.mubr.bf16.gmra.mrb[40].mxu1 %v9173_v47  ;;  %v17004_v47 = vld [vmem:[#allocation2 + $0x2c] sm:$0xff]  }
 0x4f1   : > { %15097 = vmatprep.mubr.msk.bf16.mxu1 %vm17126_vm6, %v17125_v14  ;;  %v9751_v21 = vrot.slane %v17004_v47, 3 }
 0x4f3   : > { %v9754_v31 = vsel %vm4896_vm5, %v9751_v21, %v9753_v29 }
 0x4f6   : > { %14798 = vmatmul.mubr.bf16.gmra.mrb[116].mxu0 %v7240_v54  ;;  %v9752_v54 = vsel %vm4896_vm5, %v9749_v24, %v9751_v21 }
 0x4f7   : > { %14801 = vmatprep.mubr.msk.bf16.mxu0 %vm17126_vm6, %v17125_v14 }
 0x4f8   : > { %15098 = vmatmul.mubr.bf16.gmra.mrb[44].mxu1 %v9175_v28  ;;  %v17020_v28 = vld [vmem:[%s18968_s3 + $0x1e8] sm:$0xff]  }
 0x4f9   : > { %15101 = vmatprep.mubr.msk.bf16.mxu1 %vm17126_vm6, %v17125_v14 }
 0x4fe   : > { %14802 = vmatmul.mubr.bf16.gmra.mrb[120].mxu0 %v7242_v33  ;;  %v17007_v33 = vld [vmem:[#allocation2 + $0x3c] sm:$0xff]  }
 0x4ff   : > { %14805 = vmatprep.mubr.msk.bf16.mxu0 %vm17126_vm6, %v17125_v14 }
 0x500   : > { %15102 = vmatmul.mubr.bf16.gmra.mrb[48].mxu1 %v9177_v34  ;;  %v9755_v34 = vrot.slane %v17007_v33, 3  ;;  %v17019_v33 = vld [vmem:[#allocation2 + $0x84] sm:$0xff]  }
 0x501   : > { %15105 = vmatprep.mubr.msk.bf16.mxu1 %vm17126_vm6, %v17125_v14  ;;  %v9773_v45 = vrot.slane %v17019_v33, 3 }
 0x502   : > { %v9756_v43 = vsel %vm4896_vm5, %v9753_v29, %v9755_v34  ;;  %v9758_v13 = vsel %vm4896_vm5, %v9755_v34, %v9757_v37 }
 0x506   : > { %14806 = vmatmul.mubr.bf16.gmra.mrb[124].mxu0 %v7244_v61  ;;  %v6970_v61 = vld [vmem:[#allocation3 + $0x140] sm:$0xf] }
 0x507   : > { %14809 = vmatprep.mubr.msk.bf16.mxu0 %vm17126_vm6, %v17125_v14 }
 0x508   : > { %15106 = vmatmul.mubr.bf16.gmra.mrb[52].mxu1 %v9179_v40 }
 0x509   : > { %15109 = vmatprep.mubr.msk.bf16.mxu1 %vm17126_vm6, %v17125_v14 }
 0x50e   : > { %14810 = vmatmul.mubr.bf16.gmra.mrb[128].mxu0 %v7246_v60 }
 0x50f   : > { %14813 = vmatprep.mubr.msk.bf16.mxu0 %vm17126_vm6, %v17125_v14 }
 0x510   : > { %15110 = vmatmul.mubr.bf16.gmra.mrb[56].mxu1 %v9181_v15 }
 0x511   : > { %15113 = vmatprep.mubr.msk.bf16.mxu1 %vm17126_vm6, %v17125_v14 }
 0x516   : > { %14814 = vmatmul.mubr.bf16.gmra.mrb[132].mxu0 %v7248_v55  ;;  %v9759_v55 = vrot.slane %v17010_v52, 3 }
 0x517   : > { %14817 = vmatprep.mubr.msk.bf16.mxu0 %vm17126_vm6, %v17125_v14 }
 0x518   : > { %15114 = vmatmul.mubr.bf16.gmra.mrb[60].mxu1 %v9183_v46  ;;  %v9760_v42 = vsel %vm4896_vm5, %v9757_v37, %v9759_v55  ;;  %v17011_v46 = vld [vmem:[#allocation2 + $0x54] sm:$0xff]  }
 0x519   : > { %15117 = vmatprep.mubr.msk.bf16.mxu1 %vm17126_vm6, %v17125_v14 }
 0x51e   : > { %14818 = vmatmul.mubr.bf16.gmra.mrb[136].mxu0 %v7250_v1  ;;  %v9761_v1 = vrot.slane %v17011_v46, 3 }
 0x51f   : > { %14821 = vmatprep.mubr.msk.bf16.mxu0 %vm17126_vm6, %v17125_v14 }
 0x520   : > { %15118 = vmatmul.mubr.bf16.gmra.mrb[64].mxu1 %v9185_v38  ;;  %v9762_v38 = vsel %vm4896_vm5, %v9759_v55, %v9761_v1  ;;  %v9764_v6 = vsel %vm4896_vm5, %v9761_v1, %v9763_v5 }
 0x521   : > { %15121 = vmatprep.mubr.msk.bf16.mxu1 %vm17126_vm6, %v17125_v14 }
 0x526   : > { %14822 = vmatmul.mubr.bf16.gmra.mrb[140].mxu0 %v7252_v32 }
 0x527   : > { %14825 = vmatprep.mubr.msk.bf16.mxu0 %vm17126_vm6, %v17125_v14 }
 0x528   : > { %15122 = vmatmul.mubr.bf16.gmra.mrb[68].mxu1 %v9187_v26 }
 0x529   : > { %15125 = vmatprep.mubr.msk.bf16.mxu1 %vm17126_vm6, %v17125_v14 }
 0x52e   : > { %14826 = vmatmul.mubr.bf16.gmra.mrb[144].mxu0 %v7254_v8 }
 0x52f   : > { %14829 = vmatprep.mubr.msk.bf16.mxu0 %vm17126_vm6, %v17125_v14 }
 0x530   : > { %15126 = vmatmul.mubr.bf16.gmra.mrb[72].mxu1 %v9189_v10 }
 0x531   : > { %15129 = vmatprep.mubr.msk.bf16.mxu1 %vm17126_vm6, %v17125_v14 }
 0x536   : > { %14830 = vmatmul.mubr.bf16.gmra.mrb[156].mxu0 %v7253_v7  ;;  %v17014_v7 = vld [vmem:[#allocation2 + $0x64] sm:$0xff]  }
 0x537   : > { %14849 = vmatprep.mubr.msk.bf16.mxu0 %vm17126_vm6, %v17125_v14  ;;  %v9765_v12 = vrot.slane %v17014_v7, 3 }
 0x538   : > { %15130 = vmatmul.mubr.bf16.gmra.mrb[88].mxu1 %v9188_v59 }
 0x539   : > { %15149 = vmatprep.mubr.msk.bf16.mxu1 %vm17126_vm6, %v17125_v14  ;;  %v9766_v4 = vsel %vm4896_vm5, %v9763_v5, %v9765_v12 }
 0x53e   : > { %14850 = vmatmul.mubr.bf16.vlgmr.msra.gmra.mrb[68].mxu0 %v7810_v17 }
 0x540   : > { %15150 = vmatmul.mubr.bf16.vlgmr.msra.gmra.mrb[80].mxu1 %v9748_v18 }
 0x541   : > { %15234 = vmatpush3.bf16.msra.mxu1 %v17002_v51  ;;  %15153 = vmatprep.mubr.msk.bf16.mxu1 %vm17126_vm6, %v17125_v14  ;;  %v9767_v51 = vrot.slane %v17015_v0, 3 }
 0x542   : > { %15235 = vmatprep.subr.bf16.mxu1 %v17125_v14 }
 0x543   : > { %v9768_v58 = vsel %vm4896_vm5, %v9765_v12, %v9767_v51 }
 0x545   : > { %15236 = vmatpush3.bf16.msra.mxu1 %v17005_v2  ;;  %v17017_v2 = vld [vmem:[#allocation2 + $0x74] sm:$0xff]  }
 0x546   : > { %15237 = vmatprep.subr.bf16.mxu1 %v17125_v14  ;;  %v9769_v47 = vrot.slane %v17017_v2, 3 }
 0x548   : > { %15154 = vmatmul.mubr.bf16.gmra.mrb[0].mxu1 %v9750_v19  ;;  %v9770_v21 = vsel %vm4896_vm5, %v9767_v51, %v9769_v47 }
 0x549   : > { %15157 = vmatprep.mubr.msk.bf16.mxu1 %vm17126_vm6, %v17125_v14  ;;  %15238 = vmatpush3.bf16.msra.mxu1 %v17009_v36 }
 0x54a   : > { %15239 = vmatprep.subr.bf16.mxu1 %v17125_v14 }
 0x54d   : > { %15240 = vmatpush3.bf16.msra.mxu1 %v17013_v20 }
 0x54e   : > { %15241 = vmatprep.subr.bf16.mxu1 %v17125_v14 }
 0x550   : > { %15158 = vmatmul.mubr.bf16.gmra.mrb[4].mxu1 %v9752_v54 }
 0x551   : > { %15161 = vmatprep.mubr.msk.bf16.mxu1 %vm17126_vm6, %v17125_v14  ;;  %15242 = vmatpush3.bf16.msra.mxu1 %v17016_v22  ;;  %v17018_v22 = vld [vmem:[#allocation2 + $0x7c] sm:$0xff]  }
 0x552   : > { %15243 = vmatprep.subr.bf16.mxu1 %v17125_v14  ;;  %v9771_v29 = vrot.slane %v17018_v22, 3 }
 0x555   : > { %15244 = vmatpush3.bf16.msra.mxu1 %v17020_v28 }
 0x556   : > { %15245 = vmatprep.subr.bf16.mxu1 %v17125_v14 }
 0x558   : > { %15162 = vmatmul.mubr.bf16.gmra.mrb[8].mxu1 %v9754_v31  ;;  %v9772_v31 = vsel %vm4896_vm5, %v9769_v47, %v9771_v29 }
 0x559   : > { %15165 = vmatprep.mubr.msk.bf16.mxu1 %vm17126_vm6, %v17125_v14  ;;  %15246 = vmatpush3.bf16.msra.mxu1 %v17023_v30 }
 0x55a   : > { %15247 = vmatprep.subr.bf16.mxu1 %v17125_v14 }
 0x55d   : > { %15248 = vmatpush3.bf16.msra.mxu1 %v17027_v39 }
 0x55e   : > { %15333 = vmatprep.subr.bf16.mxu1 %v17125_v14 }
 0x560   : > { %15166 = vmatmul.mubr.bf16.gmra.mrb[12].mxu1 %v9756_v43 }
 0x561   : > { %v6924_v48 = vpop.f32.mrb[152].mxu0  ;;  %15169 = vmatprep.mubr.msk.bf16.mxu1 %vm17126_vm6, %v17125_v14 }
 0x562   : > { %v7011_v56 = vadd.f32 %v6970_v61, %v6924_v48  ;;  %v14731_v40 = vpop.f32.mrb[153].mxu0  ;;  %v18649_v35 = vpop.f32.mrb[84].mxu1  ;;  %v9774_v61 = vsel %vm4896_vm5, %v9771_v29, %v9773_v45 }
 0x563   : > { %v6927_v57 = vpop.f32.mrb[154].mxu0  ;;  %v15031_v60 = vpop.f32.mrb[85].mxu1 }
 0x564   : > { %7052 = vst [vmem:[#allocation3 + $0x140] sm:$0xf] %v7011_v56  ;;  %v14732_v11 = vpop.f32.mrb[155].mxu0  ;;  %v8859_v15 = vpop.f32.mrb[86].mxu1  ;;  %v17021_v56 = vld [vmem:[#allocation2 + $0x8c] sm:$0xff]  }
 0x565   : > { %v15032_v25 = vpop.f32.mrb[87].mxu1  ;;  %v9775_v60 = vrot.slane %v17021_v56, 3 }
 0x566   : > { %v17022_v25 = vld [vmem:[#allocation2 + $0x94] sm:$0xff]  }
 0x567   : > { %v9776_v15 = vsel %vm4896_vm5, %v9773_v45, %v9775_v60 }
 0x568   : > { %15170 = vmatmul.mubr.bf16.gmra.mrb[16].mxu1 %v9758_v13 }
 0x569   : > { %15173 = vmatprep.mubr.msk.bf16.mxu1 %vm17126_vm6, %v17125_v14 }
 0x570   : > { %15174 = vmatmul.mubr.bf16.gmra.mrb[20].mxu1 %v9760_v42  ;;  %v9777_v42 = vrot.slane %v17022_v25, 3 }
 0x571   : > { %v7366_v41 = vpop.f32.mrb[72].mxu0  ;;  %15177 = vmatprep.mubr.msk.bf16.mxu1 %vm17126_vm6, %v17125_v14 }
 0x572   : > { %15555 = vst [vmem:[#allocation3 + $0x10] sm:$0xff] %v7366_v41  ;;  %v14755_v63 = vpop.f32.mrb[73].mxu0  ;;  %v9778_v41 = vsel %vm4896_vm5, %v9775_v60, %v9777_v42  ;;  %v17031_v60 = vld [vmem:[%s18968_s3 + $0x200] sm:$0xff]  }
 0x573   : > { %v7369_v53 = vpop.f32.mrb[74].mxu0  ;;  %v17024_v63 = vld [vmem:[#allocation2 + $0x9c] sm:$0xff]  }
 0x574   : > { %15558 = vst [vmem:[#allocation3 + $0x18] sm:$0xff] %v7369_v53  ;;  %v14756_v50 = vpop.f32.mrb[75].mxu0 }
 0x578   : > { %15178 = vmatmul.mubr.bf16.gmra.mrb[24].mxu1 %v9762_v38  ;;  %v9779_v38 = vrot.slane %v17024_v63, 3 }
 0x579   : > { %v7374_v3 = vpop.f32.mrb[76].mxu0  ;;  %15181 = vmatprep.mubr.msk.bf16.mxu1 %vm17126_vm6, %v17125_v14 }
 0x57a   : > { %15561 = vst [vmem:[#allocation3 + $0x20] sm:$0xff] %v7374_v3  ;;  %v14759_v27 = vpop.f32.mrb[77].mxu0  ;;  %v9780_v3 = vsel %vm4896_vm5, %v9777_v42, %v9779_v38 }
 0x57b   : > { %v7377_v32 = vpop.f32.mrb[78].mxu0  ;;  %v17025_v27 = vld [vmem:[#allocation2 + $0xa4] sm:$0xff]  }
 0x57c   : > { %15564 = vst [vmem:[#allocation3 + $0x28] sm:$0xff] %v7377_v32  ;;  %v14760_v26 = vpop.f32.mrb[79].mxu0 }
 0x580   : > { %15182 = vmatmul.mubr.bf16.gmra.mrb[28].mxu1 %v9764_v6  ;;  %v9781_v6 = vrot.slane %v17025_v27, 3  ;;  %v17035_v27 = vld [vmem:[#allocation2 + $0x34] sm:$0xff]  }
 0x581   : > { %v7382_v59 = vpop.f32.mrb[80].mxu0  ;;  %15185 = vmatprep.mubr.msk.bf16.mxu1 %vm17126_vm6, %v17125_v14 }
 0x582   : > { %15567 = vst [vmem:[#allocation3 + $0x30] sm:$0xff] %v7382_v59  ;;  %v14763_v8 = vpop.f32.mrb[81].mxu0  ;;  %v9782_v59 = vsel %vm4896_vm5, %v9779_v38, %v9781_v6 }
 0x583   : > { %v7385_v10 = vpop.f32.mrb[82].mxu0  ;;  %v17026_v8 = vld [vmem:[#allocation2 + $0xac] sm:$0xff]  }
 0x584   : > { %15570 = vst [vmem:[#allocation3 + $0x38] sm:$0xff] %v7385_v10  ;;  %v14764_v16 = vpop.f32.mrb[83].mxu0 }
 0x588   : > { %15186 = vmatmul.mubr.bf16.gmra.mrb[32].mxu1 %v9766_v4  ;;  %v9783_v4 = vrot.slane %v17026_v8, 3  ;;  %v10383_v8 = vshll.u32 %v17035_v27, 16 }
 0x589   : > { %v7390_v44 = vpop.f32.mrb[84].mxu0  ;;  %15189 = vmatprep.mubr.msk.bf16.mxu1 %vm17126_vm6, %v17125_v14 }
 0x58a   : > { %15573 = vst [vmem:[#allocation3 + $0x40] sm:$0xff] %v7390_v44  ;;  %v14767_v9 = vpop.f32.mrb[85].mxu0  ;;  %v17028_v44 = vld [vmem:[#allocation2 + $0xb4] sm:$0x1f]  }
 0x58b   : > { %v7393_v17 = vpop.f32.mrb[86].mxu0  ;;  %v9784_v9 = vsel %vm4896_vm5, %v9781_v6, %v9783_v4  ;;  %v9785_v51 = vrot.slane %v17028_v44, 3  ;;  %v17036_v44 = vld [vmem:[#allocation2 + $0x3c] sm:$0xff]  }
 0x58c   : > { %15576 = vst [vmem:[#allocation3 + $0x48] sm:$0xff] %v7393_v17  ;;  %v14768_v18 = vpop.f32.mrb[87].mxu0 }
 0x590   : > { %15190 = vmatmul.mubr.bf16.gmra.mrb[36].mxu1 %v9768_v58 }
 0x591   : > { %v7398_v24 = vpop.f32.mrb[88].mxu0  ;;  %15193 = vmatprep.mubr.msk.bf16.mxu1 %vm17126_vm6, %v17125_v14 }
 0x592   : > { %15579 = vst [vmem:[#allocation3 + $0x50] sm:$0xff] %v7398_v24  ;;  %v14771_v36 = vpop.f32.mrb[89].mxu0  ;;  %v9786_v24 = vsel %vm4896_vm5, %v9783_v4, %v9785_v51 }
 0x593   : > { %v7401_v19 = vpop.f32.mrb[90].mxu0  ;;  %v17029_v36 = vld [vmem:[#allocation2 + $0x14] sm:$0xf8]  }
 0x594   : > { %15582 = vst [vmem:[#allocation3 + $0x58] sm:$0xff] %v7401_v19  ;;  %v14772_v20 = vpop.f32.mrb[91].mxu0  ;;  %v17030_v19 = vld [vmem:[#allocation2 + $0x1c] sm:$0xff]   ;;  %v10345_v22 = vshrl.u32 %v17029_v36, 16 }
 0x598   : > { %15194 = vmatmul.mubr.bf16.gmra.mrb[40].mxu1 %v9770_v21 }
 0x599   : > { %v7406_v54 = vpop.f32.mrb[92].mxu0  ;;  %15197 = vmatprep.mubr.msk.bf16.mxu1 %vm17126_vm6, %v17125_v14 }
 0x59a   : > { %15585 = vst [vmem:[#allocation3 + $0x60] sm:$0xff] %v7406_v54  ;;  %v14775_v23 = vpop.f32.mrb[93].mxu0  ;;  %v10348_v54 = vshll.u32 %v17029_v36, 16 }
 0x59b   : > { %v7409_v28 = vpop.f32.mrb[94].mxu0  ;;  %v10353_v23 = vshrl.u32 %v17030_v19, 16 }
 0x59c   : > { %15588 = vst [vmem:[#allocation3 + $0x68] sm:$0xff] %v7409_v28  ;;  %v14776_v30 = vpop.f32.mrb[95].mxu0  ;;  %v10356_v28 = vshll.u32 %v17030_v19, 16  ;;  %v17052_v19 = vld [vmem:[%s18968_s3 + $0x230] sm:$0xff]  }
 0x59d   : > { %v10347_v30 = vrot.slane %v10345_v22, 3  ;;  %v10355_v33 = vrot.slane %v10353_v23, 3  ;;  %v17037_v22 = vld [vmem:[#allocation2 + $0x44] sm:$0xff]   ;;  %v17056_v23 = vld [vmem:[%s18968_s3 + $0x238] sm:$0xff]  }
 0x5a0   : > { %15198 = vmatmul.mubr.bf16.gmra.mrb[44].mxu1 %v9772_v31  ;;  %v10350_v31 = vrot.slane %v10348_v54, 4 }
 0x5a1   : > { %v7414_v39 = vpop.f32.mrb[96].mxu0  ;;  %15201 = vmatprep.mubr.msk.bf16.mxu1 %vm17126_vm6, %v17125_v14 }
 0x5a2   : > { %15591 = vst [vmem:[#allocation3 + $0x70] sm:$0xff] %v7414_v39  ;;  %v14779_v34 = vpop.f32.mrb[97].mxu0  ;;  %v10358_v39 = vrot.slane %v10356_v28, 4 }
 0x5a3   : > { %v7417_v43 = vpop.f32.mrb[98].mxu0  ;;  %v17032_v34 = vld [vmem:[#allocation2 + $0x24] sm:$0xff]  }
 0x5a4   : > { %15594 = vst [vmem:[#allocation3 + $0x78] sm:$0xff] %v7417_v43  ;;  %v14780_v48 = vpop.f32.mrb[99].mxu0  ;;  %v10359_v56 = vor.u32 %v10358_v39, %v10355_v33  ;;  %v10401_v33 = vshll.u32 %v17037_v22, 16 }
 0x5a8   : > { %15202 = vmatmul.mubr.bf16.gmra.mrb[48].mxu1 %v9774_v61  ;;  %v10351_v61 = vor.u32 %v10350_v31, %v10347_v30  ;;  %v10398_v31 = vshrl.u32 %v17037_v22, 16 }
 0x5a9   : > { %v7422_v40 = vpop.f32.mrb[100].mxu0  ;;  %15205 = vmatprep.mubr.msk.bf16.mxu1 %vm17126_vm6, %v17125_v14 }
 0x5aa   : > { %15597 = vst [vmem:[#allocation3 + $0x80] sm:$0xff] %v7422_v40  ;;  %v14783_v57 = vpop.f32.mrb[101].mxu0  ;;  %v10362_v40 = vshrl.u32 %v17032_v34, 16 }
 0x5ab   : > { %v7425_v37 = vpop.f32.mrb[102].mxu0  ;;  %v10365_v57 = vshll.u32 %v17032_v34, 16 }
 0x5ac   : > { %15600 = vst [vmem:[#allocation3 + $0x88] sm:$0xff] %v7425_v37  ;;  %v14784_v11 = vpop.f32.mrb[103].mxu0 }
 0x5ad   : > { %v10360_v11 = vsel %vm10343_vm7, %v10351_v61, %v10359_v56  ;;  %v10367_v25 = vrot.slane %v10365_v57, 4 }
 0x5b0   : > { %15206 = vmatmul.mubr.bf16.gmra.mrb[52].mxu1 %v9776_v15  ;;  %v10364_v15 = vrot.slane %v10362_v40, 3 }
 0x5b1   : > { %v7430_v13 = vpop.f32.mrb[104].mxu0  ;;  %15209 = vmatprep.mubr.msk.bf16.mxu1 %vm17126_vm6, %v17125_v14 }
 0x5b2   : > { %15603 = vst [vmem:[#allocation3 + $0x90] sm:$0xff] %v7430_v13  ;;  %v14787_v52 = vpop.f32.mrb[105].mxu0  ;;  %v17033_v13 = vld [vmem:[#allocation2 + $0x2c] sm:$0xff]  }
 0x5b3   : > { %v7433_v55 = vpop.f32.mrb[106].mxu0  ;;  %v10371_v63 = vshrl.u32 %v17033_v13, 16 }
 0x5b4   : > { %15606 = vst [vmem:[#allocation3 + $0x98] sm:$0xff] %v7433_v55  ;;  %v14788_v46 = vpop.f32.mrb[107].mxu0  ;;  %v17034_v55 = vld [vmem:[%s18968_s3 + $0x208] sm:$0xff]  }
 0x5b8   : > { %15210 = vmatmul.mubr.bf16.gmra.mrb[56].mxu1 %v9778_v41  ;;  %v10368_v41 = vor.u32 %v10367_v25, %v10364_v15 }
 0x5b9   : > { %v7438_v53 = vpop.f32.mrb[108].mxu0  ;;  %15213 = vmatprep.mubr.msk.bf16.mxu1 %vm17126_vm6, %v17125_v14 }
 0x5ba   : > { %15609 = vst [vmem:[#allocation3 + $0xa0] sm:$0xff] %v7438_v53  ;;  %v14791_v1 = vpop.f32.mrb[109].mxu0  ;;  %v10374_v53 = vshll.u32 %v17033_v13, 16  ;;  %v10369_v38 = vsel %vm10343_vm7, %v10359_v56, %v10368_v41  ;;  %v7564_v56 = vld [vmem:[#allocation3 + $0x140] sm:$0xf] }
 0x5bb   : > { %v7441_v50 = vpop.f32.mrb[110].mxu0 }
 0x5bc   : > { %15612 = vst [vmem:[#allocation3 + $0xa8] sm:$0xff] %v7441_v50  ;;  %v14792_v62 = vpop.f32.mrb[111].mxu0  ;;  %v17038_v50 = vld [vmem:[%s18968_s3 + $0x210] sm:$0xff]  }
 0x5bd   : > { %v10373_v62 = vrot.slane %v10371_v63, 3 }
 0x5c0   : > { %15214 = vmatmul.mubr.bf16.gmra.mrb[60].mxu1 %v9780_v3  ;;  %v10376_v3 = vrot.slane %v10374_v53, 4  ;;  %v17040_v53 = vld [vmem:[#allocation2 + $0x54] sm:$0xff]  }
 0x5c1   : > { %v7446_v32 = vpop.f32.mrb[112].mxu0  ;;  %15217 = vmatprep.mubr.msk.bf16.mxu1 %vm17126_vm6, %v17125_v14 }
 0x5c2   : > { %15615 = vst [vmem:[#allocation3 + $0xb0] sm:$0xff] %v7446_v32  ;;  %v14795_v5 = vpop.f32.mrb[113].mxu0 }
 0x5c3   : > { %v7449_v26 = vpop.f32.mrb[114].mxu0  ;;  %v17042_v5 = vld [vmem:[%s18968_s3 + $0x218] sm:$0xff]  }
 0x5c4   : > { %15618 = vst [vmem:[#allocation3 + $0xb8] sm:$0xff] %v7449_v26  ;;  %v14796_v7 = vpop.f32.mrb[115].mxu0 }
 0x5c5   : > { %v10377_v7 = vor.u32 %v10376_v3, %v10373_v62 }
 0x5c8   : > { %15218 = vmatmul.mubr.bf16.gmra.mrb[64].mxu1 %v9782_v59  ;;  %v10380_v59 = vshrl.u32 %v17035_v27, 16  ;;  %v10416_v27 = vshrl.u32 %v17040_v53, 16 }
 0x5c9   : > { %v7454_v10 = vpop.f32.mrb[116].mxu0  ;;  %15221 = vmatprep.mubr.msk.bf16.mxu1 %vm17126_vm6, %v17125_v14 }
 0x5ca   : > { %15621 = vst [vmem:[#allocation3 + $0xc0] sm:$0xff] %v7454_v10  ;;  %v14799_v12 = vpop.f32.mrb[117].mxu0  ;;  %v10382_v4 = vrot.slane %v10380_v59, 3 }
 0x5cb   : > { %v7457_v16 = vpop.f32.mrb[118].mxu0  ;;  %v17045_v12 = vld [vmem:[%s18968_s3 + $0x220] sm:$0xff]  }
 0x5cc   : > { %15624 = vst [vmem:[#allocation3 + $0xc8] sm:$0xff] %v7457_v16  ;;  %v14800_v0 = vpop.f32.mrb[119].mxu0  ;;  %v10378_v16 = vsel %vm10343_vm7, %v10368_v41, %v10377_v7 }
 0x5cd   : > { %v10385_v0 = vrot.slane %v10383_v8, 4  ;;  %v17041_v8 = vld [vmem:[#allocation2 + $0x5c] sm:$0xff]  }
 0x5d0   : > { %15222 = vmatmul.mubr.bf16.gmra.mrb[68].mxu1 %v9784_v9 }
 0x5d1   : > { %v7462_v17 = vpop.f32.mrb[120].mxu0  ;;  %15225 = vmatprep.mubr.msk.bf16.mxu1 %vm17126_vm6, %v17125_v14 }
 0x5d2   : > { %15627 = vst [vmem:[#allocation3 + $0xd0] sm:$0xff] %v7462_v17  ;;  %v14803_v18 = vpop.f32.mrb[121].mxu0  ;;  %v17049_v17 = vld [vmem:[%s18968_s3 + $0x228] sm:$0xff]  }
 0x5d3   : > { %v7465_v58 = vpop.f32.mrb[122].mxu0 }
 0x5d4   : > { %15630 = vst [vmem:[#allocation3 + $0xd8] sm:$0xff] %v7465_v58  ;;  %v14804_v2 = vpop.f32.mrb[123].mxu0  ;;  %v10386_v58 = vor.u32 %v10385_v0, %v10382_v4 }
 0x5d5   : > { %v10389_v2 = vshrl.u32 %v17036_v44, 16 }
 0x5d8   : > { %15226 = vmatmul.mubr.bf16.gmra.mrb[72].mxu1 %v9786_v24  ;;  %v10392_v24 = vshll.u32 %v17036_v44, 16 }
 0x5d9   : > { %v7470_v47 = vpop.f32.mrb[124].mxu0  ;;  %15229 = vmatprep.mubr.msk.bf16.mxu1 %vm17126_vm6, %v17125_v14 }
 0x5da   : > { %15633 = vst [vmem:[#allocation3 + $0xe0] sm:$0xff] %v7470_v47  ;;  %v14807_v20 = vpop.f32.mrb[125].mxu0  ;;  %v10387_v47 = vsel %vm10343_vm7, %v10377_v7, %v10386_v58  ;;  %v10418_v7 = vrot.slane %v10416_v27, 3 }
 0x5db   : > { %v7473_v21 = vpop.f32.mrb[126].mxu0  ;;  %v10391_v20 = vrot.slane %v10389_v2, 3 }
 0x5dc   : > { %15636 = vst [vmem:[#allocation3 + $0xe8] sm:$0xff] %v7473_v21  ;;  %v14808_v29 = vpop.f32.mrb[127].mxu0  ;;  %v10394_v21 = vrot.slane %v10392_v24, 4 }
 0x5de   : > { %v10395_v30 = vor.u32 %v10394_v21, %v10391_v20 }
 0x5e0   : > { %15230 = vmatmul.mubr.bf16.gmra.mrb[92].mxu1 %v9785_v51  ;;  %v10396_v34 = vsel %vm10343_vm7, %v10386_v58, %v10395_v30 }
 0x5e1   : > { %v7478_v43 = vpop.f32.mrb[128].mxu0  ;;  %15249 = vmatprep.mubr.msk.bf16.mxu1 %vm17126_vm6, %v17125_v14 }
 0x5e2   : > { %15639 = vst [vmem:[#allocation3 + $0xf0] sm:$0xff] %v7478_v43  ;;  %v14811_v45 = vpop.f32.mrb[129].mxu0  ;;  %v10400_v43 = vrot.slane %v10398_v31, 3 }
 0x5e3   : > { %v7481_v48 = vpop.f32.mrb[130].mxu0  ;;  %v10403_v45 = vrot.slane %v10401_v33, 4 }
 0x5e4   : > { %15642 = vst [vmem:[#allocation3 + $0xf8] sm:$0xff] %v7481_v48  ;;  %v14812_v37 = vpop.f32.mrb[131].mxu0  ;;  %v17039_v48 = vld [vmem:[#allocation2 + $0x4c] sm:$0xff]  }
 0x5e5   : > { %v10407_v15 = vshrl.u32 %v17039_v48, 16  ;;  %v10410_v25 = vshll.u32 %v17039_v48, 16 }
 0x5e7   : > { %v10409_v41 = vrot.slane %v10407_v15, 3  ;;  %v10412_v63 = vrot.slane %v10410_v25, 4 }
 0x5e8   : > { %15250 = vmatmul.mubr.bf16.vlgmr.msra.gmra.mrb[80].mxu1 %v10360_v11  ;;  %v10404_v11 = vor.u32 %v10403_v45, %v10400_v43  ;;  %v17047_v45 = vld [vmem:[#allocation2 + $0x7c] sm:$0xff]  }
 0x5e9   : > { %15334 = vmatpush3.bf16.msra.mxu1 %v17031_v60  ;;  %v7486_v52 = vpop.f32.mrb[132].mxu0  ;;  %15253 = vmatprep.mubr.msk.bf16.mxu1 %vm17126_vm6, %v17125_v14  ;;  %v10413_v3 = vor.u32 %v10412_v63, %v10409_v41 }
 0x5ea   : > { %15645 = vst [vmem:[#allocation3 + $0x100] sm:$0xff] %v7486_v52  ;;  %v14815_v42 = vpop.f32.mrb[133].mxu0  ;;  %15335 = vmatprep.subr.bf16.mxu1 %v17125_v14 }
 0x5eb   : > { %v7489_v46 = vpop.f32.mrb[134].mxu0 }
 0x5ec   : > { %15648 = vst [vmem:[#allocation3 + $0x108] sm:$0xff] %v7489_v46  ;;  %v14816_v1 = vpop.f32.mrb[135].mxu0  ;;  %v10405_v46 = vsel %vm10343_vm7, %v10395_v30, %v10404_v11 }
 0x5ed   : > { %15336 = vmatpush3.bf16.msra.mxu1 %v17034_v55 }
 0x5ee   : > { %15337 = vmatprep.subr.bf16.mxu1 %v17125_v14 }
 0x5f0   : > { %15254 = vmatmul.mubr.bf16.gmra.mrb[0].mxu1 %v10369_v38 }
 0x5f1   : > { %v7494_v32 = vpop.f32.mrb[136].mxu0  ;;  %15257 = vmatprep.mubr.msk.bf16.mxu1 %vm17126_vm6, %v17125_v14  ;;  %15338 = vmatpush3.bf16.msra.mxu1 %v17038_v50 }
 0x5f2   : > { %15651 = vst [vmem:[#allocation3 + $0x110] sm:$0xff] %v7494_v32  ;;  %v14819_v26 = vpop.f32.mrb[137].mxu0  ;;  %15339 = vmatprep.subr.bf16.mxu1 %v17125_v14  ;;  %v10419_v32 = vshll.u32 %v17040_v53, 16 }
 0x5f3   : > { %v7497_v6 = vpop.f32.mrb[138].mxu0 }
 0x5f4   : > { %15654 = vst [vmem:[#allocation3 + $0x118] sm:$0xff] %v7497_v6  ;;  %v14820_v10 = vpop.f32.mrb[139].mxu0  ;;  %v10414_v6 = vsel %vm10343_vm7, %v10404_v11, %v10413_v3  ;;  %v10421_v59 = vrot.slane %v10419_v32, 4 }
 0x5f5   : > { %15340 = vmatpush3.bf16.msra.mxu1 %v17042_v5 }
 0x5f6   : > { %15341 = vmatprep.subr.bf16.mxu1 %v17125_v14  ;;  %v10422_v10 = vor.u32 %v10421_v59, %v10418_v7  ;;  %v17053_v59 = vld [vmem:[#allocation2 + $0x9c] sm:$0xff]  }
 0x5f8   : > { %15258 = vmatmul.mubr.bf16.gmra.mrb[4].mxu1 %v10378_v16  ;;  %v10428_v16 = vshll.u32 %v17041_v8, 16  ;;  %v10423_v44 = vsel %vm10343_vm7, %v10413_v3, %v10422_v10  ;;  %v17051_v3 = vld [vmem:[#allocation2 + $0x94] sm:$0xff]  }
 0x5f9   : > { %v7502_v9 = vpop.f32.mrb[140].mxu0  ;;  %15261 = vmatprep.mubr.msk.bf16.mxu1 %vm17126_vm6, %v17125_v14  ;;  %15342 = vmatpush3.bf16.msra.mxu1 %v17045_v12  ;;  %v10425_v12 = vshrl.u32 %v17041_v8, 16  ;;  %v10488_v32 = vshrl.u32 %v17051_v3, 16 }
 0x5fa   : > { %15657 = vst [vmem:[#allocation3 + $0x120] sm:$0xff] %v7502_v9  ;;  %v14823_v51 = vpop.f32.mrb[141].mxu0  ;;  %15343 = vmatprep.subr.bf16.mxu1 %v17125_v14  ;;  %v10430_v9 = vrot.slane %v10428_v16, 4 }
 0x5fb   : > { %v7505_v18 = vpop.f32.mrb[142].mxu0 }
 0x5fc   : > { %15660 = vst [vmem:[#allocation3 + $0x128] sm:$0xff] %v7505_v18  ;;  %v14824_v36 = vpop.f32.mrb[143].mxu0 }
 0x5fd   : > { %15344 = vmatpush3.bf16.msra.mxu1 %v17049_v17  ;;  %v17043_v17 = vld [vmem:[#allocation2 + $0x64] sm:$0xff]  }
 0x5fe   : > { %15345 = vmatprep.subr.bf16.mxu1 %v17125_v14  ;;  %v10434_v18 = vshrl.u32 %v17043_v17, 16  ;;  %v10437_v58 = vshll.u32 %v17043_v17, 16 }
 0x600   : > { %15262 = vmatmul.mubr.bf16.gmra.mrb[8].mxu1 %v10387_v47  ;;  %v10436_v36 = vrot.slane %v10434_v18, 3  ;;  %v17044_v47 = vld [vmem:[#allocation2 + $0x6c] sm:$0xff]  }
 0x601   : > { %v7510_v54 = vpop.f32.mrb[144].mxu0  ;;  %15265 = vmatprep.mubr.msk.bf16.mxu1 %vm17126_vm6, %v17125_v14  ;;  %15346 = vmatpush3.bf16.msra.mxu1 %v17052_v19  ;;  %v10439_v19 = vrot.slane %v10437_v58, 4  ;;  %v10443_v21 = vshrl.u32 %v17044_v47, 16  ;;  %v10446_v22 = vshll.u32 %v17044_v47, 16  ;;  %v17057_v47 = vld [vmem:[#allocation2 + $0xb4] sm:$0x3f]  }
 0x602   : > { %15663 = vst [vmem:[#allocation3 + $0x130] sm:$0xff] %v7510_v54  ;;  %v14827_v28 = vpop.f32.mrb[145].mxu0  ;;  %15347 = vmatprep.subr.bf16.mxu1 %v17125_v14 }
 0x603   : > { %v7513_v29 = vpop.f32.mrb[146].mxu0  ;;  %v10440_v20 = vor.u32 %v10439_v19, %v10436_v36  ;;  %v10448_v28 = vrot.slane %v10446_v22, 4  ;;  %v10524_v22 = vshrl.u32 %v17057_v47, 16 }
 0x604   : > { %15666 = vst [vmem:[#allocation3 + $0x138] sm:$0xff] %v7513_v29  ;;  %v14828_v39 = vpop.f32.mrb[147].mxu0  ;;  %v17046_v29 = vld [vmem:[#allocation2 + $0x74] sm:$0xff]  }
 0x605   : > { %15348 = vmatpush3.bf16.msra.mxu1 %v17056_v23  ;;  %v10445_v23 = vrot.slane %v10443_v21, 3  ;;  %v10452_v31 = vshrl.u32 %v17046_v29, 16  ;;  %v10455_v33 = vshll.u32 %v17046_v29, 16 }
 0x606   : > { %15433 = vmatprep.subr.bf16.mxu1 %v17125_v14 }
 0x607   : > { %v10449_v30 = vor.u32 %v10448_v28, %v10445_v23  ;;  %v10457_v43 = vrot.slane %v10455_v33, 4  ;;  %v10526_v28 = vrot.slane %v10524_v22, 3  ;;  %v17099_v22 = vld [vmem:[%s17182_s29 + $0x60] sm:$0xff]  }
 0x608   : > { %15266 = vmatmul.mubr.bf16.gmra.mrb[12].mxu1 %v10396_v34  ;;  %v10454_v34 = vrot.slane %v10452_v31, 3 }
 0x609   : > { %v7518_v61 = vpop.f32.mrb[156].mxu0  ;;  %15269 = vmatprep.mubr.msk.bf16.mxu1 %vm17126_vm6, %v17125_v14  ;;  %v10450_v39 = vsel %vm10343_vm7, %v10440_v20, %v10449_v30 }
 0x60a   : > { %v7605_v40 = vadd.f32 %v7564_v56, %v7518_v61  ;;  %v14831_v57 = vpop.f32.mrb[157].mxu0  ;;  %v10458_v48 = vor.u32 %v10457_v43, %v10454_v34  ;;  %v10461_v61 = vshrl.u32 %v17047_v45, 16  ;;  %v10464_v56 = vshll.u32 %v17047_v45, 16  ;;  %v17058_v34 = vld [vmem:[#allocation2 + $0x18] sm:$0xff]   ;;  %v17062_v43 = vld [vmem:[%s18969_s4 + $0x8] sm:$0xff]   ;;  %v17066_v45 = vld [vmem:[%s18969_s4 + $0x10] sm:$0xff]  }
 0x60b   : > { %v9453_v37 = vpop.f32.mrb[88].mxu1  ;;  %v7521_v60 = vpop.f32.mrb[158].mxu0 }
 0x60c   : > { %7646 = vst [vmem:[#allocation3 + $0x140] sm:$0xf] %v7605_v40  ;;  %v15131_v13 = vpop.f32.mrb[89].mxu1  ;;  %v14832_v52 = vpop.f32.mrb[159].mxu0  ;;  %v10459_v40 = vsel %vm10343_vm7, %v10449_v30, %v10458_v48  ;;  %v10463_v57 = vrot.slane %v10461_v61, 3  ;;  %v17048_v60 = vld [vmem:[#allocation2 + $0x84] sm:$0xff]  }
 0x60d   : > { %v9456_v55 = vpop.f32.mrb[90].mxu1  ;;  %v10470_v15 = vshrl.u32 %v17048_v60, 16  ;;  %v10473_v25 = vshll.u32 %v17048_v60, 16  ;;  %v17070_v61 = vld [vmem:[%s18969_s4 + $0x18] sm:$0xff]   ;;  %v17063_v60 = vld [vmem:[#allocation2 + $0x30] sm:$0xff]  }
 0x60e   : > { %v15132_v42 = vpop.f32.mrb[91].mxu1 }
 0x60f   : > { %v10472_v52 = vrot.slane %v10470_v15, 3  ;;  %v10475_v55 = vrot.slane %v10473_v25, 4  ;;  %v17050_v42 = vld [vmem:[#allocation2 + $0x8c] sm:$0xff]   ;;  %v17064_v15 = vld [vmem:[#allocation2 + $0x38] sm:$0xff]  }
 0x610   : > { %15270 = vmatmul.mubr.bf16.gmra.mrb[16].mxu1 %v10405_v46  ;;  %v10479_v41 = vshrl.u32 %v17050_v42, 16  ;;  %v10482_v63 = vshll.u32 %v17050_v42, 16 }
 0x611   : > { %v18746_v1 = vpop.f32.mrb[68].mxu0  ;;  %15273 = vmatprep.mubr.msk.bf16.mxu1 %vm17126_vm6, %v17125_v14  ;;  %v10476_v46 = vor.u32 %v10475_v55, %v10472_v52 }
 0x612   : > { %v14851_v50 = vpop.f32.mrb[69].mxu0 }
 0x613   : > { %v8158_v38 = vld [vmem:[#allocation3 + $0x140] sm:$0xf]  ;;  %v18750_v62 = vpop.f32.mrb[70].mxu0  ;;  %v10481_v50 = vrot.slane %v10479_v41, 3  ;;  %v17065_v41 = vld [vmem:[#allocation2 + $0x40] sm:$0xff]  }
 0x614   : > { %v8199_v5 = vadd.f32 %v8158_v38, %v18503_v49  ;;  %v14852_v26 = vpop.f32.mrb[71].mxu0  ;;  %v10427_v49 = vrot.slane %v10425_v12, 3  ;;  %v10484_v38 = vrot.slane %v10482_v63, 4  ;;  %v10500_v12 = vshll.u32 %v17053_v59, 16  ;;  %v17067_v63 = vld [vmem:[#allocation2 + $0x48] sm:$0xff]  }
 0x616   : > { %8240 = vst [vmem:[#allocation3 + $0x140] sm:$0xf] %v8199_v5  ;;  %v10431_v51 = vor.u32 %v10430_v9, %v10427_v49  ;;  %v10485_v27 = vor.u32 %v10484_v38, %v10481_v50  ;;  %v10491_v5 = vshll.u32 %v17051_v3, 16  ;;  %v17069_v50 = vld [vmem:[#allocation2 + $0x58] sm:$0xff]   ;;  %v17071_v38 = vld [vmem:[#allocation2 + $0x60] sm:$0xff]   ;;  %v17072_v3 = vld [vmem:[#allocation2 + $0x68] sm:$0xff]  }
 0x618   : > { %15274 = vmatmul.mubr.bf16.gmra.mrb[20].mxu1 %v10414_v6  ;;  %v10432_v24 = vsel %vm10343_vm7, %v10422_v10, %v10431_v51  ;;  %v10441_v54 = vsel %vm10343_vm7, %v10431_v51, %v10440_v20  ;;  %v10486_v26 = vsel %vm10343_vm7, %v10476_v46, %v10485_v27  ;;  %v10490_v6 = vrot.slane %v10488_v32, 3  ;;  %v17075_v32 = vld [vmem:[#allocation2 + $0x78] sm:$0xff]  }
 0x619   : > { %15277 = vmatprep.mubr.msk.bf16.mxu1 %vm17126_vm6, %v17125_v14  ;;  %v10493_v7 = vrot.slane %v10491_v5, 4  ;;  %v10497_v10 = vshrl.u32 %v17053_v59, 16  ;;  %v17076_v5 = vld [vmem:[#allocation2 + $0x80] sm:$0xff]  }
 0x61a   : > { %v17082_v59 = vld [vmem:[#allocation2 + $0xa0] sm:$0xff]  }
 0x61b   : > { %v10494_v8 = vor.u32 %v10493_v7, %v10490_v6  ;;  %v17079_v6 = vld [vmem:[#allocation2 + $0x90] sm:$0xff]   ;;  %v17081_v7 = vld [vmem:[#allocation2 + $0x98] sm:$0xff]  }
 0x61d   : > { %v8902_v4 = vld [vmem:[#allocation3 + $0x140] sm:$0xf]  ;;  %v10495_v16 = vsel %vm10343_vm7, %v10485_v27, %v10494_v8  ;;  %v17074_v27 = vld [vmem:[#allocation2 + $0x70] sm:$0xff]  }
 0x61e   : > { %v8943_v0 = vadd.f32 %v8902_v4, %v18649_v35  ;;  %v10499_v4 = vrot.slane %v10497_v10, 3  ;;  %v17085_v10 = vld [vmem:[#allocation2 + $0xb0] sm:$0xff]  }
 0x620   : > { %8984 = vst [vmem:[#allocation3 + $0x140] sm:$0xf] %v8943_v0  ;;  %15278 = vmatmul.mubr.bf16.gmra.mrb[24].mxu1 %v10423_v44  ;;  %v10502_v0 = vrot.slane %v10500_v12, 4  ;;  %v17054_v44 = vld [vmem:[#allocation2 + $0xa4] sm:$0xff]  }
 0x621   : > { %15281 = vmatprep.mubr.msk.bf16.mxu1 %vm17126_vm6, %v17125_v14  ;;  %v10506_v9 = vshrl.u32 %v17054_v44, 16  ;;  %v10509_v17 = vshll.u32 %v17054_v44, 16  ;;  %v17086_v12 = vld [vmem:[#allocation2 + $0xb8] ss:$0 sps:$4 sm:$0x33]  }
 0x622   : > { %v10503_v49 = vor.u32 %v10502_v0, %v10499_v4  ;;  %v17088_v4 = vld [vmem:[%s17182_s29 + $0x8] sm:$0xff]   ;;  %v17089_v0 = vld [vmem:[%s17182_s29 + $0x10] sm:$0xff]   ;;  %v17090_v44 = vld [vmem:[%s17182_s29 + $0x18] sm:$0xff]  }
 0x623   : > { %v10508_v18 = vrot.slane %v10506_v9, 3  ;;  %v10511_v58 = vrot.slane %v10509_v17, 4 }
 0x624   : > { %v10504_v51 = vsel %vm10343_vm7, %v10494_v8, %v10503_v49  ;;  %v17083_v8 = vld [vmem:[#allocation2 + $0xa8] sm:$0xff]  }
 0x627   : > { %v9499_v2 = vld [vmem:[#allocation3 + $0x140] sm:$0xf] }
 0x628   : > { %v9540_v35 = vadd.f32 %v9499_v2, %v9453_v37  ;;  %15282 = vmatmul.mubr.bf16.gmra.mrb[28].mxu1 %v10432_v24  ;;  %v10466_v37 = vrot.slane %v10464_v56, 4  ;;  %v17055_v2 = vld [vmem:[#allocation2 + $0xac] sm:$0xff]   ;;  %v10512_v24 = vor.u32 %v10511_v58, %v10508_v18  ;;  %v17073_v56 = vld [vmem:[%s18969_s4 + $0x20] sm:$0xff]  }
 0x629   : > { %15285 = vmatprep.mubr.msk.bf16.mxu1 %vm17126_vm6, %v17125_v14  ;;  %v10515_v36 = vshrl.u32 %v17055_v2, 16  ;;  %v10518_v19 = vshll.u32 %v17055_v2, 16  ;;  %v17092_v58 = vld [vmem:[%s17182_s29 + $0x28] sm:$0xff]  }
 0x62a   : > { %9581 = vst [vmem:[#allocation3 + $0x140] sm:$0xf] %v9540_v35  ;;  %v10467_v11 = vor.u32 %v10466_v37, %v10463_v57  ;;  %v10513_v35 = vsel %vm10343_vm7, %v10503_v49, %v10512_v24  ;;  %v17077_v57 = vld [vmem:[%s18969_s4 + $0x28] sm:$0xff]   ;;  %v17080_v37 = vld [vmem:[%s18969_s4 + $0x30] sm:$0xff]   ;;  %v17091_v49 = vld [vmem:[%s17182_s29 + $0x20] sm:$0xff]  }
 0x62b   : > { %v10517_v20 = vrot.slane %v10515_v36, 3  ;;  %v10520_v21 = vrot.slane %v10518_v19, 4  ;;  %v17093_v36 = vld [vmem:[%s17182_s29 + $0x30] sm:$0xff]   ;;  %v17094_v19 = vld [vmem:[%s17182_s29 + $0x38] sm:$0xff]  }
 0x62c   : > { %v10468_v13 = vsel %vm10343_vm7, %v10458_v48, %v10467_v11  ;;  %v10477_v53 = vsel %vm10343_vm7, %v10467_v11, %v10476_v46  ;;  %v17060_v48 = vld [vmem:[#allocation2 + $0x20] sm:$0xff]   ;;  %v17084_v11 = vld [vmem:[%s18969_s4 + $0x38] sm:$0xff]  }
 0x62d   : > { %v10521_v23 = vor.u32 %v10520_v21, %v10517_v20  ;;  %v17097_v20 = vld [vmem:[%s17182_s29 + $0x50] sm:$0xff]   ;;  %v17098_v21 = vld [vmem:[%s17182_s29 + $0x58] sm:$0xff]  }
 0x62f   : > { %v10522_v30 = vsel %vm10343_vm7, %v10512_v24, %v10521_v23 }
 0x630   : > { %15286 = vmatmul.mubr.bf16.gmra.mrb[32].mxu1 %v10441_v54  ;;  %v10527_v54 = vshll.u32 %v17057_v47, 16  ;;  %v17095_v47 = vld [vmem:[%s17182_s29 + $0x40] sm:$0xff]  }
 0x631   : > { %15289 = vmatprep.mubr.msk.bf16.mxu1 %vm17126_vm6, %v17125_v14 }
 0x632   : > { %v10529_v29 = vrot.slane %v10527_v54, 4  ;;  %v17100_v54 = vld [vmem:[%s17182_s29 + $0x68] sm:$0xff]  }
 0x634   : > { %v10530_v31 = vor.u32 %v10529_v29, %v10526_v28  ;;  %v17102_v28 = vld [vmem:[%s17182_s29 + $0x78] sm:$0xff]   ;;  %v17103_v29 = vld [vmem:[%s17182_s29 + $0x80] sm:$0xff]  }
 0x636   : > { %v10531_v33 = vsel %vm10343_vm7, %v10521_v23, %v10530_v31  ;;  %v17101_v23 = vld [vmem:[%s17182_s29 + $0x70] sm:$0xff]  }
 0x638   : > { %15290 = vmatmul.mubr.bf16.gmra.mrb[36].mxu1 %v10450_v39  ;;  %v17059_v39 = vld [vmem:[%s18969_s4] sm:$0xff]  }
 0x639   : > { %15293 = vmatprep.mubr.msk.bf16.mxu1 %vm17126_vm6, %v17125_v14 }
 0x640   : > { %15294 = vmatmul.mubr.bf16.gmra.mrb[40].mxu1 %v10459_v40  ;;  %v17061_v40 = vld [vmem:[#allocation2 + $0x28] sm:$0xff]  }
 0x641   : > { %15297 = vmatprep.mubr.msk.bf16.mxu1 %vm17126_vm6, %v17125_v14 }
 0x648   : > { %15298 = vmatmul.mubr.bf16.gmra.mrb[44].mxu1 %v10468_v13  ;;  %v10096_v13 = vld [vmem:[#allocation3 + $0x140] sm:$0xf] }
 0x649   : > { %15301 = vmatprep.mubr.msk.bf16.mxu1 %vm17126_vm6, %v17125_v14 }
 0x650   : > { %15302 = vmatmul.mubr.bf16.gmra.mrb[48].mxu1 %v10477_v53  ;;  %v17068_v53 = vld [vmem:[#allocation2 + $0x50] sm:$0xff]  }
 0x651   : > { %15305 = vmatprep.mubr.msk.bf16.mxu1 %vm17126_vm6, %v17125_v14 }
 0x658   : > { %15306 = vmatmul.mubr.bf16.gmra.mrb[52].mxu1 %v10486_v26  ;;  %v17078_v26 = vld [vmem:[#allocation2 + $0x88] sm:$0xff]  }
 0x659   : > { %15309 = vmatprep.mubr.msk.bf16.mxu1 %vm17126_vm6, %v17125_v14 }
 0x660   : > { %15310 = vmatmul.mubr.bf16.gmra.mrb[56].mxu1 %v10495_v16  ;;  %v17087_v16 = vld [vmem:[%s17182_s29] sm:$0xff]  }
 0x661   : > { %15313 = vmatprep.mubr.msk.bf16.mxu1 %vm17126_vm6, %v17125_v14 }
 0x668   : > { %15314 = vmatmul.mubr.bf16.gmra.mrb[60].mxu1 %v10504_v51 }
 0x669   : > { %15317 = vmatprep.mubr.msk.bf16.mxu1 %vm17126_vm6, %v17125_v14 }
 0x670   : > { %15318 = vmatmul.mubr.bf16.gmra.mrb[64].mxu1 %v10513_v35  ;;  %v17096_v35 = vld [vmem:[%s17182_s29 + $0x48] sm:$0xff]  }
 0x671   : > { %15321 = vmatprep.mubr.msk.bf16.mxu1 %vm17126_vm6, %v17125_v14 }
 0x678   : > { %15322 = vmatmul.mubr.bf16.gmra.mrb[68].mxu1 %v10522_v30  ;;  %v17104_v30 = vld [vmem:[%s17182_s29 + $0x88] sm:$0xff]  }
 0x679   : > { %15325 = vmatprep.mubr.msk.bf16.mxu1 %vm17126_vm6, %v17125_v14 }
 0x680   : > { %15326 = vmatmul.mubr.bf16.gmra.mrb[72].mxu1 %v10531_v33  ;;  %v17106_v33 = vld [vmem:[%s17182_s29 + $0x98] sm:$0xff]  }
 0x681   : > { %15329 = vmatprep.mubr.msk.bf16.mxu1 %vm17126_vm6, %v17125_v14 }
 0x688   : > { %15330 = vmatmul.mubr.bf16.gmra.mrb[96].mxu1 %v10530_v31  ;;  %v17105_v31 = vld [vmem:[%s17182_s29 + $0x90] sm:$0xff]  }
 0x689   : > { %15349 = vmatprep.mubr.msk.bf16.mxu1 %vm17126_vm6, %v17125_v14 }
 0x690   : > { %15350 = vmatmul.mubr.bf16.vlgmr.msra.gmra.mrb[80].mxu1 %v17058_v34 }
 0x691   : > { %15434 = vmatpush3.bf16.msra.mxu1 %v17059_v39  ;;  %15353 = vmatprep.mubr.msk.bf16.mxu1 %vm17126_vm6, %v17125_v14  ;;  %v17107_v39 = vld [vmem:[%s17182_s29 + $0xa0] ss:$0 sps:$4 sm:$0x33]  }
 0x692   : > { %15435 = vmatprep.subr.bf16.mxu1 %v17125_v14 }
 0x695   : > { %15436 = vmatpush3.bf16.msra.mxu1 %v17062_v43 }
 0x696   : > { %15437 = vmatprep.subr.bf16.mxu1 %v17125_v14 }
 0x698   : > { %15354 = vmatmul.mubr.bf16.gmra.mrb[0].mxu1 %v17060_v48 }
 0x699   : > { %15357 = vmatprep.mubr.msk.bf16.mxu1 %vm17126_vm6, %v17125_v14  ;;  %15438 = vmatpush3.bf16.msra.mxu1 %v17066_v45 }
 0x69a   : > { %15439 = vmatprep.subr.bf16.mxu1 %v17125_v14 }
 0x69d   : > { %15440 = vmatpush3.bf16.msra.mxu1 %v17070_v61 }
 0x69e   : > { %15441 = vmatprep.subr.bf16.mxu1 %v17125_v14 }
 0x6a0   : > { %15358 = vmatmul.mubr.bf16.gmra.mrb[4].mxu1 %v17061_v40 }
 0x6a1   : > { %15361 = vmatprep.mubr.msk.bf16.mxu1 %vm17126_vm6, %v17125_v14  ;;  %15442 = vmatpush3.bf16.msra.mxu1 %v17073_v56 }
 0x6a2   : > { %15443 = vmatprep.subr.bf16.mxu1 %v17125_v14 }
 0x6a5   : > { %15444 = vmatpush3.bf16.msra.mxu1 %v17077_v57 }
 0x6a6   : > { %15445 = vmatprep.subr.bf16.mxu1 %v17125_v14 }
 0x6a8   : > { %15362 = vmatmul.mubr.bf16.gmra.mrb[8].mxu1 %v17063_v60 }
 0x6a9   : > { %15365 = vmatprep.mubr.msk.bf16.mxu1 %vm17126_vm6, %v17125_v14  ;;  %15446 = vmatpush3.bf16.msra.mxu1 %v17080_v37 }
 0x6aa   : > { %15447 = vmatprep.subr.bf16.mxu1 %v17125_v14 }
 0x6ad   : > { %15448 = vmatpush3.bf16.msra.mxu1 %v17084_v11 }
 0x6b0   : > { %15366 = vmatmul.mubr.bf16.gmra.mrb[12].mxu1 %v17064_v15 }
 0x6b1   : > { %15369 = vmatprep.mubr.msk.bf16.mxu1 %vm17126_vm6, %v17125_v14 }
 0x6b3   : > { %v10050_v25 = vpop.f32.mrb[92].mxu1 }
 0x6b4   : > { %v10137_v52 = vadd.f32 %v10096_v13, %v10050_v25  ;;  %v15231_v55 = vpop.f32.mrb[93].mxu1 }
 0x6b5   : > { %v10053_v42 = vpop.f32.mrb[94].mxu1  ;;  %v15556_v55 = vld [vmem:[#allocation3 + $0x10] sm:$0xff] }
 0x6b6   : > { %10178 = vst [vmem:[#allocation3 + $0x140] sm:$0xf] %v10137_v52  ;;  %v15232_v46 = vpop.f32.mrb[95].mxu1 }
 0x6b8   : > { %15370 = vmatmul.mubr.bf16.gmra.mrb[16].mxu1 %v17065_v41  ;;  %v15559_v41 = vld [vmem:[#allocation3 + $0x18] sm:$0xff] }
 0x6b9   : > { %15373 = vmatprep.mubr.msk.bf16.mxu1 %vm17126_vm6, %v17125_v14 }
 0x6bd   : > { %v10841_v17 = vld [vmem:[#allocation3 + $0x140] sm:$0xf] }
 0x6c0   : > { %15374 = vmatmul.mubr.bf16.gmra.mrb[20].mxu1 %v17067_v63 }
 0x6c1   : > { %15377 = vmatprep.mubr.msk.bf16.mxu1 %vm17126_vm6, %v17125_v14 }
 0x6c8   : > { %15378 = vmatmul.mubr.bf16.gmra.mrb[24].mxu1 %v17068_v53 }
 0x6c9   : > { %15381 = vmatprep.mubr.msk.bf16.mxu1 %vm17126_vm6, %v17125_v14 }
 0x6d0   : > { %15382 = vmatmul.mubr.bf16.gmra.mrb[28].mxu1 %v17069_v50 }
 0x6d1   : > { %15385 = vmatprep.mubr.msk.bf16.mxu1 %vm17126_vm6, %v17125_v14 }
 0x6d8   : > { %15386 = vmatmul.mubr.bf16.gmra.mrb[32].mxu1 %v17071_v38 }
 0x6d9   : > { %15389 = vmatprep.mubr.msk.bf16.mxu1 %vm17126_vm6, %v17125_v14 }
 0x6e0   : > { %15390 = vmatmul.mubr.bf16.gmra.mrb[36].mxu1 %v17072_v3 }
 0x6e1   : > { %15393 = vmatprep.mubr.msk.bf16.mxu1 %vm17126_vm6, %v17125_v14 }
 0x6e8   : > { %15394 = vmatmul.mubr.bf16.gmra.mrb[40].mxu1 %v17074_v27  ;;  %v15562_v27 = vld [vmem:[#allocation3 + $0x20] sm:$0xff] }
 0x6e9   : > { %15397 = vmatprep.mubr.msk.bf16.mxu1 %vm17126_vm6, %v17125_v14 }
 0x6f0   : > { %15398 = vmatmul.mubr.bf16.gmra.mrb[44].mxu1 %v17075_v32 }
 0x6f1   : > { %15401 = vmatprep.mubr.msk.bf16.mxu1 %vm17126_vm6, %v17125_v14 }
 0x6f8   : > { %15402 = vmatmul.mubr.bf16.gmra.mrb[48].mxu1 %v17076_v5 }
 0x6f9   : > { %15405 = vmatprep.mubr.msk.bf16.mxu1 %vm17126_vm6, %v17125_v14 }
 0x700   : > { %15406 = vmatmul.mubr.bf16.gmra.mrb[52].mxu1 %v17078_v26 }
 0x701   : > { %15409 = vmatprep.mubr.msk.bf16.mxu1 %vm17126_vm6, %v17125_v14 }
 0x708   : > { %15410 = vmatmul.mubr.bf16.gmra.mrb[56].mxu1 %v17079_v6  ;;  %v15565_v6 = vld [vmem:[#allocation3 + $0x28] sm:$0xff] }
 0x709   : > { %15413 = vmatprep.mubr.msk.bf16.mxu1 %vm17126_vm6, %v17125_v14 }
 0x710   : > { %15414 = vmatmul.mubr.bf16.gmra.mrb[60].mxu1 %v17081_v7 }
 0x711   : > { %15417 = vmatprep.mubr.msk.bf16.mxu1 %vm17126_vm6, %v17125_v14 }
 0x718   : > { %15418 = vmatmul.mubr.bf16.gmra.mrb[64].mxu1 %v17082_v59 }
 0x719   : > { %15421 = vmatprep.mubr.msk.bf16.mxu1 %vm17126_vm6, %v17125_v14 }
 0x720   : > { %15422 = vmatmul.mubr.bf16.gmra.mrb[68].mxu1 %v17083_v8 }
 0x721   : > { %15425 = vmatprep.mubr.msk.bf16.mxu1 %vm17126_vm6, %v17125_v14 }
 0x728   : > { %15426 = vmatmul.mubr.bf16.gmra.mrb[72].mxu1 %v17085_v10 }
 0x729   : > { %15429 = vmatprep.mubr.msk.bf16.mxu1 %vm17126_vm6, %v17125_v14 }
 0x730   : > { %15430 = vmatmul.mubr.bf16.gmra.mrb[100].mxu1 %v17086_v12 }
 0x731   : > { %15449 = vmatprep.mubr.msk.bf16.mxu1 %vm17126_vm6, %v17125_v14 }
 0x738   : > { %15450 = vmatmul.mubr.bf16.vlgmr.msra.gmra.mrb[80].mxu1 %v17087_v16 }
 0x739   : > { %15453 = vmatprep.mubr.msk.bf16.mxu1 %vm17126_vm6, %v17125_v14 }
 0x740   : > { %15454 = vmatmul.mubr.bf16.gmra.mrb[0].mxu1 %v17088_v4  ;;  %v15568_v4 = vld [vmem:[#allocation3 + $0x30] sm:$0xff] }
 0x741   : > { %15457 = vmatprep.mubr.msk.bf16.mxu1 %vm17126_vm6, %v17125_v14 }
 0x748   : > { %15458 = vmatmul.mubr.bf16.gmra.mrb[4].mxu1 %v17089_v0 }
 0x749   : > { %15461 = vmatprep.mubr.msk.bf16.mxu1 %vm17126_vm6, %v17125_v14 }
 0x750   : > { %15462 = vmatmul.mubr.bf16.gmra.mrb[8].mxu1 %v17090_v44 }
 0x751   : > { %15465 = vmatprep.mubr.msk.bf16.mxu1 %vm17126_vm6, %v17125_v14 }
 0x758   : > { %15466 = vmatmul.mubr.bf16.gmra.mrb[12].mxu1 %v17091_v49 }
 0x759   : > { %15469 = vmatprep.mubr.msk.bf16.mxu1 %vm17126_vm6, %v17125_v14 }
 0x75b   : > { %v10795_v9 = vpop.f32.mrb[96].mxu1 }
 0x75c   : > { %v10882_v51 = vadd.f32 %v10841_v17, %v10795_v9  ;;  %v15331_v18 = vpop.f32.mrb[97].mxu1  ;;  %v15571_v9 = vld [vmem:[#allocation3 + $0x38] sm:$0xff] }
 0x75d   : > { %v10798_v2 = vpop.f32.mrb[98].mxu1 }
 0x75e   : > { %10923 = vst [vmem:[#allocation3 + $0x140] sm:$0xf] %v10882_v51  ;;  %v15332_v24 = vpop.f32.mrb[99].mxu1 }
 0x760   : > { %15470 = vmatmul.mubr.bf16.gmra.mrb[16].mxu1 %v17092_v58 }
 0x761   : > { %15473 = vmatprep.mubr.msk.bf16.mxu1 %vm17126_vm6, %v17125_v14 }
 0x765   : > { %v11394_v43 = vld [vmem:[#allocation3 + $0x140] sm:$0xf] }
 0x768   : > { %15474 = vmatmul.mubr.bf16.gmra.mrb[20].mxu1 %v17093_v36  ;;  %v15574_v36 = vld [vmem:[#allocation3 + $0x40] sm:$0xff] }
 0x769   : > { %15477 = vmatprep.mubr.msk.bf16.mxu1 %vm17126_vm6, %v17125_v14 }
 0x770   : > { %15478 = vmatmul.mubr.bf16.gmra.mrb[24].mxu1 %v17094_v19 }
 0x771   : > { %15481 = vmatprep.mubr.msk.bf16.mxu1 %vm17126_vm6, %v17125_v14 }
 0x778   : > { %15482 = vmatmul.mubr.bf16.gmra.mrb[28].mxu1 %v17095_v47 }
 0x779   : > { %15485 = vmatprep.mubr.msk.bf16.mxu1 %vm17126_vm6, %v17125_v14 }
 0x780   : > { %15486 = vmatmul.mubr.bf16.gmra.mrb[32].mxu1 %v17096_v35 }
 0x781   : > { %15489 = vmatprep.mubr.msk.bf16.mxu1 %vm17126_vm6, %v17125_v14 }
 0x788   : > { %15490 = vmatmul.mubr.bf16.gmra.mrb[36].mxu1 %v17097_v20  ;;  %v15577_v20 = vld [vmem:[#allocation3 + $0x48] sm:$0xff] }
 0x789   : > { %15493 = vmatprep.mubr.msk.bf16.mxu1 %vm17126_vm6, %v17125_v14 }
 0x790   : > { %15494 = vmatmul.mubr.bf16.gmra.mrb[40].mxu1 %v17098_v21 }
 0x791   : > { %15497 = vmatprep.mubr.msk.bf16.mxu1 %vm17126_vm6, %v17125_v14 }
 0x798   : > { %15498 = vmatmul.mubr.bf16.gmra.mrb[44].mxu1 %v17099_v22 }
 0x799   : > { %15501 = vmatprep.mubr.msk.bf16.mxu1 %vm17126_vm6, %v17125_v14 }
 0x7a0   : > { %15502 = vmatmul.mubr.bf16.gmra.mrb[48].mxu1 %v17100_v54 }
 0x7a1   : > { %15505 = vmatprep.mubr.msk.bf16.mxu1 %vm17126_vm6, %v17125_v14 }
 0x7a8   : > { %15506 = vmatmul.mubr.bf16.gmra.mrb[52].mxu1 %v17101_v23 }
 0x7a9   : > { %15509 = vmatprep.mubr.msk.bf16.mxu1 %vm17126_vm6, %v17125_v14 }
 0x7b0   : > { %15510 = vmatmul.mubr.bf16.gmra.mrb[56].mxu1 %v17102_v28 }
 0x7b1   : > { %15513 = vmatprep.mubr.msk.bf16.mxu1 %vm17126_vm6, %v17125_v14 }
 0x7b8   : > { %15514 = vmatmul.mubr.bf16.gmra.mrb[60].mxu1 %v17103_v29 }
 0x7b9   : > { %15517 = vmatprep.mubr.msk.bf16.mxu1 %vm17126_vm6, %v17125_v14 }
 0x7c0   : > { %15518 = vmatmul.mubr.bf16.gmra.mrb[64].mxu1 %v17104_v30  ;;  %v15580_v30 = vld [vmem:[#allocation3 + $0x50] sm:$0xff] }
 0x7c1   : > { %15521 = vmatprep.mubr.msk.bf16.mxu1 %vm17126_vm6, %v17125_v14 }
 0x7c8   : > { %15522 = vmatmul.mubr.bf16.gmra.mrb[68].mxu1 %v17105_v31 }
 0x7c9   : > { %15525 = vmatprep.mubr.msk.bf16.mxu1 %vm17126_vm6, %v17125_v14 }
 0x7d0   : > { %15526 = vmatmul.mubr.bf16.gmra.mrb[72].mxu1 %v17106_v33 }
 0x7d1   : > { %15529 = vmatprep.mubr.msk.bf16.mxu1 %vm17126_vm6, %v17125_v14 }
 0x7d8   : > { %15530 = vmatmul.mubr.bf16.gmra.mrb[104].mxu1 %v17107_v39 }
 0x803   : > { %v11348_v34 = vpop.f32.mrb[100].mxu1 }
 0x804   : > { %v11435_v45 = vadd.f32 %v11394_v43, %v11348_v34  ;;  %v15431_v48 = vpop.f32.mrb[101].mxu1  ;;  %v15583_v34 = vld [vmem:[#allocation3 + $0x58] sm:$0xff] }
 0x805   : > { %v11351_v61 = vpop.f32.mrb[102].mxu1 }
 0x806   : > { %11476 = vst [vmem:[#allocation3 + $0x140] sm:$0xf] %v11435_v45  ;;  %v15432_v56 = vpop.f32.mrb[103].mxu1 }
 0x80b   : > { %v11781_v40 = vpop.f32.mrb[80].mxu1 }
 0x80c   : > { %v15551_v57 = vadd.f32 %v11781_v40, %v18746_v1  ;;  %v15451_v37 = vpop.f32.mrb[81].mxu1 }
 0x80d   : > { %v11784_v60 = vpop.f32.mrb[82].mxu1 }
 0x80e   : > { %v15554_v11 = vadd.f32 %v11784_v60, %v18750_v62  ;;  %v15452_v15 = vpop.f32.mrb[83].mxu1  ;;  %v12070_v25 = vmax.f32 %v15551_v57, 0.0  ;;  %v15586_v57 = vld [vmem:[#allocation3 + $0x60] sm:$0xff] }
 0x80f   : > { %v15589_v15 = vld [vmem:[#allocation3 + $0x68] sm:$0xff] }
 0x810   : > { %v12071_v14 = vmax.f32 %v15554_v11, 0.0 }
 0x812   : > { %v13408_v13 = vpack.c.bf16 %v12071_v14, %v12070_v25 }
 0x813   : > { %v11789_v52 = vpop.f32.mrb[0].mxu1 }
 0x814   : > { %13409 = vst [vmem:[%s18939_s14] sm:$0xff] %v13408_v13   ;;  %v15557_v1 = vadd.f32 %v15556_v55, %v11789_v52  ;;  %v15455_v42 = vpop.f32.mrb[1].mxu1 }
 0x815   : > { %v11792_v46 = vpop.f32.mrb[2].mxu1  ;;  %v15592_v42 = vld [vmem:[#allocation3 + $0x70] sm:$0xff] }
 0x816   : > { %11990 = vst [vmem:[#allocation3 + $0x10] sm:$0xff] %v15557_v1  ;;  %v15560_v62 = vadd.f32 %v15559_v41, %v11792_v46  ;;  %v15456_v63 = vpop.f32.mrb[3].mxu1  ;;  %v12072_v53 = vmax.f32 %v15557_v1, 0.0 }
 0x817   : > { %v15595_v63 = vld [vmem:[#allocation3 + $0x78] sm:$0xff] }
 0x818   : > { %11991 = vst [vmem:[#allocation3 + $0x18] sm:$0xff] %v15560_v62  ;;  %v12073_v50 = vmax.f32 %v15560_v62, 0.0 }
 0x81a   : > { %v13413_v38 = vpack.c.bf16 %v12073_v50, %v12072_v53 }
 0x81b   : > { %v11797_v3 = vpop.f32.mrb[4].mxu1 }
 0x81c   : > { %13522 = vst [vmem:[%s18939_s14 + $0x8] sm:$0xff] %v13413_v38   ;;  %v15563_v32 = vadd.f32 %v15562_v27, %v11797_v3  ;;  %v15459_v5 = vpop.f32.mrb[5].mxu1 }
 0x81d   : > { %v11800_v26 = vpop.f32.mrb[6].mxu1  ;;  %v15598_v5 = vld [vmem:[#allocation3 + $0x80] sm:$0xff] }
 0x81e   : > { %11992 = vst [vmem:[#allocation3 + $0x20] sm:$0xff] %v15563_v32  ;;  %v15566_v7 = vadd.f32 %v15565_v6, %v11800_v26  ;;  %v15460_v59 = vpop.f32.mrb[7].mxu1  ;;  %v12074_v8 = vmax.f32 %v15563_v32, 0.0 }
 0x81f   : > { %v15601_v59 = vld [vmem:[#allocation3 + $0x88] sm:$0xff] }
 0x820   : > { %11993 = vst [vmem:[#allocation3 + $0x28] sm:$0xff] %v15566_v7  ;;  %v12075_v10 = vmax.f32 %v15566_v7, 0.0 }
 0x822   : > { %v13418_v12 = vpack.c.bf16 %v12075_v10, %v12074_v8 }
 0x823   : > { %v11805_v16 = vpop.f32.mrb[8].mxu1 }
 0x824   : > { %13523 = vst [vmem:[%s18939_s14 + $0x10] sm:$0xff] %v13418_v12   ;;  %v15569_v0 = vadd.f32 %v15568_v4, %v11805_v16  ;;  %v15463_v44 = vpop.f32.mrb[9].mxu1 }
 0x825   : > { %v11808_v49 = vpop.f32.mrb[10].mxu1  ;;  %v15604_v44 = vld [vmem:[#allocation3 + $0x90] sm:$0xff] }
 0x826   : > { %11994 = vst [vmem:[#allocation3 + $0x30] sm:$0xff] %v15569_v0  ;;  %v15572_v17 = vadd.f32 %v15571_v9, %v11808_v49  ;;  %v15464_v51 = vpop.f32.mrb[11].mxu1  ;;  %v12076_v18 = vmax.f32 %v15569_v0, 0.0 }
 0x827   : > { %v15607_v51 = vld [vmem:[#allocation3 + $0x98] sm:$0xff] }
 0x828   : > { %11995 = vst [vmem:[#allocation3 + $0x38] sm:$0xff] %v15572_v17  ;;  %v12077_v58 = vmax.f32 %v15572_v17, 0.0 }
 0x82a   : > { %v13423_v2 = vpack.c.bf16 %v12077_v58, %v12076_v18 }
 0x82b   : > { %v11813_v24 = vpop.f32.mrb[12].mxu1 }
 0x82c   : > { %13524 = vst [vmem:[%s18939_s14 + $0x18] sm:$0xff] %v13423_v2   ;;  %v15575_v19 = vadd.f32 %v15574_v36, %v11813_v24  ;;  %v15467_v47 = vpop.f32.mrb[13].mxu1 }
 0x82d   : > { %v11816_v35 = vpop.f32.mrb[14].mxu1  ;;  %v15610_v47 = vld [vmem:[#allocation3 + $0xa0] sm:$0xff] }
 0x82e   : > { %11996 = vst [vmem:[#allocation3 + $0x40] sm:$0xff] %v15575_v19  ;;  %v15578_v21 = vadd.f32 %v15577_v20, %v11816_v35  ;;  %v15468_v22 = vpop.f32.mrb[15].mxu1  ;;  %v12078_v54 = vmax.f32 %v15575_v19, 0.0 }
 0x82f   : > { %v15613_v22 = vld [vmem:[#allocation3 + $0xa8] sm:$0xff] }
 0x830   : > { %11997 = vst [vmem:[#allocation3 + $0x48] sm:$0xff] %v15578_v21  ;;  %v12079_v23 = vmax.f32 %v15578_v21, 0.0 }
 0x832   : > { %v13428_v28 = vpack.c.bf16 %v12079_v23, %v12078_v54 }
 0x833   : > { %v11821_v29 = vpop.f32.mrb[16].mxu1 }
 0x834   : > { %13525 = vst [vmem:[%s18939_s14 + $0x20] sm:$0xff] %v13428_v28   ;;  %v15581_v31 = vadd.f32 %v15580_v30, %v11821_v29  ;;  %v15471_v33 = vpop.f32.mrb[17].mxu1 }
 0x835   : > { %v11824_v39 = vpop.f32.mrb[18].mxu1  ;;  %v15616_v33 = vld [vmem:[#allocation3 + $0xb0] sm:$0xff] }
 0x836   : > { %11998 = vst [vmem:[#allocation3 + $0x50] sm:$0xff] %v15581_v31  ;;  %v15584_v43 = vadd.f32 %v15583_v34, %v11824_v39  ;;  %v15472_v45 = vpop.f32.mrb[19].mxu1  ;;  %v12080_v48 = vmax.f32 %v15581_v31, 0.0 }
 0x837   : > { %v15619_v45 = vld [vmem:[#allocation3 + $0xb8] sm:$0xff] }
 0x838   : > { %11999 = vst [vmem:[#allocation3 + $0x58] sm:$0xff] %v15584_v43  ;;  %v12081_v61 = vmax.f32 %v15584_v43, 0.0 }
 0x83a   : > { %v13433_v56 = vpack.c.bf16 %v12081_v61, %v12080_v48 }
 0x83b   : > { %v11829_v40 = vpop.f32.mrb[20].mxu1 }
 0x83c   : > { %13526 = vst [vmem:[%s18939_s14 + $0x28] sm:$0xff] %v13433_v56   ;;  %v15587_v37 = vadd.f32 %v15586_v57, %v11829_v40  ;;  %v15475_v60 = vpop.f32.mrb[21].mxu1 }
 0x83d   : > { %v11832_v11 = vpop.f32.mrb[22].mxu1  ;;  %v15622_v60 = vld [vmem:[#allocation3 + $0xc0] sm:$0xff] }
 0x83e   : > { %12000 = vst [vmem:[#allocation3 + $0x60] sm:$0xff] %v15587_v37  ;;  %v15590_v25 = vadd.f32 %v15589_v15, %v11832_v11  ;;  %v15476_v14 = vpop.f32.mrb[23].mxu1  ;;  %v12082_v13 = vmax.f32 %v15587_v37, 0.0 }
 0x83f   : > { %v15625_v14 = vld [vmem:[#allocation3 + $0xc8] sm:$0xff] }
 0x840   : > { %12001 = vst [vmem:[#allocation3 + $0x68] sm:$0xff] %v15590_v25  ;;  %v12083_v52 = vmax.f32 %v15590_v25, 0.0 }
 0x842   : > { %v13438_v55 = vpack.c.bf16 %v12083_v52, %v12082_v13 }
 0x843   : > { %v11837_v1 = vpop.f32.mrb[24].mxu1 }
 0x844   : > { %13527 = vst [vmem:[%s18939_s14 + $0x30] sm:$0xff] %v13438_v55   ;;  %v15593_v46 = vadd.f32 %v15592_v42, %v11837_v1  ;;  %v15479_v41 = vpop.f32.mrb[25].mxu1 }
 0x845   : > { %v11840_v62 = vpop.f32.mrb[26].mxu1  ;;  %v15628_v41 = vld [vmem:[#allocation3 + $0xd0] sm:$0xff] }
 0x846   : > { %12002 = vst [vmem:[#allocation3 + $0x70] sm:$0xff] %v15593_v46  ;;  %v15596_v53 = vadd.f32 %v15595_v63, %v11840_v62  ;;  %v15480_v50 = vpop.f32.mrb[27].mxu1  ;;  %v12084_v38 = vmax.f32 %v15593_v46, 0.0 }
 0x847   : > { %v15631_v50 = vld [vmem:[#allocation3 + $0xd8] sm:$0xff] }
 0x848   : > { %12003 = vst [vmem:[#allocation3 + $0x78] sm:$0xff] %v15596_v53  ;;  %v12085_v3 = vmax.f32 %v15596_v53, 0.0 }
 0x84a   : > { %v13443_v27 = vpack.c.bf16 %v12085_v3, %v12084_v38 }
 0x84b   : > { %v11845_v32 = vpop.f32.mrb[28].mxu1 }
 0x84c   : > { %13528 = vst [vmem:[%s18939_s14 + $0x38] sm:$0xff] %v13443_v27   ;;  %v15599_v26 = vadd.f32 %v15598_v5, %v11845_v32  ;;  %v15483_v6 = vpop.f32.mrb[29].mxu1 }
 0x84d   : > { %v11848_v7 = vpop.f32.mrb[30].mxu1  ;;  %v15634_v6 = vld [vmem:[#allocation3 + $0xe0] sm:$0xff] }
 0x84e   : > { %12004 = vst [vmem:[#allocation3 + $0x80] sm:$0xff] %v15599_v26  ;;  %v15602_v8 = vadd.f32 %v15601_v59, %v11848_v7  ;;  %v15484_v10 = vpop.f32.mrb[31].mxu1  ;;  %v12086_v12 = vmax.f32 %v15599_v26, 0.0 }
 0x84f   : > { %v15637_v10 = vld [vmem:[#allocation3 + $0xe8] sm:$0xff] }
 0x850   : > { %12005 = vst [vmem:[#allocation3 + $0x88] sm:$0xff] %v15602_v8  ;;  %v12087_v16 = vmax.f32 %v15602_v8, 0.0 }
 0x852   : > { %v13448_v4 = vpack.c.bf16 %v12087_v16, %v12086_v12 }
 0x853   : > { %v11853_v0 = vpop.f32.mrb[32].mxu1 }
 0x854   : > { %13529 = vst [vmem:[%s18939_s14 + $0x40] sm:$0xff] %v13448_v4   ;;  %v15605_v49 = vadd.f32 %v15604_v44, %v11853_v0  ;;  %v15487_v9 = vpop.f32.mrb[33].mxu1 }
 0x855   : > { %v11856_v17 = vpop.f32.mrb[34].mxu1  ;;  %v15640_v9 = vld [vmem:[#allocation3 + $0xf0] sm:$0xff] }
 0x856   : > { %12006 = vst [vmem:[#allocation3 + $0x90] sm:$0xff] %v15605_v49  ;;  %v15608_v18 = vadd.f32 %v15607_v51, %v11856_v17  ;;  %v15488_v58 = vpop.f32.mrb[35].mxu1  ;;  %v12088_v2 = vmax.f32 %v15605_v49, 0.0 }
 0x857   : > { %v15643_v58 = vld [vmem:[#allocation3 + $0xf8] sm:$0xff] }
 0x858   : > { %12007 = vst [vmem:[#allocation3 + $0x98] sm:$0xff] %v15608_v18  ;;  %v12089_v24 = vmax.f32 %v15608_v18, 0.0 }
 0x85a   : > { %v13453_v36 = vpack.c.bf16 %v12089_v24, %v12088_v2 }
 0x85b   : > { %v11861_v19 = vpop.f32.mrb[36].mxu1 }
 0x85c   : > { %13530 = vst [vmem:[%s18939_s14 + $0x48] sm:$0xff] %v13453_v36   ;;  %v15611_v35 = vadd.f32 %v15610_v47, %v11861_v19  ;;  %v15491_v20 = vpop.f32.mrb[37].mxu1 }
 0x85d   : > { %v11864_v21 = vpop.f32.mrb[38].mxu1  ;;  %v15646_v20 = vld [vmem:[#allocation3 + $0x100] sm:$0xff] }
 0x85e   : > { %12008 = vst [vmem:[#allocation3 + $0xa0] sm:$0xff] %v15611_v35  ;;  %v15614_v54 = vadd.f32 %v15613_v22, %v11864_v21  ;;  %v15492_v23 = vpop.f32.mrb[39].mxu1  ;;  %v12090_v28 = vmax.f32 %v15611_v35, 0.0 }
 0x85f   : > { %v15649_v23 = vld [vmem:[#allocation3 + $0x108] sm:$0xff] }
 0x860   : > { %12009 = vst [vmem:[#allocation3 + $0xa8] sm:$0xff] %v15614_v54  ;;  %v12091_v29 = vmax.f32 %v15614_v54, 0.0 }
 0x862   : > { %v13458_v30 = vpack.c.bf16 %v12091_v29, %v12090_v28 }
 0x863   : > { %v11869_v31 = vpop.f32.mrb[40].mxu1 }
 0x864   : > { %13531 = vst [vmem:[%s18939_s14 + $0x50] sm:$0xff] %v13458_v30   ;;  %v15617_v39 = vadd.f32 %v15616_v33, %v11869_v31  ;;  %v15495_v34 = vpop.f32.mrb[41].mxu1 }
 0x865   : > { %v11872_v43 = vpop.f32.mrb[42].mxu1  ;;  %v15652_v34 = vld [vmem:[#allocation3 + $0x110] sm:$0xff] }
 0x866   : > { %12010 = vst [vmem:[#allocation3 + $0xb0] sm:$0xff] %v15617_v39  ;;  %v15620_v48 = vadd.f32 %v15619_v45, %v11872_v43  ;;  %v15496_v61 = vpop.f32.mrb[43].mxu1  ;;  %v12092_v56 = vmax.f32 %v15617_v39, 0.0 }
 0x867   : > { %v15655_v61 = vld [vmem:[#allocation3 + $0x118] sm:$0xff] }
 0x868   : > { %12011 = vst [vmem:[#allocation3 + $0xb8] sm:$0xff] %v15620_v48  ;;  %v12093_v40 = vmax.f32 %v15620_v48, 0.0 }
 0x86a   : > { %v13463_v57 = vpack.c.bf16 %v12093_v40, %v12092_v56 }
 0x86b   : > { %v11877_v37 = vpop.f32.mrb[44].mxu1 }
 0x86c   : > { %13532 = vst [vmem:[%s18939_s14 + $0x58] sm:$0xff] %v13463_v57   ;;  %v15623_v11 = vadd.f32 %v15622_v60, %v11877_v37  ;;  %v15499_v15 = vpop.f32.mrb[45].mxu1 }
 0x86d   : > { %v11880_v25 = vpop.f32.mrb[46].mxu1  ;;  %v15658_v15 = vld [vmem:[#allocation3 + $0x120] sm:$0xff] }
 0x86e   : > { %12012 = vst [vmem:[#allocation3 + $0xc0] sm:$0xff] %v15623_v11  ;;  %v15626_v13 = vadd.f32 %v15625_v14, %v11880_v25  ;;  %v15500_v52 = vpop.f32.mrb[47].mxu1  ;;  %v12094_v55 = vmax.f32 %v15623_v11, 0.0 }
 0x86f   : > { %v15661_v52 = vld [vmem:[#allocation3 + $0x128] sm:$0xff] }
 0x870   : > { %12013 = vst [vmem:[#allocation3 + $0xc8] sm:$0xff] %v15626_v13  ;;  %v12095_v1 = vmax.f32 %v15626_v13, 0.0 }
 0x872   : > { %v13468_v42 = vpack.c.bf16 %v12095_v1, %v12094_v55 }
 0x873   : > { %v11885_v46 = vpop.f32.mrb[48].mxu1 }
 0x874   : > { %13533 = vst [vmem:[%s18939_s14 + $0x60] sm:$0xff] %v13468_v42   ;;  %v15629_v62 = vadd.f32 %v15628_v41, %v11885_v46  ;;  %v15503_v63 = vpop.f32.mrb[49].mxu1 }
 0x875   : > { %v11888_v53 = vpop.f32.mrb[50].mxu1  ;;  %v15664_v63 = vld [vmem:[#allocation3 + $0x130] sm:$0xff] }
 0x876   : > { %12014 = vst [vmem:[#allocation3 + $0xd0] sm:$0xff] %v15629_v62  ;;  %v15632_v38 = vadd.f32 %v15631_v50, %v11888_v53  ;;  %v15504_v3 = vpop.f32.mrb[51].mxu1  ;;  %v12096_v27 = vmax.f32 %v15629_v62, 0.0 }
 0x877   : > { %v15667_v3 = vld [vmem:[#allocation3 + $0x138] sm:$0xff] }
 0x878   : > { %12015 = vst [vmem:[#allocation3 + $0xd8] sm:$0xff] %v15632_v38  ;;  %v12097_v32 = vmax.f32 %v15632_v38, 0.0 }
 0x87a   : > { %v13473_v5 = vpack.c.bf16 %v12097_v32, %v12096_v27 }
 0x87b   : > { %v11893_v26 = vpop.f32.mrb[52].mxu1 }
 0x87c   : > { %13534 = vst [vmem:[%s18939_s14 + $0x68] sm:$0xff] %v13473_v5   ;;  %v15635_v7 = vadd.f32 %v15634_v6, %v11893_v26  ;;  %v15507_v59 = vpop.f32.mrb[53].mxu1 }
 0x87d   : > { %v11896_v8 = vpop.f32.mrb[54].mxu1 }
 0x87e   : > { %12016 = vst [vmem:[#allocation3 + $0xe0] sm:$0xff] %v15635_v7  ;;  %v15638_v12 = vadd.f32 %v15637_v10, %v11896_v8  ;;  %v15508_v16 = vpop.f32.mrb[55].mxu1  ;;  %v12098_v4 = vmax.f32 %v15635_v7, 0.0  ;;  %v11517_v7 = vld [vmem:[#allocation3 + $0x140] sm:$0xf] }
 0x880   : > { %12017 = vst [vmem:[#allocation3 + $0xe8] sm:$0xff] %v15638_v12  ;;  %v12099_v0 = vmax.f32 %v15638_v12, 0.0 }
 0x882   : > { %v13478_v44 = vpack.c.bf16 %v12099_v0, %v12098_v4 }
 0x883   : > { %v11901_v49 = vpop.f32.mrb[56].mxu1 }
 0x884   : > { %13535 = vst [vmem:[%s18939_s14 + $0x70] sm:$0xff] %v13478_v44   ;;  %v15641_v17 = vadd.f32 %v15640_v9, %v11901_v49  ;;  %v15511_v51 = vpop.f32.mrb[57].mxu1 }
 0x885   : > { %v11904_v18 = vpop.f32.mrb[58].mxu1 }
 0x886   : > { %12018 = vst [vmem:[#allocation3 + $0xf0] sm:$0xff] %v15641_v17  ;;  %v15644_v2 = vadd.f32 %v15643_v58, %v11904_v18  ;;  %v15512_v24 = vpop.f32.mrb[59].mxu1  ;;  %v12100_v36 = vmax.f32 %v15641_v17, 0.0 }
 0x888   : > { %12019 = vst [vmem:[#allocation3 + $0xf8] sm:$0xff] %v15644_v2  ;;  %v12101_v19 = vmax.f32 %v15644_v2, 0.0 }
 0x88a   : > { %v13483_v47 = vpack.c.bf16 %v12101_v19, %v12100_v36 }
 0x88b   : > { %v11909_v35 = vpop.f32.mrb[60].mxu1 }
 0x88c   : > { %13536 = vst [vmem:[%s18939_s14 + $0x78] sm:$0xff] %v13483_v47   ;;  %v15647_v21 = vadd.f32 %v15646_v20, %v11909_v35  ;;  %v15515_v22 = vpop.f32.mrb[61].mxu1 }
 0x88d   : > { %v11912_v54 = vpop.f32.mrb[62].mxu1 }
 0x88e   : > { %12020 = vst [vmem:[#allocation3 + $0x100] sm:$0xff] %v15647_v21  ;;  %v15650_v28 = vadd.f32 %v15649_v23, %v11912_v54  ;;  %v15516_v29 = vpop.f32.mrb[63].mxu1  ;;  %v12102_v30 = vmax.f32 %v15647_v21, 0.0 }
 0x890   : > { %12021 = vst [vmem:[#allocation3 + $0x108] sm:$0xff] %v15650_v28  ;;  %v12103_v31 = vmax.f32 %v15650_v28, 0.0 }
 0x892   : > { %v13488_v33 = vpack.c.bf16 %v12103_v31, %v12102_v30 }
 0x893   : > { %v11917_v39 = vpop.f32.mrb[64].mxu1 }
 0x894   : > { %13537 = vst [vmem:[%s18939_s14 + $0x80] sm:$0xff] %v13488_v33   ;;  %v15653_v43 = vadd.f32 %v15652_v34, %v11917_v39  ;;  %v15519_v45 = vpop.f32.mrb[65].mxu1 }
 0x895   : > { %v11920_v48 = vpop.f32.mrb[66].mxu1 }
 0x896   : > { %12022 = vst [vmem:[#allocation3 + $0x110] sm:$0xff] %v15653_v43  ;;  %v15656_v56 = vadd.f32 %v15655_v61, %v11920_v48  ;;  %v15520_v40 = vpop.f32.mrb[67].mxu1  ;;  %v12104_v57 = vmax.f32 %v15653_v43, 0.0 }
 0x898   : > { %12023 = vst [vmem:[#allocation3 + $0x118] sm:$0xff] %v15656_v56  ;;  %v12105_v37 = vmax.f32 %v15656_v56, 0.0 }
 0x89a   : > { %v13493_v60 = vpack.c.bf16 %v12105_v37, %v12104_v57 }
 0x89b   : > { %v11925_v11 = vpop.f32.mrb[68].mxu1 }
 0x89c   : > { %13538 = vst [vmem:[%s18939_s14 + $0x88] sm:$0xff] %v13493_v60   ;;  %v15659_v25 = vadd.f32 %v15658_v15, %v11925_v11  ;;  %v15523_v14 = vpop.f32.mrb[69].mxu1 }
 0x89d   : > { %v11928_v13 = vpop.f32.mrb[70].mxu1 }
 0x89e   : > { %12024 = vst [vmem:[#allocation3 + $0x120] sm:$0xff] %v15659_v25  ;;  %v15662_v55 = vadd.f32 %v15661_v52, %v11928_v13  ;;  %v15524_v1 = vpop.f32.mrb[71].mxu1  ;;  %v12106_v42 = vmax.f32 %v15659_v25, 0.0 }
 0x8a0   : > { %12025 = vst [vmem:[#allocation3 + $0x128] sm:$0xff] %v15662_v55  ;;  %v12107_v46 = vmax.f32 %v15662_v55, 0.0 }
 0x8a2   : > { %v13498_v41 = vpack.c.bf16 %v12107_v46, %v12106_v42 }
 0x8a3   : > { %v11933_v62 = vpop.f32.mrb[72].mxu1 }
 0x8a4   : > { %13539 = vst [vmem:[%s18939_s14 + $0x90] sm:$0xff] %v13498_v41   ;;  %v15665_v53 = vadd.f32 %v15664_v63, %v11933_v62  ;;  %v15527_v50 = vpop.f32.mrb[73].mxu1 }
 0x8a5   : > { %v11936_v38 = vpop.f32.mrb[74].mxu1 }
 0x8a6   : > { %12026 = vst [vmem:[#allocation3 + $0x130] sm:$0xff] %v15665_v53  ;;  %v15668_v27 = vadd.f32 %v15667_v3, %v11936_v38  ;;  %v15528_v32 = vpop.f32.mrb[75].mxu1  ;;  %v12108_v5 = vmax.f32 %v15665_v53, 0.0 }
 0x8a8   : > { %12027 = vst [vmem:[#allocation3 + $0x138] sm:$0xff] %v15668_v27  ;;  %v12109_v26 = vmax.f32 %v15668_v27, 0.0 }
 0x8aa   : > { %v13503_v6 = vpack.c.bf16 %v12109_v26, %v12108_v5 }
 0x8ab   : > { %v11941_v59 = vpop.f32.mrb[104].mxu1 }
 0x8ac   : > { %13540 = vst [vmem:[%s18939_s14 + $0x98] sm:$0xff] %v13503_v6   ;;  %v11987_v8 = vadd.f32 %v11941_v59, %v11517_v7  ;;  %v15531_v10 = vpop.f32.mrb[105].mxu1 }
 0x8ad   : > { %v11944_v12 = vpop.f32.mrb[106].mxu1 }
 0x8ae   : > { %12028 = vst [vmem:[#allocation3 + $0x140] sm:$0xf] %v11987_v8  ;;  %v15532_v16 = vpop.f32.mrb[107].mxu1 }
 0x8b5   : > { %v12069_v4 = vld [vmem:[#allocation3 + $0x140] sm:$0xf] }
 0x8b6   : > { %v12110_v0 = vmax.f32 %v12069_v4, 0.0 }
 0x8b8   : > { %v13319_v44 = vpack.c.bf16 %v12110_v0, %v12110_v0 }
 0x8ba   : > { %12316 = vst [vmem:[%s18939_s14 + $0xa0] sm:$0x3] %v13319_v44 }
 0x8bb PF: > { %s15_s18 = sadd.s32 1, %s17122_s18  }
 0x8bc   : > { %p12_p4 = scmp.ge.s32.totalorder %s15_s18, 4  }
 0x8be   :  { %14 = sbr.rel (!%p12_p4) target bundleno = 1 (0x1), region = 86 }

</bundles_post_ra>
